<compile_context>
chip_gen: v7x
topology: tpu7x:2x2x1
jax: 0.10.0
libtpu: 0.0.40
codegen_flags: <defaults>
</compile_context>

<pallas_src>
import functools
import math

import jax
import jax.numpy as jnp
from jax.experimental import pallas as pl
from jax.experimental.pallas import tpu as pltpu

LN_EPS = 1e-6       # torchvision ViT LayerNorm eps
BN_EPS = 1e-5       # nn.BatchNorm1d default eps
LRELU_SLOPE = 0.01  # nn.LeakyReLU default negative_slope

_VMEM_FLOOR = 32 << 20
_VMEM_CAP = 60 << 20   # stay under v7x's 64 MiB physical VMEM


def _round_up(x, m):
    return ((x + m - 1) // m) * m


def _row_tile(batch, s_pad, target=512):
    """Row tile for (B*S_pad, ...) token matrices: a multiple of S_pad (so it
    always divides M and is a multiple of 8), capped around `target` rows so
    per-buffer VMEM stays bounded on v7x."""
    f = 1
    while f * 2 <= batch and batch % (f * 2) == 0 and s_pad * (f * 2) <= target:
        f *= 2
    return s_pad * f


def _head_group(heads, dh):
    """Heads processed per attention grid step, chosen so the per-group lane
    width hg*dh is 128 (lane-dense stores) whenever possible."""
    if dh % 128 == 0:
        return 1
    if 128 % dh == 0 and heads % (128 // dh) == 0:
        return 128 // dh
    return heads  # full-D block per batch element (always a legal BlockSpec)


def _vmem_params(est_bytes, sems):
    return pltpu.CompilerParams(
        dimension_semantics=sems,
        vmem_limit_bytes=int(min(max(est_bytes, _VMEM_FLOOR), _VMEM_CAP)))


# ---------------------------------------------------------------------------
# Generic fused linear: (optional LayerNorm) -> matmul(+bias) -> (optional
# residual add) -> (optional GELU).  1-D grid over M row tiles; the full (K,N)
# bf16 weight is VMEM-resident (constant block index => DMA'd once).
# ---------------------------------------------------------------------------
def _linear_kernel(*refs, fuse_ln, activation, has_residual):
    idx = 0
    x_ref = refs[idx]; idx += 1
    w_ref = refs[idx]; idx += 1
    b_ref = refs[idx]; idx += 1
    if fuse_ln:
        g_ref, be_ref = refs[idx], refs[idx + 1]; idx += 2
    if has_residual:
        r_ref = refs[idx]; idx += 1
    o_ref = refs[idx]

    x = x_ref[...].astype(jnp.float32)
    if fuse_ln:
        mu = jnp.mean(x, axis=-1, keepdims=True)
        var = jnp.mean(jnp.square(x - mu), axis=-1, keepdims=True)
        x = (x - mu) * jax.lax.rsqrt(var + LN_EPS) * g_ref[...] + be_ref[...]
    y = jnp.dot(x.astype(jnp.bfloat16), w_ref[...],
                preferred_element_type=jnp.float32) + b_ref[...]
    if has_residual:
        y = y + r_ref[...].astype(jnp.float32)
    if activation == "gelu":
        # TODO(synk): torchvision nn.GELU is the exact erf form; tanh approx is
        # used here for guaranteed Mosaic lowering.
        y = jax.nn.gelu(y, approximate=True)
    o_ref[...] = y.astype(o_ref.dtype)


def fused_linear(x, w, b, *, gamma=None, beta=None, residual=None,
                 activation="none", out_dtype=jnp.float32, tm=None):
    M, K = x.shape
    Kw, N = w.shape
    assert K == Kw
    if tm is None or M % tm != 0 or (tm % 8 != 0 and tm != M):
        tm = M
    fuse_ln = gamma is not None
    has_res = residual is not None

    args = [x, w.astype(jnp.bfloat16), b.reshape(1, N).astype(jnp.float32)]
    in_specs = [pl.BlockSpec((tm, K), lambda i: (i, 0)),
                pl.BlockSpec((K, N), lambda i: (0, 0)),     # resident weight
                pl.BlockSpec((1, N), lambda i: (0, 0))]
    if fuse_ln:
        args += [gamma.reshape(1, K).astype(jnp.float32),
                 beta.reshape(1, K).astype(jnp.float32)]
        in_specs += [pl.BlockSpec((1, K), lambda i: (0, 0)),
                     pl.BlockSpec((1, K), lambda i: (0, 0))]
    if has_res:
        args.append(residual)
        in_specs.append(pl.BlockSpec((tm, N), lambda i: (i, 0)))

    xb = x.dtype.itemsize
    rb = residual.dtype.itemsize if has_res else 0
    ob = jnp.dtype(out_dtype).itemsize
    est = 2 * tm * (K * xb + N * (ob + rb)) + 2 * K * N * 2 + (2 << 20)

    return pl.pallas_call(
        functools.partial(_linear_kernel, fuse_ln=fuse_ln,
                          activation=activation, has_residual=has_res),
        out_shape=jax.ShapeDtypeStruct((M, N), out_dtype),
        grid=(M // tm,),
        in_specs=in_specs,
        out_specs=pl.BlockSpec((tm, N), lambda i: (i, 0)),
        compiler_params=_vmem_params(est, ("parallel",)),
    )(*args)


# ---------------------------------------------------------------------------
# Patch projection: M-tiled resident-weight linear with positional embedding
# (+ conv bias) fused into the epilogue.  One M tile == one batch element's
# padded patch rows, so the pos block index is constant.
# ---------------------------------------------------------------------------
def _embed_kernel(p_ref, w_ref, pb_ref, o_ref):
    y = jnp.dot(p_ref[...].astype(jnp.bfloat16), w_ref[...],
                preferred_element_type=jnp.float32) + pb_ref[...]
    o_ref[...] = y.astype(o_ref.dtype)


def patch_embed(patches2d, conv_w, pos_bias):
    """patches2d: (B*P_pad, Kp) f32, pos_bias: (P_pad, D) f32 -> (B*P_pad, D)."""
    M, K = patches2d.shape
    Kw, D = conv_w.shape
    assert K == Kw
    P_pad, _ = pos_bias.shape
    tm = P_pad
    est = 2 * tm * (K + D) * 4 + 2 * K * D * 2 + (2 << 20)
    return pl.pallas_call(
        _embed_kernel,
        out_shape=jax.ShapeDtypeStruct((M, D), jnp.float32),
        grid=(M // tm,),
        in_specs=[pl.BlockSpec((tm, K), lambda i: (i, 0)),
                  pl.BlockSpec((K, D), lambda i: (0, 0)),
                  pl.BlockSpec((tm, D), lambda i: (0, 0))],
        out_specs=pl.BlockSpec((tm, D), lambda i: (i, 0)),
        compiler_params=_vmem_params(est, ("parallel",)),
    )(patches2d, conv_w.astype(jnp.bfloat16), pos_bias)


# ---------------------------------------------------------------------------
# Multi-head self-attention over a (batch, head-group) grid.  QKV columns are
# laid out group-major: [Q_g | K_g | V_g] per group of hg heads, so per-group
# blocks are pure lane addressing (no XLA transposes).  Padded key rows beyond
# s_real are masked out of the softmax; outputs are stored as one lane-dense
# (S, hg*dh) block per step.
# ---------------------------------------------------------------------------
def _attn_kernel(qkv_ref, o_ref, *, hg, dh, scale, s_real):
    x = qkv_ref[0]                         # (S_pad, 3*hg*dh) bf16
    S = x.shape[0]
    outs = []
    for h in range(hg):                    # hg is small (2 for ViT-L)
        q = x[:, h * dh:(h + 1) * dh]
        k = x[:, hg * dh + h * dh: hg * dh + (h + 1) * dh]
        v = x[:, 2 * hg * dh + h * dh: 2 * hg * dh + (h + 1) * dh]
        # q @ k^T without materializing the transpose.
        s = jax.lax.dot_general(q, k, (((1,), (1,)), ((), ())),
                                preferred_element_type=jnp.float32) * scale
        if s_real < S:                     # mask padded key rows (static)
            kidx = jax.lax.broadcasted_iota(jnp.int32, s.shape, 1)
            s = jnp.where(kidx < s_real, s, -1e30)
        m = jnp.max(s, axis=-1, keepdims=True)
        p = jnp.exp(s - m)
        inv = pl.reciprocal(jnp.sum(p, axis=-1, keepdims=True), approx=True)
        p = (p * inv).astype(jnp.bfloat16)
        outs.append(jnp.dot(p, v, preferred_element_type=jnp.float32))
    out = outs[0] if hg == 1 else jnp.concatenate(outs, axis=-1)
    o_ref[0] = out.astype(o_ref.dtype)     # single lane-dense full-block store


def attention(qkv, heads, s_real):
    """qkv: (B, S_pad, 3*D) bf16, columns group-major [Q_g|K_g|V_g] per head
    group -> (B, S_pad, D) bf16 with heads packed head-major along lanes."""
    B, S, threeD = qkv.shape
    D = threeD // 3
    dh = D // heads
    hg = _head_group(heads, dh)
    ng = heads // hg
    gw = 3 * hg * dh
    scale = 1.0 / math.sqrt(dh)
    return pl.pallas_call(
        functools.partial(_attn_kernel, hg=hg, dh=dh, scale=scale,
                          s_real=s_real),
        out_shape=jax.ShapeDtypeStruct((B, S, D), jnp.bfloat16),
        grid=(B, ng),
        in_specs=[pl.BlockSpec((1, S, gw), lambda b, g: (b, 0, g))],
        out_specs=pl.BlockSpec((1, S, hg * dh), lambda b, g: (b, 0, g)),
        compiler_params=pltpu.CompilerParams(
            dimension_semantics=("parallel", "parallel")),
    )(qkv)


# ---------------------------------------------------------------------------
# Fused head: final encoder LayerNorm (cls row) -> Linear -> BN(eval) ->
# LeakyReLU -> [Dropout1d = id] -> Linear -> BN(eval) -> LeakyReLU.
# ---------------------------------------------------------------------------
def _head_kernel(x_ref, lng_ref, lnb_ref,
                 w1_ref, b1_ref, g1_ref, be1_ref, m1_ref, v1_ref,
                 w2_ref, b2_ref, g2_ref, be2_ref, m2_ref, v2_ref, o_ref):
    x = x_ref[...].astype(jnp.float32)
    mu = jnp.mean(x, axis=-1, keepdims=True)
    var = jnp.mean(jnp.square(x - mu), axis=-1, keepdims=True)
    x = (x - mu) * jax.lax.rsqrt(var + LN_EPS) * lng_ref[...] + lnb_ref[...]

    h = jnp.dot(x.astype(jnp.bfloat16), w1_ref[...],
                preferred_element_type=jnp.float32) + b1_ref[...]
    h = (h - m1_ref[...]) * jax.lax.rsqrt(v1_ref[...] + BN_EPS) * g1_ref[...] + be1_ref[...]
    h = jnp.where(h > 0, h, LRELU_SLOPE * h)
    # TODO(synk): Dropout1d(p=0.5) is identity in eval mode (freeze=True).
    h = jnp.dot(h.astype(jnp.bfloat16), w2_ref[...],
                preferred_element_type=jnp.float32) + b2_ref[...]
    h = (h - m2_ref[...]) * jax.lax.rsqrt(v2_ref[...] + BN_EPS) * g2_ref[...] + be2_ref[...]
    o_ref[...] = jnp.where(h > 0, h, LRELU_SLOPE * h).astype(o_ref.dtype)


def fused_head(cls_tok, p):
    B, D = cls_tok.shape
    H2 = p["h2_w"].shape[1]

    def v2(a):
        return a.reshape(1, -1).astype(jnp.float32)

    args = (cls_tok, v2(p["ln_f_g"]), v2(p["ln_f_b"]),
            p["h1_w"], v2(p["h1_b"]), v2(p["bn1_g"]), v2(p["bn1_b"]),
            v2(p["bn1_m"]), v2(p["bn1_v"]),
            p["h2_w"], v2(p["h2_b"]), v2(p["bn2_g"]), v2(p["bn2_b"]),
            v2(p["bn2_m"]), v2(p["bn2_v"]))
    return pl.pallas_call(
        _head_kernel,
        out_shape=jax.ShapeDtypeStruct((B, H2), jnp.float32),
        grid=(1,),
        in_specs=[pl.BlockSpec(a.shape, lambda i: (0, 0)) for a in args],
        out_specs=pl.BlockSpec((B, H2), lambda i: (0, 0)),
    )(*args)


# ------------------------------- Model glue --------------------------------

def init_params(key, *, C, patch, D, depth, heads, mlp_dim, n_tokens,
                head_hidden, head_out):
    wdt = jnp.bfloat16  # matmul weights stored bf16 (MXU-native, halves HBM/VMEM)

    def nrm(k, shape, std=0.02, dtype=jnp.float32):
        return (std * jax.random.normal(k, shape, dtype=jnp.float32)).astype(dtype)

    keys = iter(jax.random.split(key, 8 + 8 * depth))
    p = {
        "conv_w": nrm(next(keys), (C * patch * patch, D), dtype=wdt),
        "conv_b": jnp.zeros((D,), jnp.float32),
        "class_token": nrm(next(keys), (1, 1, D)),
        "pos_emb": nrm(next(keys), (1, n_tokens, D)),
        "ln_f_g": jnp.ones((D,), jnp.float32),
        "ln_f_b": jnp.zeros((D,), jnp.float32),
        "layers": [],
        # Replaced head: Linear(D,256)->BN->LeakyReLU->Dropout1d->Linear(256,64)->BN->LeakyReLU
        "h1_w": nrm(next(keys), (D, head_hidden), dtype=wdt),
        "h1_b": jnp.zeros((head_hidden,), jnp.float32),
        "bn1_g": jnp.ones((head_hidden,), jnp.float32),
        "bn1_b": jnp.zeros((head_hidden,), jnp.float32),
        "bn1_m": jnp.zeros((head_hidden,), jnp.float32),
        "bn1_v": jnp.ones((head_hidden,), jnp.float32),
        "h2_w": nrm(next(keys), (head_hidden, head_out), dtype=wdt),
        "h2_b": jnp.zeros((head_out,), jnp.float32),
        "bn2_g": jnp.ones((head_out,), jnp.float32),
        "bn2_b": jnp.zeros((head_out,), jnp.float32),
        "bn2_m": jnp.zeros((head_out,), jnp.float32),
        "bn2_v": jnp.ones((head_out,), jnp.float32),
    }
    for _ in range(depth):
        # TODO(synk): when importing real torchvision in_proj weights, permute
        # qkv_w/qkv_b columns into [head-group][Q|K|V][head][dh] order assumed
        # by the attention kernel (random init here, so the layout is by fiat).
        p["layers"].append({
            "ln1_g": jnp.ones((D,), jnp.float32),
            "ln1_b": jnp.zeros((D,), jnp.float32),
            "qkv_w": nrm(next(keys), (D, 3 * D), dtype=wdt),
            "qkv_b": jnp.zeros((3 * D,), jnp.float32),
            "out_w": nrm(next(keys), (D, D), dtype=wdt),
            "out_b": jnp.zeros((D,), jnp.float32),
            "ln2_g": jnp.ones((D,), jnp.float32),
            "ln2_b": jnp.zeros((D,), jnp.float32),
            "mlp_w1": nrm(next(keys), (D, mlp_dim), dtype=wdt),
            "mlp_b1": jnp.zeros((mlp_dim,), jnp.float32),
            "mlp_w2": nrm(next(keys), (mlp_dim, D), dtype=wdt),
            "mlp_b2": jnp.zeros((D,), jnp.float32),
        })
    return p


def encoder_layer(seq, lp, heads, s_real, tm):
    """Pre-LN transformer block; LN fused into QKV / MLP-1, residual adds fused
    into out-proj / MLP-2 epilogues.  seq (f32 residual stream) -> seq."""
    B, S, Dm = seq.shape
    x2 = seq.reshape(B * S, Dm)
    # --- attention sublayer ---
    qkv = fused_linear(x2, lp["qkv_w"], lp["qkv_b"], gamma=lp["ln1_g"],
                       beta=lp["ln1_b"], out_dtype=jnp.bfloat16, tm=tm)
    attn = attention(qkv.reshape(B, S, 3 * Dm), heads, s_real)
    y2 = fused_linear(attn.reshape(B * S, Dm), lp["out_w"], lp["out_b"],
                      residual=x2, out_dtype=jnp.float32, tm=tm)
    # --- MLP sublayer ---
    h = fused_linear(y2, lp["mlp_w1"], lp["mlp_b1"], gamma=lp["ln2_g"],
                     beta=lp["ln2_b"], activation="gelu",
                     out_dtype=jnp.bfloat16, tm=tm)
    out = fused_linear(h, lp["mlp_w2"], lp["mlp_b2"], residual=y2,
                       out_dtype=jnp.float32, tm=tm)
    return out.reshape(B, S, Dm)


def vit_backbone_forward(x, params, *, patch, heads):
    """x: (B, C, H, W) float32 -> (B, 64) features (eval semantics)."""
    B, C, H, W = x.shape
    nh, nw = H // patch, W // patch
    P = nh * nw
    D = params["conv_w"].shape[1]
    Kp = C * patch * patch

    # Patchify (== Conv2d(kernel=stride=patch)); (C, ph, pw) flatten order
    # matches a (D, C, p, p) Conv2d weight reshaped to (C*p*p, D).
    patches = x.reshape(B, C, nh, patch, nw, patch)
    patches = patches.transpose(0, 2, 4, 1, 3, 5).reshape(B, P, Kp)

    # Pad the token axis once: P_pad patches (multiple of 8) + cls + pad rows
    # so S_pad is a multiple of 8 and every linear tiles at tm = k * S_pad.
    P_pad = _round_up(P, 8)
    S_real = P + 1
    S_pad = _round_up(P_pad + 1, 8)
    if P_pad > P:
        patches = jnp.pad(patches, ((0, 0), (0, P_pad - P), (0, 0)))

    pos = params["pos_emb"]                                   # (1, S_real, D)
    pos_bias = jnp.pad(pos[0, 1:], ((0, P_pad - P), (0, 0))) + params["conv_b"]
    tok = patch_embed(patches.reshape(B * P_pad, Kp), params["conv_w"],
                      pos_bias).reshape(B, P_pad, D)
    cls = jnp.broadcast_to((params["class_token"] + pos[:, :1]), (B, 1, D))
    pad_rows = S_pad - 1 - P_pad
    seq = jnp.concatenate(
        [cls, tok, jnp.zeros((B, pad_rows, D), jnp.float32)], axis=1)
    # encoder dropout = identity (eval)

    tm = _row_tile(B, S_pad)
    for lp in params["layers"]:
        seq = encoder_layer(seq, lp, heads, S_real, tm)

    cls_out = seq[:, 0]                                       # (B, D)
    # Final encoder LayerNorm (cls row only, LN is per-row) + replaced head.
    return fused_head(cls_out, params)


# ---------------------------------- Main ------------------------------------

if __name__ == "__main__":
    # Small synthetic ViT config (vit_l_16 would be D=1024, depth=24, heads=16,
    # mlp=4096, 224x224 images — identical forward structure, scaled down).
    # dh=64 matches ViT-L so the attention head-group path (hg=2, 128-lane
    # blocks) is exercised.
    B, C, H, W = 2, 3, 32, 32
    PATCH = 16
    D = 256
    DEPTH = 2
    HEADS = 4
    MLP_DIM = 512
    N_TOKENS = (H // PATCH) * (W // PATCH) + 1                # 4 patches + cls

    key = jax.random.PRNGKey(0)
    k_param, k_x = jax.random.split(key)
    params = init_params(k_param, C=C, patch=PATCH, D=D, depth=DEPTH,
                         heads=HEADS, mlp_dim=MLP_DIM, n_tokens=N_TOKENS,
                         head_hidden=256, head_out=64)
    x = jax.random.normal(k_x, (B, C, H, W), dtype=jnp.float32)

    fwd = jax.jit(functools.partial(vit_backbone_forward, patch=PATCH,
                                    heads=HEADS))
    out = jax.block_until_ready(fwd(x, params))

    assert out.shape == (B, 64), out.shape
    assert bool(jnp.all(jnp.isfinite(out)))
    print("KERNEL_OK")
</pallas_src>

<mosaic_0001>
module attributes {stable_mosaic.version = 11 : i64} {
  func.func @_embed_kernel(%arg0: i32, %arg1: memref<8x768xf32, #tpu.memory_space<vmem>>, %arg2: memref<768x256xbf16, #tpu.memory_space<vmem>>, %arg3: memref<8x256xf32, #tpu.memory_space<vmem>>, %arg4: memref<8x256xf32, #tpu.memory_space<vmem>>) attributes {dimension_semantics = [#tpu.dimension_semantics<parallel>], iteration_bounds = array<i64: 2>, scalar_prefetch = 0 : i64, scratch_operands = 0 : i64, tpu.core_type = #tpu.core_type<tc>, window_params = [{transform_indices = @transform_0, window_bounds = array<i64: 8, 768>}, {pipeline_mode = #tpu.pipeline_mode<synchronous>, transform_indices = @transform_1, window_bounds = array<i64: 768, 256>}, {pipeline_mode = #tpu.pipeline_mode<synchronous>, transform_indices = @transform_2, window_bounds = array<i64: 8, 256>}, {transform_indices = @transform_3, window_bounds = array<i64: 8, 256>}]} {
    %c0 = arith.constant 0 : index
    %c0_0 = arith.constant 0 : index
    %0 = vector.load %arg1[%c0, %c0_0] : memref<8x768xf32, #tpu.memory_space<vmem>>, vector<8x768xf32>
    %1 = arith.truncf %0 : vector<8x768xf32> to vector<8x768xbf16>
    %c0_1 = arith.constant 0 : index
    %c0_2 = arith.constant 0 : index
    %2 = vector.load %arg2[%c0_1, %c0_2] : memref<768x256xbf16, #tpu.memory_space<vmem>>, vector<768x256xbf16>
    %cst = arith.constant dense<0.000000e+00> : vector<8x256xf32>
    %3 = tpu.matmul %1, %2, %cst {dimension_numbers = #tpu.dot_dimension_numbers<[1], [0], [0], [1], [0, 0, 1, 1], [], []>} : vector<8x768xbf16>, vector<768x256xbf16>, vector<8x256xf32> -> vector<8x256xf32>
    %c0_3 = arith.constant 0 : index
    %c0_4 = arith.constant 0 : index
    %4 = vector.load %arg3[%c0_3, %c0_4] : memref<8x256xf32, #tpu.memory_space<vmem>>, vector<8x256xf32>
    %5 = arith.addf %3, %4 : vector<8x256xf32>
    %c0_5 = arith.constant 0 : index
    %c0_6 = arith.constant 0 : index
    %6 = vector.load %arg4[%c0_5, %c0_6] : memref<8x256xf32, #tpu.memory_space<vmem>>, vector<8x256xf32>
    tpu.vector_store %arg4[%c0_5, %c0_6], %5 {strides = array<i32>} : memref<8x256xf32, #tpu.memory_space<vmem>>, vector<8x256xf32>,
    return
  }
  func.func @transform_0(%arg0: i32) -> (i32, i32) {
    %c0_i32 = arith.constant 0 : i32
    %c0_i32_0 = arith.constant 0 : i32
    return %arg0, %c0_i32 : i32, i32
  }
  func.func @transform_1(%arg0: i32) -> (i32, i32) {
    %c0_i32 = arith.constant 0 : i32
    %c0_i32_0 = arith.constant 0 : i32
    %c0_i32_1 = arith.constant 0 : i32
    return %c0_i32, %c0_i32_0 : i32, i32
  }
  func.func @transform_2(%arg0: i32) -> (i32, i32) {
    %c0_i32 = arith.constant 0 : i32
    %c0_i32_0 = arith.constant 0 : i32
    %c0_i32_1 = arith.constant 0 : i32
    return %c0_i32, %c0_i32_0 : i32, i32
  }
  func.func @transform_3(%arg0: i32) -> (i32, i32) {
    %c0_i32 = arith.constant 0 : i32
    %c0_i32_0 = arith.constant 0 : i32
    return %arg0, %c0_i32 : i32, i32
  }
}

module attributes {stable_mosaic.version = 11 : i64} {
  func.func @_attn_kernel(%arg0: i32, %arg1: i32, %arg2: memref<1x16x384xbf16, #tpu.memory_space<vmem>>, %arg3: memref<1x16x128xbf16, #tpu.memory_space<vmem>>) attributes {dimension_semantics = [#tpu.dimension_semantics<parallel>, #tpu.dimension_semantics<parallel>], iteration_bounds = array<i64: 2, 2>, scalar_prefetch = 0 : i64, scratch_operands = 0 : i64, tpu.core_type = #tpu.core_type<tc>, window_params = [{transform_indices = @transform_0, window_bounds = array<i64: 1, 16, 384>}, {transform_indices = @transform_1, window_bounds = array<i64: 1, 16, 128>}]} {
    %c0 = arith.constant 0 : index
    %c0_0 = arith.constant 0 : index
    %c0_1 = arith.constant 0 : index
    %0 = vector.load %arg2[%c0, %c0_0, %c0_1] : memref<1x16x384xbf16, #tpu.memory_space<vmem>>, vector<1x16x384xbf16>
    %1 = vector.shape_cast %0 : vector<1x16x384xbf16> to vector<16x384xbf16>
    %2 = vector.extract_strided_slice %1 {offsets = [0, 0], sizes = [16, 64], strides = [1, 1]} : vector<16x384xbf16> to vector<16x64xbf16>
    %3 = vector.extract_strided_slice %1 {offsets = [0, 128], sizes = [16, 64], strides = [1, 1]} : vector<16x384xbf16> to vector<16x64xbf16>
    %4 = vector.extract_strided_slice %1 {offsets = [0, 256], sizes = [16, 64], strides = [1, 1]} : vector<16x384xbf16> to vector<16x64xbf16>
    %cst = arith.constant dense<0.000000e+00> : vector<16x16xf32>
    %5 = tpu.matmul %2, %3, %cst {dimension_numbers = #tpu.dot_dimension_numbers<[1], [1], [0], [0], [0, 0, 1, 0], [], []>} : vector<16x64xbf16>, vector<16x64xbf16>, vector<16x16xf32> -> vector<16x16xf32>
    %cst_2 = arith.constant 1.250000e-01 : f32
    %6 = vector.broadcast %cst_2 : f32 to vector<16x16xf32>
    %7 = arith.mulf %5, %6 : vector<16x16xf32>
    %8 = tpu.iota {dimensions = array<i32: 1>} : vector<16x16xi32>
    %c5_i32 = arith.constant 5 : i32
    %9 = vector.broadcast %c5_i32 : i32 to vector<16x16xi32>
    %10 = arith.cmpi slt, %8, %9 : vector<16x16xi32>
    %cst_3 = arith.constant -1.000000e+30 : f32
    %11 = vector.broadcast %cst_3 : f32 to vector<16x16xf32>
    %12 = arith.select %10, %7, %11 : vector<16x16xi1>, vector<16x16xf32>
    %cst_4 = arith.constant dense<0xFF800000> : vector<16xf32>
    %13 = vector.multi_reduction <maximumf>, %12, %cst_4 [1] : vector<16x16xf32> to vector<16xf32>
    %14 = vector.shape_cast %13 : vector<16xf32> to vector<16x1xf32>
    %15 = vector.broadcast %14 : vector<16x1xf32> to vector<16x16xf32>
    %16 = arith.subf %12, %15 : vector<16x16xf32>
    %17 = math.exp %16 : vector<16x16xf32>
    %cst_5 = arith.constant dense<0.000000e+00> : vector<16xf32>
    %18 = vector.multi_reduction <add>, %17, %cst_5 [1] : vector<16x16xf32> to vector<16xf32>
    %19 = vector.shape_cast %18 : vector<16xf32> to vector<16x1xf32>
    %20 = tpu.reciprocal %19 {approx = true} : vector<16x1xf32> -> vector<16x1xf32>
    %21 = vector.broadcast %20 : vector<16x1xf32> to vector<16x16xf32>
    %22 = arith.mulf %17, %21 : vector<16x16xf32>
    %23 = arith.truncf %22 : vector<16x16xf32> to vector<16x16xbf16>
    %cst_6 = arith.constant dense<0.000000e+00> : vector<16x64xf32>
    %24 = tpu.matmul %23, %4, %cst_6 {dimension_numbers = #tpu.dot_dimension_numbers<[1], [0], [0], [1], [0, 0, 1, 1], [], []>} : vector<16x16xbf16>, vector<16x64xbf16>, vector<16x64xf32> -> vector<16x64xf32>
    %25 = vector.extract_strided_slice %1 {offsets = [0, 64], sizes = [16, 64], strides = [1, 1]} : vector<16x384xbf16> to vector<16x64xbf16>
    %26 = vector.extract_strided_slice %1 {offsets = [0, 192], sizes = [16, 64], strides = [1, 1]} : vector<16x384xbf16> to vector<16x64xbf16>
    %27 = vector.extract_strided_slice %1 {offsets = [0, 320], sizes = [16, 64], strides = [1, 1]} : vector<16x384xbf16> to vector<16x64xbf16>
    %cst_7 = arith.constant dense<0.000000e+00> : vector<16x16xf32>
    %28 = tpu.matmul %25, %26, %cst_7 {dimension_numbers = #tpu.dot_dimension_numbers<[1], [1], [0], [0], [0, 0, 1, 0], [], []>} : vector<16x64xbf16>, vector<16x64xbf16>, vector<16x16xf32> -> vector<16x16xf32>
    %cst_8 = arith.constant 1.250000e-01 : f32
    %29 = vector.broadcast %cst_8 : f32 to vector<16x16xf32>
    %30 = arith.mulf %28, %29 : vector<16x16xf32>
    %31 = tpu.iota {dimensions = array<i32: 1>} : vector<16x16xi32>
    %c5_i32_9 = arith.constant 5 : i32
    %32 = vector.broadcast %c5_i32_9 : i32 to vector<16x16xi32>
    %33 = arith.cmpi slt, %31, %32 : vector<16x16xi32>
    %cst_10 = arith.constant -1.000000e+30 : f32
    %34 = vector.broadcast %cst_10 : f32 to vector<16x16xf32>
    %35 = arith.select %33, %30, %34 : vector<16x16xi1>, vector<16x16xf32>
    %cst_11 = arith.constant dense<0xFF800000> : vector<16xf32>
    %36 = vector.multi_reduction <maximumf>, %35, %cst_11 [1] : vector<16x16xf32> to vector<16xf32>
    %37 = vector.shape_cast %36 : vector<16xf32> to vector<16x1xf32>
    %38 = vector.broadcast %37 : vector<16x1xf32> to vector<16x16xf32>
    %39 = arith.subf %35, %38 : vector<16x16xf32>
    %40 = math.exp %39 : vector<16x16xf32>
    %cst_12 = arith.constant dense<0.000000e+00> : vector<16xf32>
    %41 = vector.multi_reduction <add>, %40, %cst_12 [1] : vector<16x16xf32> to vector<16xf32>
    %42 = vector.shape_cast %41 : vector<16xf32> to vector<16x1xf32>
    %43 = tpu.reciprocal %42 {approx = true} : vector<16x1xf32> -> vector<16x1xf32>
    %44 = vector.broadcast %43 : vector<16x1xf32> to vector<16x16xf32>
    %45 = arith.mulf %40, %44 : vector<16x16xf32>
    %46 = arith.truncf %45 : vector<16x16xf32> to vector<16x16xbf16>
    %cst_13 = arith.constant dense<0.000000e+00> : vector<16x64xf32>
    %47 = tpu.matmul %46, %27, %cst_13 {dimension_numbers = #tpu.dot_dimension_numbers<[1], [0], [0], [1], [0, 0, 1, 1], [], []>} : vector<16x16xbf16>, vector<16x64xbf16>, vector<16x64xf32> -> vector<16x64xf32>
    %48 = tpu.concatenate %24, %47 in 1 : vector<16x64xf32>, vector<16x64xf32> -> vector<16x128xf32>
    %49 = arith.truncf %48 : vector<16x128xf32> to vector<16x128xbf16>
    %c0_14 = arith.constant 0 : index
    %c0_15 = arith.constant 0 : index
    %c0_16 = arith.constant 0 : index
    %50 = vector.load %arg3[%c0_14, %c0_15, %c0_16] : memref<1x16x128xbf16, #tpu.memory_space<vmem>>, vector<1x16x128xbf16>
    %51 = vector.shape_cast %50 : vector<1x16x128xbf16> to vector<16x128xbf16>
    %52 = vector.shape_cast %49 : vector<16x128xbf16> to vector<1x16x128xbf16>
    tpu.vector_store %arg3[%c0_14, %c0_15, %c0_16], %52 {strides = array<i32>} : memref<1x16x128xbf16, #tpu.memory_space<vmem>>, vector<1x16x128xbf16>,
    return
  }
  func.func @transform_0(%arg0: i32, %arg1: i32) -> (i32, i32, i32) {
    %c0_i32 = arith.constant 0 : i32
    %c0_i32_0 = arith.constant 0 : i32
    return %arg0, %c0_i32, %arg1 : i32, i32, i32
  }
  func.func @transform_1(%arg0: i32, %arg1: i32) -> (i32, i32, i32) {
    %c0_i32 = arith.constant 0 : i32
    %c0_i32_0 = arith.constant 0 : i32
    return %arg0, %c0_i32, %arg1 : i32, i32, i32
  }
}

module attributes {stable_mosaic.version = 11 : i64} {
  func.func @_linear_kernel(%arg0: i32, %arg1: memref<32x256xf32, #tpu.memory_space<vmem>>, %arg2: memref<256x768xbf16, #tpu.memory_space<vmem>>, %arg3: memref<1x768xf32, #tpu.memory_space<vmem>>, %arg4: memref<1x256xf32, #tpu.memory_space<vmem>>, %arg5: memref<1x256xf32, #tpu.memory_space<vmem>>, %arg6: memref<32x768xbf16, #tpu.memory_space<vmem>>) attributes {dimension_semantics = [#tpu.dimension_semantics<parallel>], iteration_bounds = array<i64: 1>, scalar_prefetch = 0 : i64, scratch_operands = 0 : i64, tpu.core_type = #tpu.core_type<tc>, window_params = [{transform_indices = @transform_0, window_bounds = array<i64: 32, 256>}, {pipeline_mode = #tpu.pipeline_mode<synchronous>, transform_indices = @transform_1, window_bounds = array<i64: 256, 768>}, {pipeline_mode = #tpu.pipeline_mode<synchronous>, transform_indices = @transform_2, window_bounds = array<i64: 1, 768>}, {pipeline_mode = #tpu.pipeline_mode<synchronous>, transform_indices = @transform_3, window_bounds = array<i64: 1, 256>}, {pipeline_mode = #tpu.pipeline_mode<synchronous>, transform_indices = @transform_4, window_bounds = array<i64: 1, 256>}, {transform_indices = @transform_5, window_bounds = array<i64: 32, 768>}]} {
    %c0 = arith.constant 0 : index
    %c0_0 = arith.constant 0 : index
    %0 = vector.load %arg1[%c0, %c0_0] : memref<32x256xf32, #tpu.memory_space<vmem>>, vector<32x256xf32>
    %cst = arith.constant dense<0.000000e+00> : vector<32xf32>
    %1 = vector.multi_reduction <add>, %0, %cst [1] : vector<32x256xf32> to vector<32xf32>
    %2 = vector.shape_cast %1 : vector<32xf32> to vector<32x1xf32>
    %cst_1 = arith.constant 2.560000e+02 : f32
    %3 = vector.broadcast %cst_1 : f32 to vector<32x1xf32>
    %4 = arith.divf %2, %3 : vector<32x1xf32>
    %5 = vector.broadcast %4 : vector<32x1xf32> to vector<32x256xf32>
    %6 = arith.subf %0, %5 : vector<32x256xf32>
    %7 = arith.mulf %6, %6 : vector<32x256xf32>
    %cst_2 = arith.constant dense<0.000000e+00> : vector<32xf32>
    %8 = vector.multi_reduction <add>, %7, %cst_2 [1] : vector<32x256xf32> to vector<32xf32>
    %9 = vector.shape_cast %8 : vector<32xf32> to vector<32x1xf32>
    %cst_3 = arith.constant 2.560000e+02 : f32
    %10 = vector.broadcast %cst_3 : f32 to vector<32x1xf32>
    %11 = arith.divf %9, %10 : vector<32x1xf32>
    %12 = vector.broadcast %4 : vector<32x1xf32> to vector<32x256xf32>
    %13 = arith.subf %0, %12 : vector<32x256xf32>
    %cst_4 = arith.constant 9.99999997E-7 : f32
    %14 = vector.broadcast %cst_4 : f32 to vector<32x1xf32>
    %15 = arith.addf %11, %14 : vector<32x1xf32>
    %16 = math.rsqrt %15 : vector<32x1xf32>
    %17 = vector.broadcast %16 : vector<32x1xf32> to vector<32x256xf32>
    %18 = arith.mulf %13, %17 : vector<32x256xf32>
    %c0_5 = arith.constant 0 : index
    %c0_6 = arith.constant 0 : index
    %19 = vector.load %arg4[%c0_5, %c0_6] : memref<1x256xf32, #tpu.memory_space<vmem>>, vector<1x256xf32>
    %20 = vector.broadcast %19 : vector<1x256xf32> to vector<32x256xf32>
    %21 = arith.mulf %18, %20 : vector<32x256xf32>
    %c0_7 = arith.constant 0 : index
    %c0_8 = arith.constant 0 : index
    %22 = vector.load %arg5[%c0_7, %c0_8] : memref<1x256xf32, #tpu.memory_space<vmem>>, vector<1x256xf32>
    %23 = vector.broadcast %22 : vector<1x256xf32> to vector<32x256xf32>
    %24 = arith.addf %21, %23 : vector<32x256xf32>
    %25 = arith.truncf %24 : vector<32x256xf32> to vector<32x256xbf16>
    %c0_9 = arith.constant 0 : index
    %c0_10 = arith.constant 0 : index
    %26 = vector.load %arg2[%c0_9, %c0_10] : memref<256x768xbf16, #tpu.memory_space<vmem>>, vector<256x768xbf16>
    %cst_11 = arith.constant dense<0.000000e+00> : vector<32x768xf32>
    %27 = tpu.matmul %25, %26, %cst_11 {dimension_numbers = #tpu.dot_dimension_numbers<[1], [0], [0], [1], [0, 0, 1, 1], [], []>} : vector<32x256xbf16>, vector<256x768xbf16>, vector<32x768xf32> -> vector<32x768xf32>
    %c0_12 = arith.constant 0 : index
    %c0_13 = arith.constant 0 : index
    %28 = vector.load %arg3[%c0_12, %c0_13] : memref<1x768xf32, #tpu.memory_space<vmem>>, vector<1x768xf32>
    %29 = vector.broadcast %28 : vector<1x768xf32> to vector<32x768xf32>
    %30 = arith.addf %27, %29 : vector<32x768xf32>
    %31 = arith.truncf %30 : vector<32x768xf32> to vector<32x768xbf16>
    %c0_14 = arith.constant 0 : index
    %c0_15 = arith.constant 0 : index
    %32 = vector.load %arg6[%c0_14, %c0_15] : memref<32x768xbf16, #tpu.memory_space<vmem>>, vector<32x768xbf16>
    tpu.vector_store %arg6[%c0_14, %c0_15], %31 {strides = array<i32>} : memref<32x768xbf16, #tpu.memory_space<vmem>>, vector<32x768xbf16>,
    return
  }
  func.func @transform_0(%arg0: i32) -> (i32, i32) {
    %c0_i32 = arith.constant 0 : i32
    %c0_i32_0 = arith.constant 0 : i32
    return %arg0, %c0_i32 : i32, i32
  }
  func.func @transform_1(%arg0: i32) -> (i32, i32) {
    %c0_i32 = arith.constant 0 : i32
    %c0_i32_0 = arith.constant 0 : i32
    %c0_i32_1 = arith.constant 0 : i32
    return %c0_i32, %c0_i32_0 : i32, i32
  }
  func.func @transform_2(%arg0: i32) -> (i32, i32) {
    %c0_i32 = arith.constant 0 : i32
    %c0_i32_0 = arith.constant 0 : i32
    %c0_i32_1 = arith.constant 0 : i32
    return %c0_i32, %c0_i32_0 : i32, i32
  }
  func.func @transform_3(%arg0: i32) -> (i32, i32) {
    %c0_i32 = arith.constant 0 : i32
    %c0_i32_0 = arith.constant 0 : i32
    %c0_i32_1 = arith.constant 0 : i32
    return %c0_i32, %c0_i32_0 : i32, i32
  }
  func.func @transform_4(%arg0: i32) -> (i32, i32) {
    %c0_i32 = arith.constant 0 : i32
    %c0_i32_0 = arith.constant 0 : i32
    %c0_i32_1 = arith.constant 0 : i32
    return %c0_i32, %c0_i32_0 : i32, i32
  }
  func.func @transform_5(%arg0: i32) -> (i32, i32) {
    %c0_i32 = arith.constant 0 : i32
    %c0_i32_0 = arith.constant 0 : i32
    return %arg0, %c0_i32 : i32, i32
  }
}

module attributes {stable_mosaic.version = 11 : i64} {
  func.func @_linear_kernel(%arg0: i32, %arg1: memref<32x256xbf16, #tpu.memory_space<vmem>>, %arg2: memref<256x256xbf16, #tpu.memory_space<vmem>>, %arg3: memref<1x256xf32, #tpu.memory_space<vmem>>, %arg4: memref<32x256xf32, #tpu.memory_space<vmem>>, %arg5: memref<32x256xf32, #tpu.memory_space<vmem>>) attributes {dimension_semantics = [#tpu.dimension_semantics<parallel>], iteration_bounds = array<i64: 1>, scalar_prefetch = 0 : i64, scratch_operands = 0 : i64, tpu.core_type = #tpu.core_type<tc>, window_params = [{transform_indices = @transform_0, window_bounds = array<i64: 32, 256>}, {pipeline_mode = #tpu.pipeline_mode<synchronous>, transform_indices = @transform_1, window_bounds = array<i64: 256, 256>}, {pipeline_mode = #tpu.pipeline_mode<synchronous>, transform_indices = @transform_2, window_bounds = array<i64: 1, 256>}, {transform_indices = @transform_3, window_bounds = array<i64: 32, 256>}, {transform_indices = @transform_4, window_bounds = array<i64: 32, 256>}]} {
    %c0 = arith.constant 0 : index
    %c0_0 = arith.constant 0 : index
    %0 = vector.load %arg1[%c0, %c0_0] : memref<32x256xbf16, #tpu.memory_space<vmem>>, vector<32x256xbf16>
    %1 = arith.extf %0 : vector<32x256xbf16> to vector<32x256xf32>
    %2 = arith.truncf %1 : vector<32x256xf32> to vector<32x256xbf16>
    %c0_1 = arith.constant 0 : index
    %c0_2 = arith.constant 0 : index
    %3 = vector.load %arg2[%c0_1, %c0_2] : memref<256x256xbf16, #tpu.memory_space<vmem>>, vector<256x256xbf16>
    %cst = arith.constant dense<0.000000e+00> : vector<32x256xf32>
    %4 = tpu.matmul %2, %3, %cst {dimension_numbers = #tpu.dot_dimension_numbers<[1], [0], [0], [1], [0, 0, 1, 1], [], []>} : vector<32x256xbf16>, vector<256x256xbf16>, vector<32x256xf32> -> vector<32x256xf32>
    %c0_3 = arith.constant 0 : index
    %c0_4 = arith.constant 0 : index
    %5 = vector.load %arg3[%c0_3, %c0_4] : memref<1x256xf32, #tpu.memory_space<vmem>>, vector<1x256xf32>
    %6 = vector.broadcast %5 : vector<1x256xf32> to vector<32x256xf32>
    %7 = arith.addf %4, %6 : vector<32x256xf32>
    %c0_5 = arith.constant 0 : index
    %c0_6 = arith.constant 0 : index
    %8 = vector.load %arg4[%c0_5, %c0_6] : memref<32x256xf32, #tpu.memory_space<vmem>>, vector<32x256xf32>
    %9 = arith.addf %7, %8 : vector<32x256xf32>
    %c0_7 = arith.constant 0 : index
    %c0_8 = arith.constant 0 : index
    %10 = vector.load %arg5[%c0_7, %c0_8] : memref<32x256xf32, #tpu.memory_space<vmem>>, vector<32x256xf32>
    tpu.vector_store %arg5[%c0_7, %c0_8], %9 {strides = array<i32>} : memref<32x256xf32, #tpu.memory_space<vmem>>, vector<32x256xf32>,
    return
  }
  func.func @transform_0(%arg0: i32) -> (i32, i32) {
    %c0_i32 = arith.constant 0 : i32
    %c0_i32_0 = arith.constant 0 : i32
    return %arg0, %c0_i32 : i32, i32
  }
  func.func @transform_1(%arg0: i32) -> (i32, i32) {
    %c0_i32 = arith.constant 0 : i32
    %c0_i32_0 = arith.constant 0 : i32
    %c0_i32_1 = arith.constant 0 : i32
    return %c0_i32, %c0_i32_0 : i32, i32
  }
  func.func @transform_2(%arg0: i32) -> (i32, i32) {
    %c0_i32 = arith.constant 0 : i32
    %c0_i32_0 = arith.constant 0 : i32
    %c0_i32_1 = arith.constant 0 : i32
    return %c0_i32, %c0_i32_0 : i32, i32
  }
  func.func @transform_3(%arg0: i32) -> (i32, i32) {
    %c0_i32 = arith.constant 0 : i32
    %c0_i32_0 = arith.constant 0 : i32
    return %arg0, %c0_i32 : i32, i32
  }
  func.func @transform_4(%arg0: i32) -> (i32, i32) {
    %c0_i32 = arith.constant 0 : i32
    %c0_i32_0 = arith.constant 0 : i32
    return %arg0, %c0_i32 : i32, i32
  }
}

module attributes {stable_mosaic.version = 11 : i64} {
  func.func @_linear_kernel(%arg0: i32, %arg1: memref<32x256xf32, #tpu.memory_space<vmem>>, %arg2: memref<256x512xbf16, #tpu.memory_space<vmem>>, %arg3: memref<1x512xf32, #tpu.memory_space<vmem>>, %arg4: memref<1x256xf32, #tpu.memory_space<vmem>>, %arg5: memref<1x256xf32, #tpu.memory_space<vmem>>, %arg6: memref<32x512xbf16, #tpu.memory_space<vmem>>) attributes {dimension_semantics = [#tpu.dimension_semantics<parallel>], iteration_bounds = array<i64: 1>, scalar_prefetch = 0 : i64, scratch_operands = 0 : i64, tpu.core_type = #tpu.core_type<tc>, window_params = [{transform_indices = @transform_0, window_bounds = array<i64: 32, 256>}, {pipeline_mode = #tpu.pipeline_mode<synchronous>, transform_indices = @transform_1, window_bounds = array<i64: 256, 512>}, {pipeline_mode = #tpu.pipeline_mode<synchronous>, transform_indices = @transform_2, window_bounds = array<i64: 1, 512>}, {pipeline_mode = #tpu.pipeline_mode<synchronous>, transform_indices = @transform_3, window_bounds = array<i64: 1, 256>}, {pipeline_mode = #tpu.pipeline_mode<synchronous>, transform_indices = @transform_4, window_bounds = array<i64: 1, 256>}, {transform_indices = @transform_5, window_bounds = array<i64: 32, 512>}]} {
    %c0 = arith.constant 0 : index
    %c0_0 = arith.constant 0 : index
    %0 = vector.load %arg1[%c0, %c0_0] : memref<32x256xf32, #tpu.memory_space<vmem>>, vector<32x256xf32>
    %cst = arith.constant dense<0.000000e+00> : vector<32xf32>
    %1 = vector.multi_reduction <add>, %0, %cst [1] : vector<32x256xf32> to vector<32xf32>
    %2 = vector.shape_cast %1 : vector<32xf32> to vector<32x1xf32>
    %cst_1 = arith.constant 2.560000e+02 : f32
    %3 = vector.broadcast %cst_1 : f32 to vector<32x1xf32>
    %4 = arith.divf %2, %3 : vector<32x1xf32>
    %5 = vector.broadcast %4 : vector<32x1xf32> to vector<32x256xf32>
    %6 = arith.subf %0, %5 : vector<32x256xf32>
    %7 = arith.mulf %6, %6 : vector<32x256xf32>
    %cst_2 = arith.constant dense<0.000000e+00> : vector<32xf32>
    %8 = vector.multi_reduction <add>, %7, %cst_2 [1] : vector<32x256xf32> to vector<32xf32>
    %9 = vector.shape_cast %8 : vector<32xf32> to vector<32x1xf32>
    %cst_3 = arith.constant 2.560000e+02 : f32
    %10 = vector.broadcast %cst_3 : f32 to vector<32x1xf32>
    %11 = arith.divf %9, %10 : vector<32x1xf32>
    %12 = vector.broadcast %4 : vector<32x1xf32> to vector<32x256xf32>
    %13 = arith.subf %0, %12 : vector<32x256xf32>
    %cst_4 = arith.constant 9.99999997E-7 : f32
    %14 = vector.broadcast %cst_4 : f32 to vector<32x1xf32>
    %15 = arith.addf %11, %14 : vector<32x1xf32>
    %16 = math.rsqrt %15 : vector<32x1xf32>
    %17 = vector.broadcast %16 : vector<32x1xf32> to vector<32x256xf32>
    %18 = arith.mulf %13, %17 : vector<32x256xf32>
    %c0_5 = arith.constant 0 : index
    %c0_6 = arith.constant 0 : index
    %19 = vector.load %arg4[%c0_5, %c0_6] : memref<1x256xf32, #tpu.memory_space<vmem>>, vector<1x256xf32>
    %20 = vector.broadcast %19 : vector<1x256xf32> to vector<32x256xf32>
    %21 = arith.mulf %18, %20 : vector<32x256xf32>
    %c0_7 = arith.constant 0 : index
    %c0_8 = arith.constant 0 : index
    %22 = vector.load %arg5[%c0_7, %c0_8] : memref<1x256xf32, #tpu.memory_space<vmem>>, vector<1x256xf32>
    %23 = vector.broadcast %22 : vector<1x256xf32> to vector<32x256xf32>
    %24 = arith.addf %21, %23 : vector<32x256xf32>
    %25 = arith.truncf %24 : vector<32x256xf32> to vector<32x256xbf16>
    %c0_9 = arith.constant 0 : index
    %c0_10 = arith.constant 0 : index
    %26 = vector.load %arg2[%c0_9, %c0_10] : memref<256x512xbf16, #tpu.memory_space<vmem>>, vector<256x512xbf16>
    %cst_11 = arith.constant dense<0.000000e+00> : vector<32x512xf32>
    %27 = tpu.matmul %25, %26, %cst_11 {dimension_numbers = #tpu.dot_dimension_numbers<[1], [0], [0], [1], [0, 0, 1, 1], [], []>} : vector<32x256xbf16>, vector<256x512xbf16>, vector<32x512xf32> -> vector<32x512xf32>
    %c0_12 = arith.constant 0 : index
    %c0_13 = arith.constant 0 : index
    %28 = vector.load %arg3[%c0_12, %c0_13] : memref<1x512xf32, #tpu.memory_space<vmem>>, vector<1x512xf32>
    %29 = vector.broadcast %28 : vector<1x512xf32> to vector<32x512xf32>
    %30 = arith.addf %27, %29 : vector<32x512xf32>
    %31 = arith.mulf %30, %30 : vector<32x512xf32>
    %32 = arith.mulf %30, %31 : vector<32x512xf32>
    %cst_14 = arith.constant 4.471500e-02 : f32
    %33 = vector.broadcast %cst_14 : f32 to vector<32x512xf32>
    %34 = arith.mulf %33, %32 : vector<32x512xf32>
    %35 = arith.addf %30, %34 : vector<32x512xf32>
    %cst_15 = arith.constant 0.797884583 : f32
    %36 = vector.broadcast %cst_15 : f32 to vector<32x512xf32>
    %37 = arith.mulf %36, %35 : vector<32x512xf32>
    %38 = math.tanh %37 : vector<32x512xf32>
    %cst_16 = arith.constant 1.000000e+00 : f32
    %39 = vector.broadcast %cst_16 : f32 to vector<32x512xf32>
    %40 = arith.addf %39, %38 : vector<32x512xf32>
    %cst_17 = arith.constant 5.000000e-01 : f32
    %41 = vector.broadcast %cst_17 : f32 to vector<32x512xf32>
    %42 = arith.mulf %41, %40 : vector<32x512xf32>
    %43 = arith.mulf %30, %42 : vector<32x512xf32>
    %44 = arith.truncf %43 : vector<32x512xf32> to vector<32x512xbf16>
    %c0_18 = arith.constant 0 : index
    %c0_19 = arith.constant 0 : index
    %45 = vector.load %arg6[%c0_18, %c0_19] : memref<32x512xbf16, #tpu.memory_space<vmem>>, vector<32x512xbf16>
    tpu.vector_store %arg6[%c0_18, %c0_19], %44 {strides = array<i32>} : memref<32x512xbf16, #tpu.memory_space<vmem>>, vector<32x512xbf16>,
    return
  }
  func.func @transform_0(%arg0: i32) -> (i32, i32) {
    %c0_i32 = arith.constant 0 : i32
    %c0_i32_0 = arith.constant 0 : i32
    return %arg0, %c0_i32 : i32, i32
  }
  func.func @transform_1(%arg0: i32) -> (i32, i32) {
    %c0_i32 = arith.constant 0 : i32
    %c0_i32_0 = arith.constant 0 : i32
    %c0_i32_1 = arith.constant 0 : i32
    return %c0_i32, %c0_i32_0 : i32, i32
  }
  func.func @transform_2(%arg0: i32) -> (i32, i32) {
    %c0_i32 = arith.constant 0 : i32
    %c0_i32_0 = arith.constant 0 : i32
    %c0_i32_1 = arith.constant 0 : i32
    return %c0_i32, %c0_i32_0 : i32, i32
  }
  func.func @transform_3(%arg0: i32) -> (i32, i32) {
    %c0_i32 = arith.constant 0 : i32
    %c0_i32_0 = arith.constant 0 : i32
    %c0_i32_1 = arith.constant 0 : i32
    return %c0_i32, %c0_i32_0 : i32, i32
  }
  func.func @transform_4(%arg0: i32) -> (i32, i32) {
    %c0_i32 = arith.constant 0 : i32
    %c0_i32_0 = arith.constant 0 : i32
    %c0_i32_1 = arith.constant 0 : i32
    return %c0_i32, %c0_i32_0 : i32, i32
  }
  func.func @transform_5(%arg0: i32) -> (i32, i32) {
    %c0_i32 = arith.constant 0 : i32
    %c0_i32_0 = arith.constant 0 : i32
    return %arg0, %c0_i32 : i32, i32
  }
}

module attributes {stable_mosaic.version = 11 : i64} {
  func.func @_linear_kernel(%arg0: i32, %arg1: memref<32x512xbf16, #tpu.memory_space<vmem>>, %arg2: memref<512x256xbf16, #tpu.memory_space<vmem>>, %arg3: memref<1x256xf32, #tpu.memory_space<vmem>>, %arg4: memref<32x256xf32, #tpu.memory_space<vmem>>, %arg5: memref<32x256xf32, #tpu.memory_space<vmem>>) attributes {dimension_semantics = [#tpu.dimension_semantics<parallel>], iteration_bounds = array<i64: 1>, scalar_prefetch = 0 : i64, scratch_operands = 0 : i64, tpu.core_type = #tpu.core_type<tc>, window_params = [{transform_indices = @transform_0, window_bounds = array<i64: 32, 512>}, {pipeline_mode = #tpu.pipeline_mode<synchronous>, transform_indices = @transform_1, window_bounds = array<i64: 512, 256>}, {pipeline_mode = #tpu.pipeline_mode<synchronous>, transform_indices = @transform_2, window_bounds = array<i64: 1, 256>}, {transform_indices = @transform_3, window_bounds = array<i64: 32, 256>}, {transform_indices = @transform_4, window_bounds = array<i64: 32, 256>}]} {
    %c0 = arith.constant 0 : index
    %c0_0 = arith.constant 0 : index
    %0 = vector.load %arg1[%c0, %c0_0] : memref<32x512xbf16, #tpu.memory_space<vmem>>, vector<32x512xbf16>
    %1 = arith.extf %0 : vector<32x512xbf16> to vector<32x512xf32>
    %2 = arith.truncf %1 : vector<32x512xf32> to vector<32x512xbf16>
    %c0_1 = arith.constant 0 : index
    %c0_2 = arith.constant 0 : index
    %3 = vector.load %arg2[%c0_1, %c0_2] : memref<512x256xbf16, #tpu.memory_space<vmem>>, vector<512x256xbf16>
    %cst = arith.constant dense<0.000000e+00> : vector<32x256xf32>
    %4 = tpu.matmul %2, %3, %cst {dimension_numbers = #tpu.dot_dimension_numbers<[1], [0], [0], [1], [0, 0, 1, 1], [], []>} : vector<32x512xbf16>, vector<512x256xbf16>, vector<32x256xf32> -> vector<32x256xf32>
    %c0_3 = arith.constant 0 : index
    %c0_4 = arith.constant 0 : index
    %5 = vector.load %arg3[%c0_3, %c0_4] : memref<1x256xf32, #tpu.memory_space<vmem>>, vector<1x256xf32>
    %6 = vector.broadcast %5 : vector<1x256xf32> to vector<32x256xf32>
    %7 = arith.addf %4, %6 : vector<32x256xf32>
    %c0_5 = arith.constant 0 : index
    %c0_6 = arith.constant 0 : index
    %8 = vector.load %arg4[%c0_5, %c0_6] : memref<32x256xf32, #tpu.memory_space<vmem>>, vector<32x256xf32>
    %9 = arith.addf %7, %8 : vector<32x256xf32>
    %c0_7 = arith.constant 0 : index
    %c0_8 = arith.constant 0 : index
    %10 = vector.load %arg5[%c0_7, %c0_8] : memref<32x256xf32, #tpu.memory_space<vmem>>, vector<32x256xf32>
    tpu.vector_store %arg5[%c0_7, %c0_8], %9 {strides = array<i32>} : memref<32x256xf32, #tpu.memory_space<vmem>>, vector<32x256xf32>,
    return
  }
  func.func @transform_0(%arg0: i32) -> (i32, i32) {
    %c0_i32 = arith.constant 0 : i32
    %c0_i32_0 = arith.constant 0 : i32
    return %arg0, %c0_i32 : i32, i32
  }
  func.func @transform_1(%arg0: i32) -> (i32, i32) {
    %c0_i32 = arith.constant 0 : i32
    %c0_i32_0 = arith.constant 0 : i32
    %c0_i32_1 = arith.constant 0 : i32
    return %c0_i32, %c0_i32_0 : i32, i32
  }
  func.func @transform_2(%arg0: i32) -> (i32, i32) {
    %c0_i32 = arith.constant 0 : i32
    %c0_i32_0 = arith.constant 0 : i32
    %c0_i32_1 = arith.constant 0 : i32
    return %c0_i32, %c0_i32_0 : i32, i32
  }
  func.func @transform_3(%arg0: i32) -> (i32, i32) {
    %c0_i32 = arith.constant 0 : i32
    %c0_i32_0 = arith.constant 0 : i32
    return %arg0, %c0_i32 : i32, i32
  }
  func.func @transform_4(%arg0: i32) -> (i32, i32) {
    %c0_i32 = arith.constant 0 : i32
    %c0_i32_0 = arith.constant 0 : i32
    return %arg0, %c0_i32 : i32, i32
  }
}

module attributes {stable_mosaic.version = 11 : i64} {
  func.func @_head_kernel(%arg0: i32, %arg1: memref<2x256xf32, #tpu.memory_space<vmem>>, %arg2: memref<1x256xf32, #tpu.memory_space<vmem>>, %arg3: memref<1x256xf32, #tpu.memory_space<vmem>>, %arg4: memref<256x256xbf16, #tpu.memory_space<vmem>>, %arg5: memref<1x256xf32, #tpu.memory_space<vmem>>, %arg6: memref<1x256xf32, #tpu.memory_space<vmem>>, %arg7: memref<1x256xf32, #tpu.memory_space<vmem>>, %arg8: memref<1x256xf32, #tpu.memory_space<vmem>>, %arg9: memref<1x256xf32, #tpu.memory_space<vmem>>, %arg10: memref<256x64xbf16, #tpu.memory_space<vmem>>, %arg11: memref<1x64xf32, #tpu.memory_space<vmem>>, %arg12: memref<1x64xf32, #tpu.memory_space<vmem>>, %arg13: memref<1x64xf32, #tpu.memory_space<vmem>>, %arg14: memref<1x64xf32, #tpu.memory_space<vmem>>, %arg15: memref<1x64xf32, #tpu.memory_space<vmem>>, %arg16: memref<2x64xf32, #tpu.memory_space<vmem>>) attributes {dimension_semantics = [#tpu.dimension_semantics<arbitrary>], iteration_bounds = array<i64: 1>, scalar_prefetch = 0 : i64, scratch_operands = 0 : i64, tpu.core_type = #tpu.core_type<tc>, window_params = [{pipeline_mode = #tpu.pipeline_mode<synchronous>, transform_indices = @transform_0, window_bounds = array<i64: 2, 256>}, {pipeline_mode = #tpu.pipeline_mode<synchronous>, transform_indices = @transform_1, window_bounds = array<i64: 1, 256>}, {pipeline_mode = #tpu.pipeline_mode<synchronous>, transform_indices = @transform_2, window_bounds = array<i64: 1, 256>}, {pipeline_mode = #tpu.pipeline_mode<synchronous>, transform_indices = @transform_3, window_bounds = array<i64: 256, 256>}, {pipeline_mode = #tpu.pipeline_mode<synchronous>, transform_indices = @transform_4, window_bounds = array<i64: 1, 256>}, {pipeline_mode = #tpu.pipeline_mode<synchronous>, transform_indices = @transform_5, window_bounds = array<i64: 1, 256>}, {pipeline_mode = #tpu.pipeline_mode<synchronous>, transform_indices = @transform_6, window_bounds = array<i64: 1, 256>}, {pipeline_mode = #tpu.pipeline_mode<synchronous>, transform_indices = @transform_7, window_bounds = array<i64: 1, 256>}, {pipeline_mode = #tpu.pipeline_mode<synchronous>, transform_indices = @transform_8, window_bounds = array<i64: 1, 256>}, {pipeline_mode = #tpu.pipeline_mode<synchronous>, transform_indices = @transform_9, window_bounds = array<i64: 256, 64>}, {pipeline_mode = #tpu.pipeline_mode<synchronous>, transform_indices = @transform_10, window_bounds = array<i64: 1, 64>}, {pipeline_mode = #tpu.pipeline_mode<synchronous>, transform_indices = @transform_11, window_bounds = array<i64: 1, 64>}, {pipeline_mode = #tpu.pipeline_mode<synchronous>, transform_indices = @transform_12, window_bounds = array<i64: 1, 64>}, {pipeline_mode = #tpu.pipeline_mode<synchronous>, transform_indices = @transform_13, window_bounds = array<i64: 1, 64>}, {pipeline_mode = #tpu.pipeline_mode<synchronous>, transform_indices = @transform_14, window_bounds = array<i64: 1, 64>}, {pipeline_mode = #tpu.pipeline_mode<synchronous>, transform_indices = @transform_15, window_bounds = array<i64: 2, 64>}]} {
    %c0 = arith.constant 0 : index
    %c0_0 = arith.constant 0 : index
    %0 = vector.load %arg1[%c0, %c0_0] : memref<2x256xf32, #tpu.memory_space<vmem>>, vector<2x256xf32>
    %cst = arith.constant dense<0.000000e+00> : vector<2xf32>
    %1 = vector.multi_reduction <add>, %0, %cst [1] : vector<2x256xf32> to vector<2xf32>
    %2 = vector.shape_cast %1 : vector<2xf32> to vector<2x1xf32>
    %cst_1 = arith.constant 2.560000e+02 : f32
    %3 = vector.broadcast %cst_1 : f32 to vector<2x1xf32>
    %4 = arith.divf %2, %3 : vector<2x1xf32>
    %5 = vector.broadcast %4 : vector<2x1xf32> to vector<2x256xf32>
    %6 = arith.subf %0, %5 : vector<2x256xf32>
    %7 = arith.mulf %6, %6 : vector<2x256xf32>
    %cst_2 = arith.constant dense<0.000000e+00> : vector<2xf32>
    %8 = vector.multi_reduction <add>, %7, %cst_2 [1] : vector<2x256xf32> to vector<2xf32>
    %9 = vector.shape_cast %8 : vector<2xf32> to vector<2x1xf32>
    %cst_3 = arith.constant 2.560000e+02 : f32
    %10 = vector.broadcast %cst_3 : f32 to vector<2x1xf32>
    %11 = arith.divf %9, %10 : vector<2x1xf32>
    %12 = vector.broadcast %4 : vector<2x1xf32> to vector<2x256xf32>
    %13 = arith.subf %0, %12 : vector<2x256xf32>
    %cst_4 = arith.constant 9.99999997E-7 : f32
    %14 = vector.broadcast %cst_4 : f32 to vector<2x1xf32>
    %15 = arith.addf %11, %14 : vector<2x1xf32>
    %16 = math.rsqrt %15 : vector<2x1xf32>
    %17 = vector.broadcast %16 : vector<2x1xf32> to vector<2x256xf32>
    %18 = arith.mulf %13, %17 : vector<2x256xf32>
    %c0_5 = arith.constant 0 : index
    %c0_6 = arith.constant 0 : index
    %19 = vector.load %arg2[%c0_5, %c0_6] : memref<1x256xf32, #tpu.memory_space<vmem>>, vector<1x256xf32>
    %20 = vector.broadcast %19 : vector<1x256xf32> to vector<2x256xf32>
    %21 = arith.mulf %18, %20 : vector<2x256xf32>
    %c0_7 = arith.constant 0 : index
    %c0_8 = arith.constant 0 : index
    %22 = vector.load %arg3[%c0_7, %c0_8] : memref<1x256xf32, #tpu.memory_space<vmem>>, vector<1x256xf32>
    %23 = vector.broadcast %22 : vector<1x256xf32> to vector<2x256xf32>
    %24 = arith.addf %21, %23 : vector<2x256xf32>
    %25 = arith.truncf %24 : vector<2x256xf32> to vector<2x256xbf16>
    %c0_9 = arith.constant 0 : index
    %c0_10 = arith.constant 0 : index
    %26 = vector.load %arg4[%c0_9, %c0_10] : memref<256x256xbf16, #tpu.memory_space<vmem>>, vector<256x256xbf16>
    %cst_11 = arith.constant dense<0.000000e+00> : vector<2x256xf32>
    %27 = tpu.matmul %25, %26, %cst_11 {dimension_numbers = #tpu.dot_dimension_numbers<[1], [0], [0], [1], [0, 0, 1, 1], [], []>} : vector<2x256xbf16>, vector<256x256xbf16>, vector<2x256xf32> -> vector<2x256xf32>
    %c0_12 = arith.constant 0 : index
    %c0_13 = arith.constant 0 : index
    %28 = vector.load %arg5[%c0_12, %c0_13] : memref<1x256xf32, #tpu.memory_space<vmem>>, vector<1x256xf32>
    %29 = vector.broadcast %28 : vector<1x256xf32> to vector<2x256xf32>
    %30 = arith.addf %27, %29 : vector<2x256xf32>
    %c0_14 = arith.constant 0 : index
    %c0_15 = arith.constant 0 : index
    %31 = vector.load %arg8[%c0_14, %c0_15] : memref<1x256xf32, #tpu.memory_space<vmem>>, vector<1x256xf32>
    %32 = vector.broadcast %31 : vector<1x256xf32> to vector<2x256xf32>
    %33 = arith.subf %30, %32 : vector<2x256xf32>
    %c0_16 = arith.constant 0 : index
    %c0_17 = arith.constant 0 : index
    %34 = vector.load %arg9[%c0_16, %c0_17] : memref<1x256xf32, #tpu.memory_space<vmem>>, vector<1x256xf32>
    %cst_18 = arith.constant 9.99999974E-6 : f32
    %35 = vector.broadcast %cst_18 : f32 to vector<1x256xf32>
    %36 = arith.addf %34, %35 : vector<1x256xf32>
    %37 = math.rsqrt %36 : vector<1x256xf32>
    %38 = vector.broadcast %37 : vector<1x256xf32> to vector<2x256xf32>
    %39 = arith.mulf %33, %38 : vector<2x256xf32>
    %c0_19 = arith.constant 0 : index
    %c0_20 = arith.constant 0 : index
    %40 = vector.load %arg6[%c0_19, %c0_20] : memref<1x256xf32, #tpu.memory_space<vmem>>, vector<1x256xf32>
    %41 = vector.broadcast %40 : vector<1x256xf32> to vector<2x256xf32>
    %42 = arith.mulf %39, %41 : vector<2x256xf32>
    %c0_21 = arith.constant 0 : index
    %c0_22 = arith.constant 0 : index
    %43 = vector.load %arg7[%c0_21, %c0_22] : memref<1x256xf32, #tpu.memory_space<vmem>>, vector<1x256xf32>
    %44 = vector.broadcast %43 : vector<1x256xf32> to vector<2x256xf32>
    %45 = arith.addf %42, %44 : vector<2x256xf32>
    %cst_23 = arith.constant 0.000000e+00 : f32
    %46 = vector.broadcast %cst_23 : f32 to vector<2x256xf32>
    %47 = arith.cmpf ogt, %45, %46 : vector<2x256xf32>
    %cst_24 = arith.constant 0.00999999977 : f32
    %48 = vector.broadcast %cst_24 : f32 to vector<2x256xf32>
    %49 = arith.mulf %48, %45 : vector<2x256xf32>
    %50 = arith.select %47, %45, %49 : vector<2x256xi1>, vector<2x256xf32>
    %51 = arith.truncf %50 : vector<2x256xf32> to vector<2x256xbf16>
    %c0_25 = arith.constant 0 : index
    %c0_26 = arith.constant 0 : index
    %52 = vector.load %arg10[%c0_25, %c0_26] : memref<256x64xbf16, #tpu.memory_space<vmem>>, vector<256x64xbf16>
    %cst_27 = arith.constant dense<0.000000e+00> : vector<2x64xf32>
    %53 = tpu.matmul %51, %52, %cst_27 {dimension_numbers = #tpu.dot_dimension_numbers<[1], [0], [0], [1], [0, 0, 1, 1], [], []>} : vector<2x256xbf16>, vector<256x64xbf16>, vector<2x64xf32> -> vector<2x64xf32>
    %c0_28 = arith.constant 0 : index
    %c0_29 = arith.constant 0 : index
    %54 = vector.load %arg11[%c0_28, %c0_29] : memref<1x64xf32, #tpu.memory_space<vmem>>, vector<1x64xf32>
    %55 = vector.broadcast %54 : vector<1x64xf32> to vector<2x64xf32>
    %56 = arith.addf %53, %55 : vector<2x64xf32>
    %c0_30 = arith.constant 0 : index
    %c0_31 = arith.constant 0 : index
    %57 = vector.load %arg14[%c0_30, %c0_31] : memref<1x64xf32, #tpu.memory_space<vmem>>, vector<1x64xf32>
    %58 = vector.broadcast %57 : vector<1x64xf32> to vector<2x64xf32>
    %59 = arith.subf %56, %58 : vector<2x64xf32>
    %c0_32 = arith.constant 0 : index
    %c0_33 = arith.constant 0 : index
    %60 = vector.load %arg15[%c0_32, %c0_33] : memref<1x64xf32, #tpu.memory_space<vmem>>, vector<1x64xf32>
    %cst_34 = arith.constant 9.99999974E-6 : f32
    %61 = vector.broadcast %cst_34 : f32 to vector<1x64xf32>
    %62 = arith.addf %60, %61 : vector<1x64xf32>
    %63 = math.rsqrt %62 : vector<1x64xf32>
    %64 = vector.broadcast %63 : vector<1x64xf32> to vector<2x64xf32>
    %65 = arith.mulf %59, %64 : vector<2x64xf32>
    %c0_35 = arith.constant 0 : index
    %c0_36 = arith.constant 0 : index
    %66 = vector.load %arg12[%c0_35, %c0_36] : memref<1x64xf32, #tpu.memory_space<vmem>>, vector<1x64xf32>
    %67 = vector.broadcast %66 : vector<1x64xf32> to vector<2x64xf32>
    %68 = arith.mulf %65, %67 : vector<2x64xf32>
    %c0_37 = arith.constant 0 : index
    %c0_38 = arith.constant 0 : index
    %69 = vector.load %arg13[%c0_37, %c0_38] : memref<1x64xf32, #tpu.memory_space<vmem>>, vector<1x64xf32>
    %70 = vector.broadcast %69 : vector<1x64xf32> to vector<2x64xf32>
    %71 = arith.addf %68, %70 : vector<2x64xf32>
    %cst_39 = arith.constant 0.000000e+00 : f32
    %72 = vector.broadcast %cst_39 : f32 to vector<2x64xf32>
    %73 = arith.cmpf ogt, %71, %72 : vector<2x64xf32>
    %cst_40 = arith.constant 0.00999999977 : f32
    %74 = vector.broadcast %cst_40 : f32 to vector<2x64xf32>
    %75 = arith.mulf %74, %71 : vector<2x64xf32>
    %76 = arith.select %73, %71, %75 : vector<2x64xi1>, vector<2x64xf32>
    %c0_41 = arith.constant 0 : index
    %c0_42 = arith.constant 0 : index
    %77 = vector.load %arg16[%c0_41, %c0_42] : memref<2x64xf32, #tpu.memory_space<vmem>>, vector<2x64xf32>
    tpu.vector_store %arg16[%c0_41, %c0_42], %76 {strides = array<i32>} : memref<2x64xf32, #tpu.memory_space<vmem>>, vector<2x64xf32>,
    return
  }
  func.func @transform_0(%arg0: i32) -> (i32, i32) {
    %c0_i32 = arith.constant 0 : i32
    %c0_i32_0 = arith.constant 0 : i32
    %c0_i32_1 = arith.constant 0 : i32
    return %c0_i32, %c0_i32_0 : i32, i32
  }
  func.func @transform_1(%arg0: i32) -> (i32, i32) {
    %c0_i32 = arith.constant 0 : i32
    %c0_i32_0 = arith.constant 0 : i32
    %c0_i32_1 = arith.constant 0 : i32
    return %c0_i32, %c0_i32_0 : i32, i32
  }
  func.func @transform_2(%arg0: i32) -> (i32, i32) {
    %c0_i32 = arith.constant 0 : i32
    %c0_i32_0 = arith.constant 0 : i32
    %c0_i32_1 = arith.constant 0 : i32
    return %c0_i32, %c0_i32_0 : i32, i32
  }
  func.func @transform_3(%arg0: i32) -> (i32, i32) {
    %c0_i32 = arith.constant 0 : i32
    %c0_i32_0 = arith.constant 0 : i32
    %c0_i32_1 = arith.constant 0 : i32
    return %c0_i32, %c0_i32_0 : i32, i32
  }
  func.func @transform_4(%arg0: i32) -> (i32, i32) {
    %c0_i32 = arith.constant 0 : i32
    %c0_i32_0 = arith.constant 0 : i32
    %c0_i32_1 = arith.constant 0 : i32
    return %c0_i32, %c0_i32_0 : i32, i32
  }
  func.func @transform_5(%arg0: i32) -> (i32, i32) {
    %c0_i32 = arith.constant 0 : i32
    %c0_i32_0 = arith.constant 0 : i32
    %c0_i32_1 = arith.constant 0 : i32
    return %c0_i32, %c0_i32_0 : i32, i32
  }
  func.func @transform_6(%arg0: i32) -> (i32, i32) {
    %c0_i32 = arith.constant 0 : i32
    %c0_i32_0 = arith.constant 0 : i32
    %c0_i32_1 = arith.constant 0 : i32
    return %c0_i32, %c0_i32_0 : i32, i32
  }
  func.func @transform_7(%arg0: i32) -> (i32, i32) {
    %c0_i32 = arith.constant 0 : i32
    %c0_i32_0 = arith.constant 0 : i32
    %c0_i32_1 = arith.constant 0 : i32
    return %c0_i32, %c0_i32_0 : i32, i32
  }
  func.func @transform_8(%arg0: i32) -> (i32, i32) {
    %c0_i32 = arith.constant 0 : i32
    %c0_i32_0 = arith.constant 0 : i32
    %c0_i32_1 = arith.constant 0 : i32
    return %c0_i32, %c0_i32_0 : i32, i32
  }
  func.func @transform_9(%arg0: i32) -> (i32, i32) {
    %c0_i32 = arith.constant 0 : i32
    %c0_i32_0 = arith.constant 0 : i32
    %c0_i32_1 = arith.constant 0 : i32
    return %c0_i32, %c0_i32_0 : i32, i32
  }
  func.func @transform_10(%arg0: i32) -> (i32, i32) {
    %c0_i32 = arith.constant 0 : i32
    %c0_i32_0 = arith.constant 0 : i32
    %c0_i32_1 = arith.constant 0 : i32
    return %c0_i32, %c0_i32_0 : i32, i32
  }
  func.func @transform_11(%arg0: i32) -> (i32, i32) {
    %c0_i32 = arith.constant 0 : i32
    %c0_i32_0 = arith.constant 0 : i32
    %c0_i32_1 = arith.constant 0 : i32
    return %c0_i32, %c0_i32_0 : i32, i32
  }
  func.func @transform_12(%arg0: i32) -> (i32, i32) {
    %c0_i32 = arith.constant 0 : i32
    %c0_i32_0 = arith.constant 0 : i32
    %c0_i32_1 = arith.constant 0 : i32
    return %c0_i32, %c0_i32_0 : i32, i32
  }
  func.func @transform_13(%arg0: i32) -> (i32, i32) {
    %c0_i32 = arith.constant 0 : i32
    %c0_i32_0 = arith.constant 0 : i32
    %c0_i32_1 = arith.constant 0 : i32
    return %c0_i32, %c0_i32_0 : i32, i32
  }
  func.func @transform_14(%arg0: i32) -> (i32, i32) {
    %c0_i32 = arith.constant 0 : i32
    %c0_i32_0 = arith.constant 0 : i32
    %c0_i32_1 = arith.constant 0 : i32
    return %c0_i32, %c0_i32_0 : i32, i32
  }
  func.func @transform_15(%arg0: i32) -> (i32, i32) {
    %c0_i32 = arith.constant 0 : i32
    %c0_i32_0 = arith.constant 0 : i32
    %c0_i32_1 = arith.constant 0 : i32
    return %c0_i32, %c0_i32_0 : i32, i32
  }
}

</mosaic_0001>

<bundles_post_ra>
// kernel: vit_backbone_forward.14
= control target key start
LH: loop header
LB: loop body
LE: loop exit
PB: predicated region body
PF: predicated region fallthrough
CT: control target
= control target key end

     0   :  { %s803_s6 = smov 0   ;;  %s805_s7 = smov 0   ;;  %s951_s0 = inlined_call_operand.vmem [shape: bf16[2,16,768], index: 0, kind: input, shape index: {}]   ;;  %s952_s1 = inlined_call_operand.vmem [shape: bf16[2,16,256], index: 1, kind: output, shape index: {}]  }
   0x1   :  { %s807_s8 = smov 0   ;;  %s809_s9 = smov 0  }
   0x2   :  { %s811_s10 = smov 0   ;;  %s813_s11 = smov 0  }
   0x3   :  { %s815_s12 = smov 0  }
   0x4 LB: > { %s20_s13 = sadd.s32 1, %s780_s10  ;;  %s23_s14 = sadd.s32 1, %s784_s11  ;;  %s788_s12 = sphi %s815_s12, %s11_s12   ;;  %s784_s11 = sphi %s813_s11, %s959_s11   ;;  %s780_s10 = sphi %s811_s10, %s958_s10   ;;  %s776_s9 = sphi %s809_s9, %s957_s9   ;;  %s772_s8 = sphi %s807_s8, %s956_s8   ;;  %s768_s7 = sphi %s805_s7, %s955_s7   ;;  %s764_s6 = sphi %s803_s6, %s954_s6  }
   0x5   : > { %p21_p0 = scmp.ge.s32.totalorder %s20_s13, 2  ;;  %s583_s15 = sadd.s32 4294967295, %s788_s12  }
   0x6   : > { %p39_p1 = scmp.ne.s32.totalorder %s768_s7, %s764_s6  ;;  %p40_p2 = scmp.eq.s32.totalorder %s788_s12, 0 }
   0x7   : > { %s961_s13 = smov (%p21_p0, %s20_s13), 0  ;;  %s963_s14 = smov (!%p21_p0, %s23_s14), %s784_s11 }
   0x8   : > { %p25_p3 = scmp.ge.s32.totalorder %s963_s14, 2  ;;  %p71_p4 = scmp.eq.s32.totalorder %s583_s15, 3 }
   0x9   : > { %s28_s16 = ssub.s32 %s780_s10, %s961_s13  ;;  %p41_p5 = por %p40_p2, %p39_p1 }
   0xa   : > { %s965_s14 = smov (%p25_p3, %s963_s14), 0  ;;  %p851_p6 = por %p71_p4, %p39_p1 }
   0xb   : > { %s27_s18 = ssub.s32 %s784_s11, %s965_s14  ;;  %s32_s20 = sadd.s32 1, %s768_s7 }
   0xc   : > { %s29_s19 = sor.u32 %s28_s16, %s27_s18  ;;  %p586_p8 = scmp.ge.s32.totalorder %s788_s12, 4 }
   0xd   : > { %p30_p7 = scmp.eq.s32.totalorder %s29_s19, 0 }
   0xe   : > { %93 = sbr.rel (%p586_p8) target bundleno = 32 (0x20), region = 16 }
   0xf   : > { %s859_s21 = scalar_select %p30_p7, %s768_s7, %s32_s20  }
  0x15   : > { %96 = sbr.rel (!%p41_p5) target bundleno = 32 (0x20), region = 20  ;;  %s98_s22 = sand.u32 (%p41_p5), 1, %s768_s7  }
  0x16   : > { %s101_s23 = smul.u32 (%p41_p5), 3, %s780_s10 }
  0x17   : > { %s647_s24 = smul.u32 (%p41_p5), 24, %s98_s22 }
  0x18   : > { %s648_s25 = smul.u32 (%p41_p5), 12, %s784_s11 }
  0x19   : > { %s100_s2 = scalar_lea.vmem (%p41_p5), [#allocation2], %s647_s24 }
  0x1a   : > { %s103_s26 = sadd.s32 (%p41_p5), %s648_s25, %s101_s23 }
  0x1b   : > { %s587_s27 = sshll.u32 (%p41_p5), %s103_s26, 2 }
  0x1c   : > { %s105_s30 = scalar_lea.vmem %s951_s0, %s587_s27 }
  0x1d   : > { %v120_v0 = vld [vmem:[%s105_s30] sm:$0xff]  ;;  %v122_v1 = vld [vmem:[%s105_s30 + $0x18] sm:$0xff]  ;;  %v588_v2 = vld [vmem:[%s105_s30 + $0x8] sm:$0xf] }
  0x1e   : > { %121 = vst [vmem:[%s100_s2] sm:$0xff] %v120_v0  ;;  %123 = vst [vmem:[%s100_s2 + $0xc] sm:$0xff] %v122_v1  ;;  %v590_v3 = vld [vmem:[%s105_s30 + $0x20] sm:$0xf] }
  0x1f   : > { %589 = vst [vmem:[%s100_s2 + $0x8] sm:$0xf] %v588_v2  ;;  %591 = vst [vmem:[%s100_s2 + $0x14] sm:$0xf] %v590_v3 }
  0x20 PF: > { %p592_p9 = scmp.ge.s32.totalorder %s788_s12, 1  ;;  %p139_p10 = scmp.lt.s32.totalorder %s788_s12, 5 }
  0x22   : > { %p140_p11 = pnand %p592_p9, %p139_p10 }
  0x23   : > { %s146_s3 = sand.u32 (!%p140_p11), 1, %s764_s6   ;;  %v790_v4 = vmov (!%p140_p11), 0.0   ;;  %vm791_vm0 = vmmov (!%p140_p11), 0   ;;  %vm178_vm1 = vcmask (!%p140_p11), 523264   ;;  %v228_v8 = vlaneseq (!%p140_p11)  ;;  %s792_s15 = smov (!%p140_p11), 64  }
  0x24   : > { %143 = sbr.rel (%p140_p11) target bundleno = 1470 (0x5be), region = 46  ;;  %623 = vmatprep.subr.bf16.mxu0 (!%p140_p11), %v790_v4  ;;  %625 = vmatprep.mubr.msk.bf16.mxu0 (!%p140_p11), %vm791_vm0, %v790_v4  ;;  %vm233_vm3 = vcmask (!%p140_p11), 130048   ;;  %s593_s16 = sshll.u32 (!%p140_p11), %s146_s3, 3 }
  0x25   : > { %s649_s4 = smul.u32 (!%p140_p11), 24, %s146_s3  ;;  %629 = vmatprep.subr.bf16.mxu1 (!%p140_p11), %v790_v4  ;;  %631 = vmatprep.mubr.msk.bf16.mxu1 (!%p140_p11), %vm791_vm0, %v790_v4  ;;  %v888_v9 = vand.u32 (!%p140_p11), 127, %v228_v8  ;;  %s163_s18 = scalar_lea.vmem (!%p140_p11), [#allocation3], %s593_s16 }
  0x27   : > { %s879_s5 = scalar_lea.vmem (!%p140_p11), [#allocation2], %s649_s4  ;;  %vm230_vm2 = vcmp.lt.s32.totalorder (!%p140_p11), %v888_v9, 5 }
  0x28   : > { %v716_v5 = vld [vmem:[%s879_s5 + $0x4] ss:$12 sps:$4 sm:$0xff] (!%p140_p11)   ;;  %v714_v7 = vld [vmem:[%s879_s5] ss:$12 sps:$4 sm:$0xff] (!%p140_p11)   ;;  %v717_v30 = vld [vmem:[%s879_s5 + $0x8] ss:$12 sps:$4 sm:$0xff] (!%p140_p11)  }
  0x29   : > { %v183_v6 = vsel (!%p140_p11), %vm178_vm1, %v716_v5, 0  ;;  %630 = vmatpush3.bf16.msra.mxu1 (!%p140_p11), %v717_v30 }
  0x2a   : > { %624 = vmatpush3.bf16.xpose.msra.mxu0 (!%p140_p11), %v183_v6  ;;  %635 = vmatprep.subr.bf16.mxu1 (!%p140_p11), %v790_v4 }
  0x2b   : > { %641 = vmatprep.subr.bf16.mxu0 %v790_v4  ;;  %s604_s19 = sshll.u32 (%p851_p6), %s776_s9, 2 }
  0x2c   : > { %s460_s20 = sadd.s32 (%p851_p6), %s772_s8, %s604_s19 }
  0x2d   : > { %s605_s6 = sshll.u32 (%p851_p6), %s460_s20, 2 }
  0x2e   : > { %s462_s24 = scalar_lea.vmem (%p851_p6), %s952_s1, %s605_s6 }
  0x31   : > { %626 = vmatmul.mubr.msk.bf16.vlgmr.msra.gmra.mrb[0].mxu0 %vm178_vm1, %v714_v7 }
  0x32   : > { %643 = vmatprep.mubr.msk.bf16.mxu0 %vm791_vm0, %v790_v4 }
 0x104   : > { %v219_v10 = vpop.f32.mrb[0].mxu0 }
 0x105   : > { %v226_v11 = vmul.f32 0.125, %v219_v10  ;;  %v627_v12 = vpop.f32.mrb[1].mxu0 }
 0x106   : > { %v222_v13 = vpop.f32.mrb[2].mxu0 }
 0x107   : > { %v227_v14 = vmul.f32 0.125, %v222_v13  ;;  %v628_v15 = vpop.f32.mrb[3].mxu0  ;;  %v231_v16 = vsel %vm230_vm2, %v226_v11, -1e+30 }
 0x108   : > { %v234_v17 = vsel %vm233_vm3, %v231_v16, -inf }
 0x109   : > { %235 = vmax.xlane.f32.xlu0 %v234_v17  ;;  %v232_v18 = vsel %vm230_vm2, %v227_v14, -1e+30 }
 0x10a   : > { %v237_v19 = vsel %vm233_vm3, %v232_v18, -inf }
 0x10d   : > { %238 = vmax.xlane.f32.xlu0 %v237_v19 }
 0x123   : > { %309 = vrot.lane.b32.xlu0 %v716_v5, %s792_s15 }
 0x196   : > { %v236_v20 = vpop.xlane.xlu0 %235 }
 0x197   : > { %v240_v21 = vsub.f32 %v231_v16, %v236_v20 }
 0x199   : > { %v242_v22 = vmul.f32 1.442695, %v240_v21 }
 0x19a   : > { %v239_v23 = vpop.xlane.xlu0 %238 }
 0x19b   : > { %718 = vpow2.f32 %v242_v22  ;;  %v241_v24 = vsub.f32 %v232_v18, %v239_v23 }
 0x19d   : > { %v244_v25 = vmul.f32 1.442695, %v241_v24 }
 0x19e   : > { %v310_v35 = vpop.permute.xlu0 %309 }
 0x19f   : > { %720 = vpow2.f32 %v244_v25  ;;  %v315_v38 = vsel %vm178_vm1, %v310_v35, 0 }
 0x1a5   : > { %v719_v26 = vpop.eup %718 }
 0x1a6   : > { %v246_v27 = vsel %vm233_vm3, %v719_v26, 0.0 }
 0x1a7   : > { %247 = vadd.xlane.f32.xlu1 %v246_v27 }
 0x1a9   : > { %v721_v28 = vpop.eup %720 }
 0x1aa   : > { %v249_v29 = vsel %vm233_vm3, %v721_v28, 0.0 }
 0x1ab   : > { %250 = vadd.xlane.f32.xlu1 %v249_v29 }
 0x1bc   : > { %307 = vrot.lane.b32.xlu1 %v714_v7, %s792_s15 }
 0x234   : > { %v248_v31 = vpop.xlane.xlu1 %247 }
 0x235   : > { %722 = vrcp.f32 %v248_v31 }
 0x238   : > { %v251_v32 = vpop.xlane.xlu1 %250 }
 0x239   : > { %724 = vrcp.f32 %v251_v32 }
 0x23c   : > { %v308_v40 = vpop.permute.xlu1 %307 }
 0x23f   : > { %v723_v33 = vpop.eup %722 }
 0x240   : > { %v254_v36 = vmul.f32 %v723_v33, %v719_v26 }
 0x243   : > { %v725_v34 = vpop.eup %724 }
 0x244   : > { %v255_v37 = vmul.f32 %v725_v34, %v721_v28 }
 0x246   : > { %v256_v39 = vpack.c.bf16 %v255_v37, %v254_v36 }
 0x248   : > { %632 = vmatmul.mubr.msk.bf16.vlgmr.msra.gmra.mrb[0].mxu1 %vm233_vm3, %v256_v39 }
 0x249   : > { %636 = vmatpush3.bf16.xpose.msra.mxu1 %v315_v38  ;;  %637 = vmatprep.mubr.msk.bf16.mxu1 %vm791_vm0, %v790_v4 }
 0x250   : > { %638 = vmatmul.mubr.msk.bf16.vlgmr.msra.gmra.mrb[4].mxu1 %vm178_vm1, %v308_v40 }
 0x31b   : > { %v300_v41 = vpop.f32.mrb[0].mxu1 }
 0x31c   : > { %v633_v42 = vpop.f32.mrb[1].mxu1 }
 0x31d   : > { %v303_v43 = vpop.f32.mrb[2].mxu1 }
 0x31e   : > { %v634_v44 = vpop.f32.mrb[3].mxu1 }
 0x323   : > { %v351_v45 = vpop.f32.mrb[4].mxu1 }
 0x324   : > { %v358_v46 = vmul.f32 0.125, %v351_v45  ;;  %v639_v47 = vpop.f32.mrb[5].mxu1 }
 0x325   : > { %v354_v48 = vpop.f32.mrb[6].mxu1 }
 0x326   : > { %v359_v49 = vmul.f32 0.125, %v354_v48  ;;  %v640_v50 = vpop.f32.mrb[7].mxu1  ;;  %v360_v51 = vsel %vm230_vm2, %v358_v46, -1e+30 }
 0x327   : > { %v362_v52 = vsel %vm233_vm3, %v360_v51, -inf }
 0x328   : > { %363 = vmax.xlane.f32.xlu1 %v362_v52  ;;  %v361_v53 = vsel %vm230_vm2, %v359_v49, -1e+30 }
 0x329   : > { %v365_v54 = vsel %vm233_vm3, %v361_v53, -inf }
 0x32a   : > { %366 = vmax.xlane.f32.xlu0 %v365_v54 }
 0x3b5   : > { %v364_v55 = vpop.xlane.xlu1 %363 }
 0x3b6   : > { %v368_v56 = vsub.f32 %v360_v51, %v364_v55 }
 0x3b7   : > { %v367_v57 = vpop.xlane.xlu0 %366 }
 0x3b8   : > { %v370_v58 = vmul.f32 1.442695, %v368_v56  ;;  %v369_v59 = vsub.f32 %v361_v53, %v367_v57 }
 0x3ba   : > { %726 = vpow2.f32 %v370_v58  ;;  %v372_v60 = vmul.f32 1.442695, %v369_v59 }
 0x3bc   : > { %728 = vpow2.f32 %v372_v60 }
 0x3c4   : > { %v727_v61 = vpop.eup %726 }
 0x3c5   : > { %v374_v62 = vsel %vm233_vm3, %v727_v61, 0.0 }
 0x3c6   : > { %v729_v63 = vpop.eup %728  ;;  %375 = vadd.xlane.f32.xlu0 %v374_v62 }
 0x3c7   : > { %v377_v0 = vsel %vm233_vm3, %v729_v63, 0.0 }
 0x3c8   : > { %378 = vadd.xlane.f32.xlu1 %v377_v0 }
 0x3dc   : > { %385 = vrot.lane.b32.xlu0 %v717_v30, %s792_s15 }
 0x453   : > { %v376_v1 = vpop.xlane.xlu0 %375 }
 0x454   : > { %730 = vrcp.f32 %v376_v1 }
 0x455   : > { %v379_v2 = vpop.xlane.xlu1 %378 }
 0x456   : > { %732 = vrcp.f32 %v379_v2 }
 0x457   : > { %v386_v3 = vpop.permute.xlu0 %385 }
 0x458   : > { %642 = vmatpush3.bf16.msra.mxu0 %v386_v3 }
 0x45e   : > { %v731_v4 = vpop.eup %730 }
 0x45f   : > { %v382_v6 = vmul.f32 %v731_v4, %v727_v61 }
 0x460   : > { %v733_v5 = vpop.eup %732 }
 0x461   : > { %v383_v7 = vmul.f32 %v733_v5, %v729_v63 }
 0x463   : > { %v384_v8 = vpack.c.bf16 %v383_v7, %v382_v6 }
 0x465   : > { %644 = vmatmul.mubr.msk.bf16.vlgmr.msra.gmra.mrb[4].mxu0 %vm233_vm3, %v384_v8 }
 0x538   : > { %v425_v9 = vpop.f32.mrb[4].mxu0 }
 0x539   : > { %v645_v10 = vpop.f32.mrb[5].mxu0 }
 0x53a   : > { %v428_v11 = vpop.f32.mrb[6].mxu0 }
 0x53b   : > { %v709_v12 = vpack.i.bf16 %v428_v11, %v425_v9  ;;  %v646_v13 = vpop.f32.mrb[7].mxu0 }
 0x53d   : > { %710 = vrot.lane.b32.xlu1 %v709_v12, %s792_s15 }
 0x5af   : > { %v711_v14 = vpop.permute.xlu1 %710  ;;  %458 = sbr.rel (!%p851_p6) target bundleno = 1470 (0x5be), region = 54 }
 0x5b0   : > { %v713_v15 = vunpack.i.h.bf16 %v711_v14  ;;  %v712_v16 = vunpack.i.l.bf16 %v711_v14 }
 0x5b2   : > { %v441_v17 = vsel %vm178_vm1, %v303_v43, %v713_v15  ;;  %v440_v18 = vsel %vm178_vm1, %v300_v41, %v712_v16 }
 0x5b3   : > { %v613_v19 = vpack.c.bf16 %v441_v17, %v440_v18 }
 0x5b5   : > { %614 = vst [vmem:[%s163_s18] sm:$0xff] %v613_v19  }
 0x5bc   : > { %v478_v20 = vld [vmem:[%s163_s18] sm:$0xf]  ;;  %v480_v21 = vld [vmem:[%s163_s18 + $0x4] sm:$0xf] }
 0x5bd   : > { %479 = vst [vmem:[%s462_s24] sm:$0xf] %v478_v20  ;;  %481 = vst [vmem:[%s462_s24 + $0x8] sm:$0xf] %v480_v21 }
 0x5be PF: > { %s11_s12 = sadd.s32 1, %s788_s12   ;;  %s954_s6 = smov %s768_s7 }
 0x5bf   : > { %p8_p12 = scmp.ge.s32.totalorder %s11_s12, 6   ;;  %s955_s7 = smov %s859_s21 }
 0x5c0   : > { %s956_s8 = smov %s780_s10  ;;  %s957_s9 = smov %s784_s11 }
 0x5c1   : > { %s958_s10 = smov %s961_s13  ;;  %s959_s11 = smov %s965_s14 }
 0x5c2   :  { %10 = sbr.rel (!%p8_p12) target bundleno = 4 (0x4), region = 132 }

// kernel: vit_backbone_forward.15
= control target key start
LH: loop header
LB: loop body
LE: loop exit
PB: predicated region body
PF: predicated region fallthrough
CT: control target
= control target key end

     0   :  { %v55_v36 = vlaneseq  ;;  %s632_s1 = inlined_call_operand.vmem [shape: bf16[256,256], index: 1, kind: input, shape index: {}]   ;;  %s633_s0 = inlined_call_operand.vmem [shape: bf16[32,256], index: 0, kind: input, shape index: {}]   ;;  %s634_s2 = inlined_call_operand.vmem [shape: f32[1,256], index: 2, kind: input, shape index: {}]   ;;  %s635_s3 = inlined_call_operand.vmem [shape: f32[32,256], index: 3, kind: input, shape index: {}]   ;;  %s636_s4 = inlined_call_operand.vmem [shape: f32[32,256], index: 4, kind: output, shape index: {}]  }
   0x1   :  { %v394_v0 = vld [vmem:[%s632_s1 + $0x4] ss:$8 sps:$4 sm:$0xff]   ;;  %v396_v1 = vld [vmem:[%s632_s1] ss:$8 sps:$4 sm:$0xff]   ;;  %v397_v2 = vld [vmem:[%s632_s1 + $0x14] ss:$8 sps:$4 sm:$0xff]  }
   0x2   :  { %245 = vmatprep.subr.bf16.mxu0 %v394_v0  ;;  %362 = vmatprep.subr.bf16.mxu1 %v394_v0  ;;  %v399_v3 = vld [vmem:[%s632_s1 + $0x10] ss:$8 sps:$4 sm:$0xff]   ;;  %v400_v4 = vld [vmem:[%s632_s1 + $0x24] ss:$8 sps:$4 sm:$0xff]   ;;  %v402_v5 = vld [vmem:[%s632_s1 + $0x20] ss:$8 sps:$4 sm:$0xff]  }
   0x3   :  { %246 = vmatpush1.bf16.msra.mxu0 %v396_v1  ;;  %378 = vmatpush1.bf16.msra.mxu1 %v396_v1  ;;  %v403_v6 = vld [vmem:[%s632_s1 + $0x34] ss:$8 sps:$4 sm:$0xff]   ;;  %v405_v7 = vld [vmem:[%s632_s1 + $0x30] ss:$8 sps:$4 sm:$0xff]   ;;  %v406_v8 = vld [vmem:[%s632_s1 + $0x44] ss:$8 sps:$4 sm:$0xff]  }
   0x4   :  { %247 = vmatprep.subr.bf16.mxu0 %v397_v2  ;;  %363 = vmatprep.subr.bf16.mxu1 %v397_v2  ;;  %v408_v9 = vld [vmem:[%s632_s1 + $0x40] ss:$8 sps:$4 sm:$0xff]   ;;  %v409_v10 = vld [vmem:[%s632_s1 + $0x54] ss:$8 sps:$4 sm:$0xff]   ;;  %v411_v11 = vld [vmem:[%s632_s1 + $0x50] ss:$8 sps:$4 sm:$0xff]  }
   0x5   :  { %v412_v12 = vld [vmem:[%s632_s1 + $0x64] ss:$8 sps:$4 sm:$0xff]   ;;  %v414_v14 = vld [vmem:[%s632_s1 + $0x60] ss:$8 sps:$4 sm:$0xff]   ;;  %v447_v15 = vld [vmem:[%s633_s0 + $0x14] ss:$8 sps:$4 sm:$0xff]  }
   0x6   :  { %v444_v13 = vld [vmem:[%s633_s0 + $0x4] ss:$8 sps:$4 sm:$0xff]   ;;  %v415_v16 = vld [vmem:[%s632_s1 + $0x74] ss:$8 sps:$4 sm:$0xff]   ;;  %287 = vmatprep.mubr.bf16.mxu1 %v447_v15  ;;  %v417_v17 = vld [vmem:[%s632_s1 + $0x70] ss:$8 sps:$4 sm:$0xff]  }
   0x7   :  { %248 = vmatpush1.bf16.msra.mxu0 %v399_v3  ;;  %379 = vmatpush1.bf16.msra.mxu1 %v399_v3  ;;  %v418_v18 = vld [vmem:[%s632_s1 + $0x84] ss:$8 sps:$4 sm:$0xff]   ;;  %v420_v19 = vld [vmem:[%s632_s1 + $0x80] ss:$8 sps:$4 sm:$0xff]   ;;  %v421_v20 = vld [vmem:[%s632_s1 + $0x94] ss:$8 sps:$4 sm:$0xff]  }
   0x8   :  { %249 = vmatprep.subr.bf16.mxu0 %v400_v4  ;;  %364 = vmatprep.subr.bf16.mxu1 %v400_v4  ;;  %v423_v21 = vld [vmem:[%s632_s1 + $0x90] ss:$8 sps:$4 sm:$0xff]   ;;  %v424_v22 = vld [vmem:[%s632_s1 + $0xa4] ss:$8 sps:$4 sm:$0xff]   ;;  %v426_v23 = vld [vmem:[%s632_s1 + $0xa0] ss:$8 sps:$4 sm:$0xff]  }
   0x9   :  { %277 = vmatprep.mubr.bf16.mxu0 %v444_v13  ;;  %v427_v24 = vld [vmem:[%s632_s1 + $0xb4] ss:$8 sps:$4 sm:$0xff]   ;;  %v429_v25 = vld [vmem:[%s632_s1 + $0xb0] ss:$8 sps:$4 sm:$0xff]   ;;  %v430_v26 = vld [vmem:[%s632_s1 + $0xc4] ss:$8 sps:$4 sm:$0xff]  }
   0xa   :  { %v432_v27 = vld [vmem:[%s632_s1 + $0xc0] ss:$8 sps:$4 sm:$0xff]   ;;  %v433_v28 = vld [vmem:[%s632_s1 + $0xd4] ss:$8 sps:$4 sm:$0xff]   ;;  %v435_v29 = vld [vmem:[%s632_s1 + $0xd0] ss:$8 sps:$4 sm:$0xff]  }
   0xb   :  { %250 = vmatpush1.bf16.msra.mxu0 %v402_v5  ;;  %380 = vmatpush1.bf16.msra.mxu1 %v402_v5  ;;  %v436_v30 = vld [vmem:[%s632_s1 + $0xe4] ss:$8 sps:$4 sm:$0xff]   ;;  %v438_v31 = vld [vmem:[%s632_s1 + $0xe0] ss:$8 sps:$4 sm:$0xff]   ;;  %v439_v32 = vld [vmem:[%s632_s1 + $0xf4] ss:$8 sps:$4 sm:$0xff]  }
   0xc   :  { %251 = vmatprep.subr.bf16.mxu0 %v403_v6  ;;  %365 = vmatprep.subr.bf16.mxu1 %v403_v6  ;;  %v441_v33 = vld [vmem:[%s632_s1 + $0xf0] ss:$8 sps:$4 sm:$0xff]   ;;  %v442_v34 = vld [vmem:[%s633_s0] ss:$8 sps:$4 sm:$0xff]   ;;  %v56_v37 = vshrl.u32 %v55_v36, 7 }
   0xd   :  { %v445_v35 = vld [vmem:[%s633_s0 + $0x10] ss:$8 sps:$4 sm:$0xff]   ;;  %v53_v39 = vld [vmem:[%s634_s2] sm:$0x3]  ;;  %v299_v50 = vld [vmem:[%s635_s3 + $0x8] sm:$0xff] }
   0xe   :  { %v57_v38 = vsub.s32 0, %v56_v37  ;;  %v61_v40 = vsub.s32 1, %v56_v37  ;;  %v298_v44 = vld [vmem:[%s635_s3] sm:$0xff]  ;;  %v303_v52 = vld [vmem:[%s635_s3 + $0x28] sm:$0xff]  ;;  %v300_v56 = vld [vmem:[%s635_s3 + $0x10] sm:$0xff] }
   0xf   :  { %252 = vmatpush1.bf16.msra.mxu0 %v405_v7  ;;  %381 = vmatpush1.bf16.msra.mxu1 %v405_v7  ;;  %v302_v46 = vld [vmem:[%s635_s3 + $0x20] sm:$0xff]  ;;  %v304_v58 = vld [vmem:[%s635_s3 + $0x30] sm:$0xff]  ;;  %v301_v0 = vld [vmem:[%s635_s3 + $0x18] sm:$0xff] }
  0x10   :  { %253 = vmatprep.subr.bf16.mxu0 %v406_v8  ;;  %366 = vmatprep.subr.bf16.mxu1 %v406_v8  ;;  %v58_v41 = vrot.slane %v53_v39, %v57_v38  ;;  %v62_v42 = vrot.slane %v53_v39, %v61_v40  ;;  %v305_v2 = vld [vmem:[%s635_s3 + $0x38] sm:$0xff] }
  0x13   :  { %254 = vmatpush1.bf16.msra.mxu0 %v408_v9  ;;  %382 = vmatpush1.bf16.msra.mxu1 %v408_v9 }
  0x14   :  { %255 = vmatprep.subr.bf16.mxu0 %v409_v10  ;;  %367 = vmatprep.subr.bf16.mxu1 %v409_v10 }
  0x17   :  { %256 = vmatpush1.bf16.msra.mxu0 %v411_v11  ;;  %383 = vmatpush1.bf16.msra.mxu1 %v411_v11 }
  0x18   :  { %257 = vmatprep.subr.bf16.mxu0 %v412_v12  ;;  %368 = vmatprep.subr.bf16.mxu1 %v412_v12 }
  0x1b   :  { %258 = vmatpush1.bf16.msra.mxu0 %v414_v14  ;;  %384 = vmatpush1.bf16.msra.mxu1 %v414_v14 }
  0x1c   :  { %259 = vmatprep.subr.bf16.mxu0 %v415_v16  ;;  %369 = vmatprep.subr.bf16.mxu1 %v415_v16 }
  0x1f   :  { %260 = vmatpush1.bf16.msra.mxu0 %v417_v17  ;;  %385 = vmatpush1.bf16.msra.mxu1 %v417_v17 }
  0x20   :  { %261 = vmatprep.subr.bf16.mxu0 %v418_v18  ;;  %370 = vmatprep.subr.bf16.mxu1 %v418_v18 }
  0x23   :  { %262 = vmatpush1.bf16.msra.mxu0 %v420_v19  ;;  %386 = vmatpush1.bf16.msra.mxu1 %v420_v19 }
  0x24   :  { %263 = vmatprep.subr.bf16.mxu0 %v421_v20  ;;  %371 = vmatprep.subr.bf16.mxu1 %v421_v20 }
  0x27   :  { %264 = vmatpush1.bf16.msra.mxu0 %v423_v21  ;;  %387 = vmatpush1.bf16.msra.mxu1 %v423_v21 }
  0x28   :  { %265 = vmatprep.subr.bf16.mxu0 %v424_v22  ;;  %372 = vmatprep.subr.bf16.mxu1 %v424_v22 }
  0x2b   :  { %266 = vmatpush1.bf16.msra.mxu0 %v426_v23  ;;  %388 = vmatpush1.bf16.msra.mxu1 %v426_v23 }
  0x2c   :  { %267 = vmatprep.subr.bf16.mxu0 %v427_v24  ;;  %373 = vmatprep.subr.bf16.mxu1 %v427_v24 }
  0x2f   :  { %268 = vmatpush1.bf16.msra.mxu0 %v429_v25  ;;  %389 = vmatpush1.bf16.msra.mxu1 %v429_v25 }
  0x30   :  { %269 = vmatprep.subr.bf16.mxu0 %v430_v26  ;;  %374 = vmatprep.subr.bf16.mxu1 %v430_v26 }
  0x33   :  { %270 = vmatpush1.bf16.msra.mxu0 %v432_v27  ;;  %390 = vmatpush1.bf16.msra.mxu1 %v432_v27 }
  0x34   :  { %271 = vmatprep.subr.bf16.mxu0 %v433_v28  ;;  %375 = vmatprep.subr.bf16.mxu1 %v433_v28 }
  0x37   :  { %272 = vmatpush1.bf16.msra.mxu0 %v435_v29  ;;  %391 = vmatpush1.bf16.msra.mxu1 %v435_v29 }
  0x38   :  { %273 = vmatprep.subr.bf16.mxu0 %v436_v30  ;;  %376 = vmatprep.subr.bf16.mxu1 %v436_v30 }
  0x3b   :  { %274 = vmatpush1.bf16.msra.mxu0 %v438_v31  ;;  %392 = vmatpush1.bf16.msra.mxu1 %v438_v31 }
  0x3c   :  { %275 = vmatprep.subr.bf16.mxu0 %v439_v32  ;;  %377 = vmatprep.subr.bf16.mxu1 %v439_v32 }
  0x3f   :  { %276 = vmatpush1.bf16.msra.mxu0 %v441_v33  ;;  %393 = vmatpush1.bf16.msra.mxu1 %v441_v33 }
  0x42   :  { %278 = vmatmul.mubr.bf16.vlgmr.msra.gmra.mrb[0].mxu0 %v442_v34  ;;  %288 = vmatmul.mubr.bf16.vlgmr.msra.gmra.mrb[0].mxu1 %v445_v35 }
 0x115   :  { %v279_v43 = vpop.f32.mrb[0].mxu0  ;;  %v289_v45 = vpop.f32.mrb[0].mxu1 }
 0x116   :  { %v280_v47 = vadd.f32 %v279_v43, %v58_v41  ;;  %v290_v48 = vadd.f32 %v289_v45, %v58_v41  ;;  %v281_v49 = vpop.f32.mrb[1].mxu0  ;;  %v291_v51 = vpop.f32.mrb[1].mxu1 }
 0x117   :  { %v282_v53 = vadd.f32 %v281_v49, %v62_v42  ;;  %v292_v54 = vadd.f32 %v291_v51, %v62_v42  ;;  %v283_v55 = vpop.f32.mrb[2].mxu0  ;;  %v293_v57 = vpop.f32.mrb[2].mxu1 }
 0x118   :  { %v306_v59 = vadd.f32 %v298_v44, %v280_v47  ;;  %v310_v60 = vadd.f32 %v302_v46, %v290_v48  ;;  %v284_v61 = vadd.f32 %v283_v55, %v58_v41  ;;  %v294_v62 = vadd.f32 %v293_v57, %v58_v41  ;;  %v285_v63 = vpop.f32.mrb[3].mxu0  ;;  %v295_v1 = vpop.f32.mrb[3].mxu1 }
 0x119   :  { %v307_v3 = vadd.f32 %v299_v50, %v282_v53  ;;  %v311_v4 = vadd.f32 %v303_v52, %v292_v54  ;;  %v286_v5 = vadd.f32 %v285_v63, %v62_v42  ;;  %v296_v6 = vadd.f32 %v295_v1, %v62_v42 }
 0x11a   :  { %314 = vst [vmem:[%s636_s4] sm:$0xff] %v306_v59  ;;  %318 = vst [vmem:[%s636_s4 + $0x20] sm:$0xff] %v310_v60  ;;  %v308_v7 = vadd.f32 %v300_v56, %v284_v61  ;;  %v312_v8 = vadd.f32 %v304_v58, %v294_v62 }
 0x11b   :  { %315 = vst [vmem:[%s636_s4 + $0x8] sm:$0xff] %v307_v3  ;;  %319 = vst [vmem:[%s636_s4 + $0x28] sm:$0xff] %v311_v4  ;;  %v309_v9 = vadd.f32 %v301_v0, %v286_v5  ;;  %v313_v10 = vadd.f32 %v305_v2, %v296_v6 }
 0x11c   :  { %316 = vst [vmem:[%s636_s4 + $0x10] sm:$0xff] %v308_v7  ;;  %320 = vst [vmem:[%s636_s4 + $0x30] sm:$0xff] %v312_v8 }
 0x11d   :  { %317 = vst [vmem:[%s636_s4 + $0x18] sm:$0xff] %v309_v9  ;;  %321 = vst [vmem:[%s636_s4 + $0x38] sm:$0xff] %v313_v10 }

// kernel: vit_backbone_forward.12
= control target key start
LH: loop header
LB: loop body
LE: loop exit
PB: predicated region body
PF: predicated region fallthrough
CT: control target
= control target key end

     0   :  { %s1237_s12 = smov 0   ;;  %s1560_s0 = inlined_call_operand.vmem [shape: f32[16,768], index: 0, kind: input, shape index: {}]   ;;  %s1561_s1 = inlined_call_operand.vmem [shape: bf16[768,256], index: 1, kind: input, shape index: {}]   ;;  %s1562_s2 = inlined_call_operand.vmem [shape: f32[8,256], index: 2, kind: input, shape index: {}]   ;;  %s1563_s3 = inlined_call_operand.vmem [shape: f32[16,256], index: 3, kind: output, shape index: {}]  }
   0x1 LB: > { %s941_s13 = sadd.s32 4294967295, %s1215_s12   ;;  %p945_p0 = scmp.ge.s32.totalorder %s1215_s12, 1  ;;  %s1215_s12 = sphi %s1237_s12, %s13_s12  }
   0x2   : > { %p137_p1 = scmp.lt.s32.totalorder %s1215_s12, 3 }
   0x4   : > { %p138_p2 = pnand %p945_p0, %p137_p1 }
   0x5   : > { %v1065_v0 = vld [vmem:[%s1561_s1 + $0x104] ss:$8 sps:$4 sm:$0xff] (!%p138_p2)   ;;  %v1067_v1 = vld [vmem:[%s1561_s1 + $0x100] ss:$8 sps:$4 sm:$0xff] (!%p138_p2)   ;;  %v1068_v2 = vld [vmem:[%s1561_s1 + $0x114] ss:$8 sps:$4 sm:$0xff] (!%p138_p2)  }
   0x6   : > { %141 = sbr.rel (%p138_p2) target bundleno = 350 (0x15e), region = 32  ;;  %802 = vmatprep.subr.bf16.mxu0 (!%p138_p2), %v1065_v0  ;;  %v1070_v3 = vld [vmem:[%s1561_s1 + $0x110] ss:$8 sps:$4 sm:$0xff] (!%p138_p2)   ;;  %v1071_v4 = vld [vmem:[%s1561_s1 + $0x124] ss:$8 sps:$4 sm:$0xff] (!%p138_p2)   ;;  %p161_p3 = scmp.lt.s32.totalorder (!%p138_p2), %s941_s13, 1 }
   0x7   : > { %803 = vmatpush1.bf16.msra.mxu0 (!%p138_p2), %v1067_v1  ;;  %v1073_v5 = vld [vmem:[%s1561_s1 + $0x120] ss:$8 sps:$4 sm:$0xff] (!%p138_p2)   ;;  %v1074_v6 = vld [vmem:[%s1561_s1 + $0x134] ss:$8 sps:$4 sm:$0xff] (!%p138_p2)   ;;  %v1076_v7 = vld [vmem:[%s1561_s1 + $0x130] ss:$8 sps:$4 sm:$0xff] (!%p138_p2)  }
   0x8   : > { %804 = vmatprep.subr.bf16.mxu0 (!%p138_p2), %v1068_v2  ;;  %v1077_v8 = vld [vmem:[%s1561_s1 + $0x144] ss:$8 sps:$4 sm:$0xff] (!%p138_p2)   ;;  %v1079_v9 = vld [vmem:[%s1561_s1 + $0x140] ss:$8 sps:$4 sm:$0xff] (!%p138_p2)   ;;  %v1080_v10 = vld [vmem:[%s1561_s1 + $0x154] ss:$8 sps:$4 sm:$0xff] (!%p138_p2)  }
   0x9   : > { %v1082_v11 = vld [vmem:[%s1561_s1 + $0x150] ss:$8 sps:$4 sm:$0xff] (!%p138_p2)   ;;  %v1083_v12 = vld [vmem:[%s1561_s1 + $0x164] ss:$8 sps:$4 sm:$0xff] (!%p138_p2)   ;;  %v1112_v14 = vld [vmem:[%s1561_s1] ss:$8 sps:$4 sm:$0xff] (!%p138_p2)  }
   0xa   : > { %v1110_v13 = vld [vmem:[%s1561_s1 + $0x4] ss:$8 sps:$4 sm:$0xff] (!%p138_p2)   ;;  %v1085_v15 = vld [vmem:[%s1561_s1 + $0x160] ss:$8 sps:$4 sm:$0xff] (!%p138_p2)   ;;  %v1086_v16 = vld [vmem:[%s1561_s1 + $0x174] ss:$8 sps:$4 sm:$0xff] (!%p138_p2)  }
   0xb   : > { %805 = vmatpush1.bf16.msra.mxu0 (!%p138_p2), %v1070_v3  ;;  %761 = vmatprep.subr.bf16.mxu1 (!%p138_p2), %v1110_v13  ;;  %v1116_v17 = vld [vmem:[%s1561_s1 + $0x14] ss:$8 sps:$4 sm:$0xff] (!%p138_p2)   ;;  %v1118_v18 = vld [vmem:[%s1561_s1 + $0x10] ss:$8 sps:$4 sm:$0xff] (!%p138_p2)   ;;  %v1122_v22 = vld [vmem:[%s1561_s1 + $0x24] ss:$8 sps:$4 sm:$0xff] (!%p138_p2)  }
   0xc   : > { %806 = vmatprep.subr.bf16.mxu0 (!%p138_p2), %v1071_v4  ;;  %762 = vmatpush1.bf16.msra.mxu1 (!%p138_p2), %v1112_v14  ;;  %v1088_v20 = vld [vmem:[%s1561_s1 + $0x170] ss:$8 sps:$4 sm:$0xff] (!%p138_p2)   ;;  %v1124_v23 = vld [vmem:[%s1561_s1 + $0x20] ss:$8 sps:$4 sm:$0xff] (!%p138_p2)   ;;  %v1089_v24 = vld [vmem:[%s1561_s1 + $0x184] ss:$8 sps:$4 sm:$0xff] (!%p138_p2)  }
   0xd   : > { %s1565_s13 = smov (!%p161_p3, %s941_s13), 1  ;;  %763 = vmatprep.subr.bf16.mxu1 %v1116_v17  ;;  %v1128_v25 = vld [vmem:[%s1561_s1 + $0x34] ss:$8 sps:$4 sm:$0xff]   ;;  %v1091_v26 = vld [vmem:[%s1561_s1 + $0x180] ss:$8 sps:$4 sm:$0xff]  }
   0xe   : > { %s1056_s9 = smul.u32 48, %s1565_s13  ;;  %v1130_v27 = vld [vmem:[%s1561_s1 + $0x30] ss:$8 sps:$4 sm:$0xff]   ;;  %v1092_v28 = vld [vmem:[%s1561_s1 + $0x194] ss:$8 sps:$4 sm:$0xff]   ;;  %s1047_s20 = sshll.u32 %s1565_s13, 4 }
   0xf   : > { %807 = vmatpush1.bf16.msra.mxu0 %v1073_v5  ;;  %v1134_v29 = vld [vmem:[%s1561_s1 + $0x44] ss:$8 sps:$4 sm:$0xff]   ;;  %v1094_v30 = vld [vmem:[%s1561_s1 + $0x190] ss:$8 sps:$4 sm:$0xff]   ;;  %v1136_v31 = vld [vmem:[%s1561_s1 + $0x40] ss:$8 sps:$4 sm:$0xff]   ;;  %s170_s23 = scalar_lea.vmem %s1563_s3, %s1047_s20 }
  0x10   : > { %808 = vmatprep.subr.bf16.mxu0 %v1074_v6  ;;  %s1296_s22 = scalar_lea.vmem %s1560_s0, %s1056_s9  ;;  %764 = vmatpush1.bf16.msra.mxu1 %v1118_v18  ;;  %v1095_v32 = vld [vmem:[%s1561_s1 + $0x1a4] ss:$8 sps:$4 sm:$0xff]   ;;  %v1140_v33 = vld [vmem:[%s1561_s1 + $0x54] ss:$8 sps:$4 sm:$0xff]   ;;  %v1097_v34 = vld [vmem:[%s1561_s1 + $0x1a0] ss:$8 sps:$4 sm:$0xff]  }
  0x11   : > { %v174_v19 = vld [vmem:[%s1296_s22 + $0x18] sm:$0xff]  ;;  %765 = vmatprep.subr.bf16.mxu1 %v1122_v22  ;;  %v1146_v37 = vld [vmem:[%s1561_s1 + $0x64] ss:$8 sps:$4 sm:$0xff]   ;;  %v1148_v39 = vld [vmem:[%s1561_s1 + $0x60] ss:$8 sps:$4 sm:$0xff]  }
  0x12   : > { %v180_v21 = vpack.c.bf16 %v174_v19, %v174_v19  ;;  %v1142_v35 = vld [vmem:[%s1561_s1 + $0x50] ss:$8 sps:$4 sm:$0xff]   ;;  %v1098_v36 = vld [vmem:[%s1561_s1 + $0x1b4] ss:$8 sps:$4 sm:$0xff]   ;;  %v1101_v40 = vld [vmem:[%s1561_s1 + $0x1c4] ss:$8 sps:$4 sm:$0xff]  }
  0x13   : > { %809 = vmatpush1.bf16.msra.mxu0 %v1076_v7  ;;  %v1100_v38 = vld [vmem:[%s1561_s1 + $0x1b0] ss:$8 sps:$4 sm:$0xff]   ;;  %v1152_v41 = vld [vmem:[%s1561_s1 + $0x74] ss:$8 sps:$4 sm:$0xff]   ;;  %v1103_v42 = vld [vmem:[%s1561_s1 + $0x1c0] ss:$8 sps:$4 sm:$0xff]  }
  0x14   : > { %810 = vmatprep.subr.bf16.mxu0 %v1077_v8  ;;  %834 = vmatprep.mubr.bf16.mxu0 %v180_v21  ;;  %v1154_v43 = vld [vmem:[%s1561_s1 + $0x70] ss:$8 sps:$4 sm:$0xff]   ;;  %v1104_v44 = vld [vmem:[%s1561_s1 + $0x1d4] ss:$8 sps:$4 sm:$0xff]   ;;  %v1158_v45 = vld [vmem:[%s1561_s1 + $0x84] ss:$8 sps:$4 sm:$0xff]  }
  0x15   : > { %766 = vmatpush1.bf16.msra.mxu1 %v1124_v23  ;;  %v1106_v46 = vld [vmem:[%s1561_s1 + $0x1d0] ss:$8 sps:$4 sm:$0xff]   ;;  %v1160_v47 = vld [vmem:[%s1561_s1 + $0x80] ss:$8 sps:$4 sm:$0xff]   ;;  %v1107_v48 = vld [vmem:[%s1561_s1 + $0x1e4] ss:$8 sps:$4 sm:$0xff]  }
  0x16   : > { %767 = vmatprep.subr.bf16.mxu1 %v1128_v25  ;;  %v1164_v49 = vld [vmem:[%s1561_s1 + $0x94] ss:$8 sps:$4 sm:$0xff]   ;;  %v1109_v50 = vld [vmem:[%s1561_s1 + $0x1e0] ss:$8 sps:$4 sm:$0xff]   ;;  %v1166_v51 = vld [vmem:[%s1561_s1 + $0x90] ss:$8 sps:$4 sm:$0xff]  }
  0x17   : > { %811 = vmatpush1.bf16.msra.mxu0 %v1079_v9  ;;  %v1113_v52 = vld [vmem:[%s1561_s1 + $0x1f4] ss:$8 sps:$4 sm:$0xff]   ;;  %v1170_v53 = vld [vmem:[%s1561_s1 + $0xa4] ss:$8 sps:$4 sm:$0xff]   ;;  %v1115_v54 = vld [vmem:[%s1561_s1 + $0x1f0] ss:$8 sps:$4 sm:$0xff]  }
  0x18   : > { %812 = vmatprep.subr.bf16.mxu0 %v1080_v10  ;;  %v173_v55 = vld [vmem:[%s1296_s22 + $0x10] sm:$0xff]  ;;  %v1172_v56 = vld [vmem:[%s1561_s1 + $0xa0] ss:$8 sps:$4 sm:$0xff]   ;;  %v1121_v57 = vld [vmem:[%s1561_s1 + $0x204] ss:$8 sps:$4 sm:$0xff]  }
  0x19   : > { %768 = vmatpush1.bf16.msra.mxu1 %v1130_v27  ;;  %v1176_v58 = vld [vmem:[%s1561_s1 + $0xb4] ss:$8 sps:$4 sm:$0xff]   ;;  %v1119_v59 = vld [vmem:[%s1561_s1 + $0x200] ss:$8 sps:$4 sm:$0xff]   ;;  %v179_v60 = vpack.c.bf16 %v173_v55, %v173_v55  ;;  %v1178_v62 = vld [vmem:[%s1561_s1 + $0xb0] ss:$8 sps:$4 sm:$0xff]  }
  0x1a   : > { %769 = vmatprep.subr.bf16.mxu1 %v1134_v29  ;;  %v1127_v61 = vld [vmem:[%s1561_s1 + $0x214] ss:$8 sps:$4 sm:$0xff]   ;;  %v172_v63 = vld [vmem:[%s1296_s22 + $0x8] sm:$0xff]  ;;  %v1125_v4 = vld [vmem:[%s1561_s1 + $0x210] ss:$8 sps:$4 sm:$0xff]  }
  0x1b   : > { %813 = vmatpush1.bf16.msra.mxu0 %v1082_v11  ;;  %v1182_v0 = vld [vmem:[%s1561_s1 + $0xc4] ss:$8 sps:$4 sm:$0xff]   ;;  %v178_v1 = vpack.c.bf16 %v172_v63, %v172_v63  ;;  %v1184_v5 = vld [vmem:[%s1561_s1 + $0xc0] ss:$8 sps:$4 sm:$0xff]   ;;  %v1188_v7 = vld [vmem:[%s1561_s1 + $0xd4] ss:$8 sps:$4 sm:$0xff]  }
  0x1c   : > { %814 = vmatprep.subr.bf16.mxu0 %v1083_v12  ;;  %v176_v2 = vld [vmem:[%s1296_s22 + $0x28] sm:$0xff]  ;;  %v1190_v9 = vld [vmem:[%s1561_s1 + $0xd0] ss:$8 sps:$4 sm:$0xff]   ;;  %v1139_v10 = vld [vmem:[%s1561_s1 + $0x234] ss:$8 sps:$4 sm:$0xff]  }
  0x1d   : > { %770 = vmatpush1.bf16.msra.mxu1 %v1136_v31  ;;  %793 = vmatprep.mubr.bf16.mxu1 %v178_v1  ;;  %v182_v3 = vpack.c.bf16 %v176_v2, %v176_v2  ;;  %v1133_v6 = vld [vmem:[%s1561_s1 + $0x224] ss:$8 sps:$4 sm:$0xff]   ;;  %v1131_v8 = vld [vmem:[%s1561_s1 + $0x220] ss:$8 sps:$4 sm:$0xff]   ;;  %v1137_v12 = vld [vmem:[%s1561_s1 + $0x230] ss:$8 sps:$4 sm:$0xff]  }
  0x1e   : > { %771 = vmatprep.subr.bf16.mxu1 %v1140_v33  ;;  %v1194_v11 = vld [vmem:[%s1561_s1 + $0xe4] ss:$8 sps:$4 sm:$0xff]   ;;  %v1196_v13 = vld [vmem:[%s1561_s1 + $0xe0] ss:$8 sps:$4 sm:$0xff]   ;;  %v1202_v17 = vld [vmem:[%s1561_s1 + $0xf0] ss:$8 sps:$4 sm:$0xff]  }
  0x1f   : > { %815 = vmatpush1.bf16.msra.mxu0 %v1085_v15  ;;  %v1145_v14 = vld [vmem:[%s1561_s1 + $0x244] ss:$8 sps:$4 sm:$0xff]   ;;  %v1200_v15 = vld [vmem:[%s1561_s1 + $0xf4] ss:$8 sps:$4 sm:$0xff]   ;;  %v1149_v21 = vld [vmem:[%s1561_s1 + $0x250] ss:$8 sps:$4 sm:$0xff]  }
  0x20   : > { %816 = vmatprep.subr.bf16.mxu0 %v1086_v16  ;;  %v1143_v16 = vld [vmem:[%s1561_s1 + $0x240] ss:$8 sps:$4 sm:$0xff]   ;;  %v1151_v19 = vld [vmem:[%s1561_s1 + $0x254] ss:$8 sps:$4 sm:$0xff]   ;;  %v1157_v22 = vld [vmem:[%s1561_s1 + $0x264] ss:$8 sps:$4 sm:$0xff]  }
  0x21   : > { %772 = vmatpush1.bf16.msra.mxu1 %v1142_v35  ;;  %v171_v18 = vld [vmem:[%s1296_s22] sm:$0xff]  ;;  %v1161_v25 = vld [vmem:[%s1561_s1 + $0x270] ss:$8 sps:$4 sm:$0xff]  }
  0x22   : > { %773 = vmatprep.subr.bf16.mxu1 %v1146_v37  ;;  %v1155_v23 = vld [vmem:[%s1561_s1 + $0x260] ss:$8 sps:$4 sm:$0xff]   ;;  %v1173_v29 = vld [vmem:[%s1561_s1 + $0x290] ss:$8 sps:$4 sm:$0xff]  }
  0x23   : > { %817 = vmatpush1.bf16.msra.mxu0 %v1088_v20  ;;  %v177_v20 = vpack.c.bf16 %v171_v18, %v171_v18  ;;  %v1167_v27 = vld [vmem:[%s1561_s1 + $0x280] ss:$8 sps:$4 sm:$0xff]   ;;  %v1185_v33 = vld [vmem:[%s1561_s1 + $0x2b0] ss:$8 sps:$4 sm:$0xff]  }
  0x24   : > { %818 = vmatprep.subr.bf16.mxu0 %v1089_v24  ;;  %v1163_v24 = vld [vmem:[%s1561_s1 + $0x274] ss:$8 sps:$4 sm:$0xff]   ;;  %v1179_v31 = vld [vmem:[%s1561_s1 + $0x2a0] ss:$8 sps:$4 sm:$0xff]   ;;  %v1197_v37 = vld [vmem:[%s1561_s1 + $0x2d0] ss:$8 sps:$4 sm:$0xff]  }
  0x25   : > { %774 = vmatpush1.bf16.msra.mxu1 %v1148_v39  ;;  %v1191_v35 = vld [vmem:[%s1561_s1 + $0x2c0] ss:$8 sps:$4 sm:$0xff]  }
  0x26   : > { %775 = vmatprep.subr.bf16.mxu1 %v1152_v41  ;;  %v1203_v39 = vld [vmem:[%s1561_s1 + $0x2e0] ss:$8 sps:$4 sm:$0xff]   ;;  %v1206_v41 = vld [vmem:[%s1561_s1 + $0x2f0] ss:$8 sps:$4 sm:$0xff]  }
  0x27   : > { %819 = vmatpush1.bf16.msra.mxu0 %v1091_v26  ;;  %v1169_v26 = vld [vmem:[%s1561_s1 + $0x284] ss:$8 sps:$4 sm:$0xff]  }
  0x28   : > { %820 = vmatprep.subr.bf16.mxu0 %v1092_v28  ;;  %v1175_v28 = vld [vmem:[%s1561_s1 + $0x294] ss:$8 sps:$4 sm:$0xff]  }
  0x29   : > { %776 = vmatpush1.bf16.msra.mxu1 %v1154_v43 }
  0x2a   : > { %777 = vmatprep.subr.bf16.mxu1 %v1158_v45 }
  0x2b   : > { %821 = vmatpush1.bf16.msra.mxu0 %v1094_v30  ;;  %v1181_v30 = vld [vmem:[%s1561_s1 + $0x2a4] ss:$8 sps:$4 sm:$0xff]  }
  0x2c   : > { %822 = vmatprep.subr.bf16.mxu0 %v1095_v32  ;;  %v1187_v32 = vld [vmem:[%s1561_s1 + $0x2b4] ss:$8 sps:$4 sm:$0xff]  }
  0x2d   : > { %778 = vmatpush1.bf16.msra.mxu1 %v1160_v47 }
  0x2e   : > { %779 = vmatprep.subr.bf16.mxu1 %v1164_v49  ;;  %v280_v49 = vld [vmem:[%s1562_s2 + $0x8] sm:$0xff] }
  0x2f   : > { %823 = vmatpush1.bf16.msra.mxu0 %v1097_v34  ;;  %v1193_v34 = vld [vmem:[%s1561_s1 + $0x2c4] ss:$8 sps:$4 sm:$0xff]  }
  0x30   : > { %824 = vmatprep.subr.bf16.mxu0 %v1098_v36  ;;  %v1199_v36 = vld [vmem:[%s1561_s1 + $0x2d4] ss:$8 sps:$4 sm:$0xff]  }
  0x31   : > { %780 = vmatpush1.bf16.msra.mxu1 %v1166_v51 }
  0x32   : > { %781 = vmatprep.subr.bf16.mxu1 %v1170_v53 }
  0x33   : > { %825 = vmatpush1.bf16.msra.mxu0 %v1100_v38  ;;  %v1205_v38 = vld [vmem:[%s1561_s1 + $0x2e4] ss:$8 sps:$4 sm:$0xff]  }
  0x34   : > { %826 = vmatprep.subr.bf16.mxu0 %v1101_v40  ;;  %v1208_v40 = vld [vmem:[%s1561_s1 + $0x2f4] ss:$8 sps:$4 sm:$0xff]  }
  0x35   : > { %782 = vmatpush1.bf16.msra.mxu1 %v1172_v56 }
  0x36   : > { %783 = vmatprep.subr.bf16.mxu1 %v1176_v58 }
  0x37   : > { %827 = vmatpush1.bf16.msra.mxu0 %v1103_v42  ;;  %v175_v42 = vld [vmem:[%s1296_s22 + $0x20] sm:$0xff] }
  0x38   : > { %828 = vmatprep.subr.bf16.mxu0 %v1104_v44  ;;  %v181_v43 = vpack.c.bf16 %v175_v42, %v175_v42 }
  0x39   : > { %784 = vmatpush1.bf16.msra.mxu1 %v1178_v62 }
  0x3a   : > { %785 = vmatprep.subr.bf16.mxu1 %v1182_v0 }
  0x3b   : > { %829 = vmatpush1.bf16.msra.mxu0 %v1106_v46 }
  0x3c   : > { %830 = vmatprep.subr.bf16.mxu0 %v1107_v48  ;;  %v279_v48 = vld [vmem:[%s1562_s2] sm:$0xff] }
  0x3d   : > { %786 = vmatpush1.bf16.msra.mxu1 %v1184_v5 }
  0x3e   : > { %787 = vmatprep.subr.bf16.mxu1 %v1188_v7 }
  0x3f   : > { %831 = vmatpush1.bf16.msra.mxu0 %v1109_v50 }
  0x40   : > { %832 = vmatprep.subr.bf16.mxu0 %v1113_v52 }
  0x41   : > { %788 = vmatpush1.bf16.msra.mxu1 %v1190_v9 }
  0x42   : > { %789 = vmatprep.subr.bf16.mxu1 %v1194_v11 }
  0x43   : > { %833 = vmatpush1.bf16.msra.mxu0 %v1115_v54 }
  0x44   : > { %843 = vmatprep.subr.bf16.mxu0 %v1121_v57 }
  0x45   : > { %790 = vmatpush1.bf16.msra.mxu1 %v1196_v13 }
  0x46   : > { %835 = vmatmul.mubr.bf16.vlgmr.msra.gmra.mrb[0].mxu0 %v179_v60  ;;  %791 = vmatprep.subr.bf16.mxu1 %v1200_v15 }
  0x47   : > { %844 = vmatpush1.bf16.msra.mxu0 %v1119_v59  ;;  %875 = vmatprep.mubr.bf16.mxu0 %v182_v3 }
  0x48   : > { %845 = vmatprep.subr.bf16.mxu0 %v1127_v61 }
  0x49   : > { %792 = vmatpush1.bf16.msra.mxu1 %v1202_v17 }
  0x4b   : > { %846 = vmatpush1.bf16.msra.mxu0 %v1125_v4 }
  0x4c   : > { %847 = vmatprep.subr.bf16.mxu0 %v1133_v6  ;;  %794 = vmatmul.mubr.bf16.vlgmr.msra.gmra.mrb[0].mxu1 %v177_v20 }
  0x4f   : > { %848 = vmatpush1.bf16.msra.mxu0 %v1131_v8 }
  0x50   : > { %849 = vmatprep.subr.bf16.mxu0 %v1139_v10 }
  0x53   : > { %850 = vmatpush1.bf16.msra.mxu0 %v1137_v12 }
  0x54   : > { %851 = vmatprep.subr.bf16.mxu0 %v1145_v14 }
  0x57   : > { %852 = vmatpush1.bf16.msra.mxu0 %v1143_v16 }
  0x58   : > { %853 = vmatprep.subr.bf16.mxu0 %v1151_v19 }
  0x5b   : > { %854 = vmatpush1.bf16.msra.mxu0 %v1149_v21 }
  0x5c   : > { %855 = vmatprep.subr.bf16.mxu0 %v1157_v22 }
  0x5f   : > { %856 = vmatpush1.bf16.msra.mxu0 %v1155_v23 }
  0x60   : > { %857 = vmatprep.subr.bf16.mxu0 %v1163_v24 }
  0x63   : > { %858 = vmatpush1.bf16.msra.mxu0 %v1161_v25 }
  0x64   : > { %859 = vmatprep.subr.bf16.mxu0 %v1169_v26 }
  0x67   : > { %860 = vmatpush1.bf16.msra.mxu0 %v1167_v27 }
  0x68   : > { %861 = vmatprep.subr.bf16.mxu0 %v1175_v28 }
  0x6b   : > { %862 = vmatpush1.bf16.msra.mxu0 %v1173_v29 }
  0x6c   : > { %863 = vmatprep.subr.bf16.mxu0 %v1181_v30 }
  0x6f   : > { %864 = vmatpush1.bf16.msra.mxu0 %v1179_v31 }
  0x70   : > { %865 = vmatprep.subr.bf16.mxu0 %v1187_v32 }
  0x73   : > { %866 = vmatpush1.bf16.msra.mxu0 %v1185_v33 }
  0x74   : > { %867 = vmatprep.subr.bf16.mxu0 %v1193_v34 }
  0x77   : > { %868 = vmatpush1.bf16.msra.mxu0 %v1191_v35 }
  0x78   : > { %869 = vmatprep.subr.bf16.mxu0 %v1199_v36 }
  0x7b   : > { %870 = vmatpush1.bf16.msra.mxu0 %v1197_v37 }
  0x7c   : > { %871 = vmatprep.subr.bf16.mxu0 %v1205_v38 }
  0x7f   : > { %872 = vmatpush1.bf16.msra.mxu0 %v1203_v39 }
  0x80   : > { %873 = vmatprep.subr.bf16.mxu0 %v1208_v40 }
  0x83   : > { %874 = vmatpush1.bf16.msra.mxu0 %v1206_v41 }
  0x86   : > { %876 = vmatmul.mubr.bf16.vlgmr.msra.gmra.mrb[0].mxu0 %v181_v43 }
 0x11f   : > { %v795_v44 = vpop.f32.mrb[0].mxu1 }
 0x120   : > { %v797_v45 = vpop.f32.mrb[1].mxu1  ;;  %v796_v50 = vadd.f32 %v795_v44, %v279_v48 }
 0x121   : > { %v799_v46 = vpop.f32.mrb[2].mxu1  ;;  %v798_v51 = vadd.f32 %v797_v45, %v280_v49 }
 0x122   : > { %v800_v47 = vpop.f32.mrb[3].mxu1 }
 0x159   : > { %v877_v52 = vpop.f32.mrb[0].mxu0 }
 0x15a   : > { %v1049_v53 = vadd.f32 %v877_v52, %v796_v50  ;;  %v879_v54 = vpop.f32.mrb[1].mxu0 }
 0x15b   : > { %v1051_v55 = vadd.f32 %v879_v54, %v798_v51  ;;  %v881_v56 = vpop.f32.mrb[2].mxu0 }
 0x15c   : > { %884 = vst [vmem:[%s170_s23] sm:$0xff] %v1049_v53  ;;  %v882_v57 = vpop.f32.mrb[3].mxu0 }
 0x15d   : > { %885 = vst [vmem:[%s170_s23 + $0x8] sm:$0xff] %v1051_v55 }
 0x15e PF: > { %s13_s12 = sadd.s32 1, %s1215_s12  }
 0x15f   : > { %p10_p4 = scmp.ge.s32.totalorder %s13_s12, 4  }
 0x161   :  { %12 = sbr.rel (!%p10_p4) target bundleno = 1 (0x1), region = 62 }

// kernel: vit_backbone_forward.13
= control target key start
LH: loop header
LB: loop body
LE: loop exit
PB: predicated region body
PF: predicated region fallthrough
CT: control target
= control target key end

     0   :  { %s1783_s0 = inlined_call_operand.vmem [shape: f32[32,256], index: 0, kind: input, shape index: {}]   ;;  %s1784_s1 = inlined_call_operand.vmem [shape: bf16[256,768], index: 1, kind: input, shape index: {}]   ;;  %s1785_s3 = inlined_call_operand.vmem [shape: f32[1,256], index: 3, kind: input, shape index: {}]   ;;  %s1786_s4 = inlined_call_operand.vmem [shape: f32[1,256], index: 4, kind: input, shape index: {}]   ;;  %s1787_s2 = inlined_call_operand.vmem [shape: f32[1,768], index: 2, kind: input, shape index: {}]   ;;  %s1788_s5 = inlined_call_operand.vmem [shape: bf16[32,768], index: 5, kind: output, shape index: {}]  }
   0x1   :  { %v1329_v0 = vld [vmem:[%s1783_s0] sm:$0xff]  ;;  %v1334_v1 = vld [vmem:[%s1783_s0 + $0x8] sm:$0xff]  ;;  %v1351_v5 = vld [vmem:[%s1783_s0 + $0x10] sm:$0xff] }
   0x2   :  { %v1339_v2 = vld [vmem:[%s1783_s0 + $0x20] sm:$0xff]  ;;  %v28_v3 = vadd.f32 %v1334_v1, %v1329_v0  ;;  %v1346_v4 = vld [vmem:[%s1783_s0 + $0x28] sm:$0xff]  ;;  %v1356_v6 = vld [vmem:[%s1783_s0 + $0x18] sm:$0xff] }
   0x3   :  { %v34_v7 = vadd.f32 %v1346_v4, %v1339_v2  ;;  %v1363_v8 = vld [vmem:[%s1783_s0 + $0x30] sm:$0xff]  ;;  %v1368_v9 = vld [vmem:[%s1783_s0 + $0x38] sm:$0xff]  ;;  %v31_v10 = vadd.f32 %v1356_v6, %v1351_v5  ;;  %v1146_v13 = vld [vmem:[%s1784_s1 + $0xc] ss:$24 sps:$4 sm:$0xff]  }
   0x4   :  { %29 = vadd.xlane.f32.xlu0 %v28_v3  ;;  %v37_v11 = vadd.f32 %v1368_v9, %v1363_v8  ;;  %v1144_v12 = vld [vmem:[%s1784_s1 + $0x4] ss:$24 sps:$4 sm:$0xff]   ;;  %v1148_v14 = vld [vmem:[%s1784_s1] ss:$24 sps:$4 sm:$0xff]   ;;  %798 = vmatprep.subr.bf16.mxu1 %v1146_v13  ;;  %v1150_v16 = vld [vmem:[%s1784_s1 + $0x34] ss:$24 sps:$4 sm:$0xff]  }
   0x5   :  { %35 = vadd.xlane.f32.xlu1 %v34_v7  ;;  %745 = vmatprep.subr.bf16.mxu0 %v1144_v12  ;;  %v1149_v15 = vld [vmem:[%s1784_s1 + $0x8] ss:$24 sps:$4 sm:$0xff]   ;;  %v1152_v17 = vld [vmem:[%s1784_s1 + $0x3c] ss:$24 sps:$4 sm:$0xff]   ;;  %v1155_v19 = vld [vmem:[%s1784_s1 + $0x38] ss:$24 sps:$4 sm:$0xff]  }
   0x6   :  { %746 = vmatpush1.bf16.msra.mxu0 %v1148_v14  ;;  %799 = vmatpush1.bf16.msra.mxu1 %v1149_v15  ;;  %v1154_v18 = vld [vmem:[%s1784_s1 + $0x30] ss:$24 sps:$4 sm:$0xff]   ;;  %v1156_v20 = vld [vmem:[%s1784_s1 + $0x64] ss:$24 sps:$4 sm:$0xff]   ;;  %v1160_v22 = vld [vmem:[%s1784_s1 + $0x60] ss:$24 sps:$4 sm:$0xff]  }
   0x7   :  { %747 = vmatprep.subr.bf16.mxu0 %v1150_v16  ;;  %800 = vmatprep.subr.bf16.mxu1 %v1152_v17  ;;  %v1158_v21 = vld [vmem:[%s1784_s1 + $0x6c] ss:$24 sps:$4 sm:$0xff]   ;;  %v1161_v23 = vld [vmem:[%s1784_s1 + $0x68] ss:$24 sps:$4 sm:$0xff]   ;;  %v1164_v25 = vld [vmem:[%s1784_s1 + $0x9c] ss:$24 sps:$4 sm:$0xff]  }
   0x8   :  { %32 = vadd.xlane.f32.xlu0 %v31_v10  ;;  %v1162_v24 = vld [vmem:[%s1784_s1 + $0x94] ss:$24 sps:$4 sm:$0xff]   ;;  %v1166_v26 = vld [vmem:[%s1784_s1 + $0x90] ss:$24 sps:$4 sm:$0xff]   ;;  %v1168_v28 = vld [vmem:[%s1784_s1 + $0xc4] ss:$24 sps:$4 sm:$0xff]  }
   0x9   :  { %38 = vadd.xlane.f32.xlu1 %v37_v11  ;;  %v1167_v27 = vld [vmem:[%s1784_s1 + $0x98] ss:$24 sps:$4 sm:$0xff]   ;;  %v1170_v29 = vld [vmem:[%s1784_s1 + $0xcc] ss:$24 sps:$4 sm:$0xff]   ;;  %v1173_v31 = vld [vmem:[%s1784_s1 + $0xc8] ss:$24 sps:$4 sm:$0xff]  }
   0xa   :  { %748 = vmatpush1.bf16.msra.mxu0 %v1154_v18  ;;  %801 = vmatpush1.bf16.msra.mxu1 %v1155_v19  ;;  %v1172_v30 = vld [vmem:[%s1784_s1 + $0xc0] ss:$24 sps:$4 sm:$0xff]   ;;  %v1174_v32 = vld [vmem:[%s1784_s1 + $0xf4] ss:$24 sps:$4 sm:$0xff]   ;;  %v1178_v34 = vld [vmem:[%s1784_s1 + $0xf0] ss:$24 sps:$4 sm:$0xff]  }
   0xb   :  { %749 = vmatprep.subr.bf16.mxu0 %v1156_v20  ;;  %802 = vmatprep.subr.bf16.mxu1 %v1158_v21  ;;  %v1176_v33 = vld [vmem:[%s1784_s1 + $0xfc] ss:$24 sps:$4 sm:$0xff]   ;;  %v1179_v35 = vld [vmem:[%s1784_s1 + $0xf8] ss:$24 sps:$4 sm:$0xff]   ;;  %v1182_v37 = vld [vmem:[%s1784_s1 + $0x12c] ss:$24 sps:$4 sm:$0xff]  }
   0xc   :  { %v1180_v36 = vld [vmem:[%s1784_s1 + $0x124] ss:$24 sps:$4 sm:$0xff]   ;;  %v1184_v38 = vld [vmem:[%s1784_s1 + $0x120] ss:$24 sps:$4 sm:$0xff]   ;;  %v1186_v40 = vld [vmem:[%s1784_s1 + $0x154] ss:$24 sps:$4 sm:$0xff]  }
   0xd   :  { %v1185_v39 = vld [vmem:[%s1784_s1 + $0x128] ss:$24 sps:$4 sm:$0xff]   ;;  %v1188_v41 = vld [vmem:[%s1784_s1 + $0x15c] ss:$24 sps:$4 sm:$0xff]   ;;  %v1191_v43 = vld [vmem:[%s1784_s1 + $0x158] ss:$24 sps:$4 sm:$0xff]  }
   0xe   :  { %750 = vmatpush1.bf16.msra.mxu0 %v1160_v22  ;;  %803 = vmatpush1.bf16.msra.mxu1 %v1161_v23  ;;  %v1190_v42 = vld [vmem:[%s1784_s1 + $0x150] ss:$24 sps:$4 sm:$0xff]   ;;  %v1192_v44 = vld [vmem:[%s1784_s1 + $0x184] ss:$24 sps:$4 sm:$0xff]   ;;  %v1196_v46 = vld [vmem:[%s1784_s1 + $0x180] ss:$24 sps:$4 sm:$0xff]  }
   0xf   :  { %751 = vmatprep.subr.bf16.mxu0 %v1162_v24  ;;  %804 = vmatprep.subr.bf16.mxu1 %v1164_v25  ;;  %v1194_v45 = vld [vmem:[%s1784_s1 + $0x18c] ss:$24 sps:$4 sm:$0xff]   ;;  %v1197_v47 = vld [vmem:[%s1784_s1 + $0x188] ss:$24 sps:$4 sm:$0xff]   ;;  %v1200_v49 = vld [vmem:[%s1784_s1 + $0x1bc] ss:$24 sps:$4 sm:$0xff]  }
  0x10   :  { %v1198_v48 = vld [vmem:[%s1784_s1 + $0x1b4] ss:$24 sps:$4 sm:$0xff]   ;;  %v1203_v15 = vld [vmem:[%s1784_s1 + $0x1b8] ss:$24 sps:$4 sm:$0xff]   ;;  %v1204_v16 = vld [vmem:[%s1784_s1 + $0x1e4] ss:$24 sps:$4 sm:$0xff]  }
  0x11   :  { %v1206_v17 = vld [vmem:[%s1784_s1 + $0x1ec] ss:$24 sps:$4 sm:$0xff]   ;;  %v1208_v18 = vld [vmem:[%s1784_s1 + $0x1e0] ss:$24 sps:$4 sm:$0xff]   ;;  %v1212_v21 = vld [vmem:[%s1784_s1 + $0x21c] ss:$24 sps:$4 sm:$0xff]  }
  0x12   :  { %752 = vmatpush1.bf16.msra.mxu0 %v1166_v26  ;;  %805 = vmatpush1.bf16.msra.mxu1 %v1167_v27  ;;  %v1209_v19 = vld [vmem:[%s1784_s1 + $0x1e8] ss:$24 sps:$4 sm:$0xff]   ;;  %v1210_v20 = vld [vmem:[%s1784_s1 + $0x214] ss:$24 sps:$4 sm:$0xff]   ;;  %v1215_v23 = vld [vmem:[%s1784_s1 + $0x218] ss:$24 sps:$4 sm:$0xff]  }
  0x13   :  { %753 = vmatprep.subr.bf16.mxu0 %v1168_v28  ;;  %806 = vmatprep.subr.bf16.mxu1 %v1170_v29  ;;  %v1214_v22 = vld [vmem:[%s1784_s1 + $0x210] ss:$24 sps:$4 sm:$0xff]   ;;  %v1216_v24 = vld [vmem:[%s1784_s1 + $0x244] ss:$24 sps:$4 sm:$0xff]   ;;  %v1220_v26 = vld [vmem:[%s1784_s1 + $0x240] ss:$24 sps:$4 sm:$0xff]  }
  0x14   :  { %v1218_v25 = vld [vmem:[%s1784_s1 + $0x24c] ss:$24 sps:$4 sm:$0xff]   ;;  %v1221_v27 = vld [vmem:[%s1784_s1 + $0x248] ss:$24 sps:$4 sm:$0xff]   ;;  %v1224_v29 = vld [vmem:[%s1784_s1 + $0x27c] ss:$24 sps:$4 sm:$0xff]  }
  0x15   :  { %v1222_v28 = vld [vmem:[%s1784_s1 + $0x274] ss:$24 sps:$4 sm:$0xff]  }
  0x16   :  { %754 = vmatpush1.bf16.msra.mxu0 %v1172_v30  ;;  %807 = vmatpush1.bf16.msra.mxu1 %v1173_v31  ;;  %v1226_v30 = vld [vmem:[%s1784_s1 + $0x270] ss:$24 sps:$4 sm:$0xff]  }
  0x17   :  { %755 = vmatprep.subr.bf16.mxu0 %v1174_v32  ;;  %808 = vmatprep.subr.bf16.mxu1 %v1176_v33  ;;  %v1227_v31 = vld [vmem:[%s1784_s1 + $0x278] ss:$24 sps:$4 sm:$0xff]   ;;  %v1228_v32 = vld [vmem:[%s1784_s1 + $0x2a4] ss:$24 sps:$4 sm:$0xff]  }
  0x18   :  { %v1230_v33 = vld [vmem:[%s1784_s1 + $0x2ac] ss:$24 sps:$4 sm:$0xff]  }
  0x1a   :  { %756 = vmatpush1.bf16.msra.mxu0 %v1178_v34  ;;  %809 = vmatpush1.bf16.msra.mxu1 %v1179_v35  ;;  %v1232_v34 = vld [vmem:[%s1784_s1 + $0x2a0] ss:$24 sps:$4 sm:$0xff]  }
  0x1b   :  { %757 = vmatprep.subr.bf16.mxu0 %v1180_v36  ;;  %810 = vmatprep.subr.bf16.mxu1 %v1182_v37  ;;  %v1233_v35 = vld [vmem:[%s1784_s1 + $0x2a8] ss:$24 sps:$4 sm:$0xff]   ;;  %v1234_v36 = vld [vmem:[%s1784_s1 + $0x2d4] ss:$24 sps:$4 sm:$0xff]  }
  0x1c   :  { %v1236_v37 = vld [vmem:[%s1784_s1 + $0x2dc] ss:$24 sps:$4 sm:$0xff]  }
  0x1e   :  { %758 = vmatpush1.bf16.msra.mxu0 %v1184_v38  ;;  %811 = vmatpush1.bf16.msra.mxu1 %v1185_v39  ;;  %v1238_v38 = vld [vmem:[%s1784_s1 + $0x2d0] ss:$24 sps:$4 sm:$0xff]  }
  0x1f   :  { %759 = vmatprep.subr.bf16.mxu0 %v1186_v40  ;;  %812 = vmatprep.subr.bf16.mxu1 %v1188_v41  ;;  %v1239_v39 = vld [vmem:[%s1784_s1 + $0x2d8] ss:$24 sps:$4 sm:$0xff]   ;;  %v1242_v40 = vld [vmem:[%s1784_s1 + $0x14] ss:$24 sps:$4 sm:$0xff]  }
  0x22   :  { %760 = vmatpush1.bf16.msra.mxu0 %v1190_v42  ;;  %813 = vmatpush1.bf16.msra.mxu1 %v1191_v43 }
  0x23   :  { %761 = vmatprep.subr.bf16.mxu0 %v1192_v44  ;;  %814 = vmatprep.subr.bf16.mxu1 %v1194_v45  ;;  %v95_v44 = vlaneseq }
  0x26   :  { %762 = vmatpush1.bf16.msra.mxu0 %v1196_v46  ;;  %815 = vmatpush1.bf16.msra.mxu1 %v1197_v47 }
  0x27   :  { %763 = vmatprep.subr.bf16.mxu0 %v1198_v48  ;;  %816 = vmatprep.subr.bf16.mxu1 %v1200_v49 }
  0x2a   :  { %817 = vmatpush1.bf16.msra.mxu1 %v1203_v15 }
  0x2b   :  { %818 = vmatprep.subr.bf16.mxu1 %v1206_v17 }
  0x2e   :  { %819 = vmatpush1.bf16.msra.mxu1 %v1209_v19 }
  0x2f   :  { %820 = vmatprep.subr.bf16.mxu1 %v1212_v21 }
  0x32   :  { %821 = vmatpush1.bf16.msra.mxu1 %v1215_v23 }
  0x33   :  { %822 = vmatprep.subr.bf16.mxu1 %v1218_v25 }
  0x36   :  { %823 = vmatpush1.bf16.msra.mxu1 %v1221_v27  ;;  %v1245_v27 = vld [vmem:[%s1784_s1 + $0x44] ss:$24 sps:$4 sm:$0xff]  }
  0x37   :  { %824 = vmatprep.subr.bf16.mxu1 %v1224_v29 }
  0x3a   :  { %825 = vmatpush1.bf16.msra.mxu1 %v1227_v31  ;;  %v1248_v31 = vld [vmem:[%s1784_s1 + $0x74] ss:$24 sps:$4 sm:$0xff]  }
  0x3b   :  { %826 = vmatprep.subr.bf16.mxu1 %v1230_v33 }
  0x3e   :  { %827 = vmatpush1.bf16.msra.mxu1 %v1233_v35 }
  0x3f   :  { %828 = vmatprep.subr.bf16.mxu1 %v1236_v37  ;;  %v1249_v37 = vld [vmem:[%s1784_s1 + $0xa0] ss:$24 sps:$4 sm:$0xff]  }
  0x42   :  { %829 = vmatpush1.bf16.msra.mxu1 %v1239_v39  ;;  %v1252_v39 = vld [vmem:[%s1784_s1 + $0xd0] ss:$24 sps:$4 sm:$0xff]  }
  0x43   :  { %1112 = vmatprep.subr.bf16.mxu1 %v1242_v40 }
  0x91   :  { %v30_v50 = vpop.xlane.xlu0 %29 }
  0x92   :  { %v41_v51 = vmul.f32 0.00390625, %v30_v50  ;;  %v36_v52 = vpop.xlane.xlu1 %35 }
  0x93   :  { %v43_v53 = vmul.f32 0.00390625, %v36_v52 }
  0x94   :  { %v1489_v54 = vsub.f32 %v1329_v0, %v41_v51  ;;  %v1492_v55 = vsub.f32 %v1334_v1, %v41_v51  ;;  %v1609_v51 = vshrl.u32 %v95_v44, 7  ;;  %v1263_v44 = vld [vmem:[%s1784_s1 + $0x164] ss:$24 sps:$4 sm:$0xff]  }
  0x95   :  { %v1495_v56 = vsub.f32 %v1339_v2, %v43_v53  ;;  %v1498_v57 = vsub.f32 %v1346_v4, %v43_v53  ;;  %v33_v58 = vpop.xlane.xlu0 %32 }
  0x96   :  { %v42_v59 = vmul.f32 0.00390625, %v33_v58  ;;  %v39_v60 = vpop.xlane.xlu1 %38  ;;  %v53_v61 = vmul.f32 %v1489_v54, %v1489_v54  ;;  %v54_v62 = vmul.f32 %v1492_v55, %v1492_v55 }
  0x97   :  { %v44_v63 = vmul.f32 0.00390625, %v39_v60  ;;  %v57_v0 = vmul.f32 %v1495_v56, %v1495_v56  ;;  %v58_v1 = vmul.f32 %v1498_v57, %v1498_v57  ;;  %v1615_v60 = vsub.s32 0, %v1609_v51 }
  0x98   :  { %v1509_v2 = vsub.f32 %v1351_v5, %v42_v59  ;;  %v1512_v3 = vsub.f32 %v1356_v6, %v42_v59  ;;  %v61_v4 = vadd.f32 %v54_v62, %v53_v61  ;;  %v1612_v59 = vsub.s32 1, %v1609_v51  ;;  %v93_v61 = vld [vmem:[%s1785_s3] sm:$0x3] }
  0x99   :  { %v1515_v7 = vsub.f32 %v1363_v8, %v44_v63  ;;  %v1518_v10 = vsub.f32 %v1368_v9, %v44_v63  ;;  %v67_v11 = vadd.f32 %v58_v1, %v57_v0  ;;  %v1202_v9 = vld [vmem:[%s1784_s1 + $0x1b0] ss:$24 sps:$4 sm:$0xff]   ;;  %v98_v0 = vrot.slane %v93_v61, %v1615_v60 }
  0x9a   :  { %62 = vadd.xlane.f32.xlu0 %v61_v4  ;;  %v55_v12 = vmul.f32 %v1509_v2, %v1509_v2  ;;  %v56_v13 = vmul.f32 %v1512_v3, %v1512_v3  ;;  %764 = vmatpush1.bf16.msra.mxu0 %v1202_v9  ;;  %v102_v63 = vrot.slane %v93_v61, %v1612_v59  ;;  %v113_v4 = vld [vmem:[%s1786_s4] sm:$0x3]  ;;  %v1278_v61 = vld [vmem:[%s1784_s1 + $0x254] ss:$24 sps:$4 sm:$0xff]  }
  0x9b   :  { %v59_v5 = vmul.f32 %v1515_v7, %v1515_v7  ;;  %v60_v6 = vmul.f32 %v1518_v10, %v1518_v10  ;;  %765 = vmatprep.subr.bf16.mxu0 %v1204_v16 }
  0x9c   :  { %v64_v14 = vadd.f32 %v56_v13, %v55_v12 }
  0x9d   :  { %v70_v8 = vadd.f32 %v60_v6, %v59_v5  ;;  %v122_v5 = vrot.slane %v113_v4, %v1612_v59 }
  0x9e   :  { %68 = vadd.xlane.f32.xlu0 %v67_v11  ;;  %65 = vadd.xlane.f32.xlu1 %v64_v14  ;;  %v118_v14 = vrot.slane %v113_v4, %v1615_v60  ;;  %v1282_v4 = vld [vmem:[%s1784_s1 + $0x2b0] ss:$24 sps:$4 sm:$0xff]  }
  0x9f   :  { %766 = vmatpush1.bf16.msra.mxu0 %v1208_v18 }
  0xa0   :  { %767 = vmatprep.subr.bf16.mxu0 %v1210_v20 }
  0xa2   :  { %71 = vadd.xlane.f32.xlu1 %v70_v8 }
  0xa3   :  { %768 = vmatpush1.bf16.msra.mxu0 %v1214_v22 }
  0xa4   :  { %769 = vmatprep.subr.bf16.mxu0 %v1216_v24 }
  0xa7   :  { %770 = vmatpush1.bf16.msra.mxu0 %v1220_v26 }
  0xa8   :  { %771 = vmatprep.subr.bf16.mxu0 %v1222_v28 }
  0xab   :  { %772 = vmatpush1.bf16.msra.mxu0 %v1226_v30  ;;  %v1243_v30 = vld [vmem:[%s1784_s1 + $0x40] ss:$24 sps:$4 sm:$0xff]  }
  0xac   :  { %773 = vmatprep.subr.bf16.mxu0 %v1228_v32 }
  0xaf   :  { %774 = vmatpush1.bf16.msra.mxu0 %v1232_v34  ;;  %v1246_v34 = vld [vmem:[%s1784_s1 + $0x70] ss:$24 sps:$4 sm:$0xff]  }
  0xb0   :  { %775 = vmatprep.subr.bf16.mxu0 %v1234_v36  ;;  %v1251_v36 = vld [vmem:[%s1784_s1 + $0xa4] ss:$24 sps:$4 sm:$0xff]  }
  0xb3   :  { %776 = vmatpush1.bf16.msra.mxu0 %v1238_v38  ;;  %v1254_v38 = vld [vmem:[%s1784_s1 + $0xd4] ss:$24 sps:$4 sm:$0xff]  }
  0xb4   :  { %851 = vmatprep.subr.bf16.mxu0 %v1242_v40  ;;  %v1257_v40 = vld [vmem:[%s1784_s1 + $0x104] ss:$24 sps:$4 sm:$0xff]  }
 0x127   :  { %v63_v41 = vpop.xlane.xlu0 %62 }
 0x128   :  { %v73_v42 = vmul.f32 0.00390625, %v63_v41  ;;  %v1255_v41 = vld [vmem:[%s1784_s1 + $0x100] ss:$24 sps:$4 sm:$0xff]  }
 0x12a   :  { %v77_v43 = vadd.f32 1e-06, %v73_v42  ;;  %v1260_v42 = vld [vmem:[%s1784_s1 + $0x134] ss:$24 sps:$4 sm:$0xff]  }
 0x12b   :  { %v66_v45 = vpop.xlane.xlu1 %65  ;;  %v69_v46 = vpop.xlane.xlu0 %68 }
 0x12c   :  { %1288 = vrsqrt.f32 %v77_v43  ;;  %v74_v47 = vmul.f32 0.00390625, %v66_v45  ;;  %v75_v48 = vmul.f32 0.00390625, %v69_v46  ;;  %v1258_v43 = vld [vmem:[%s1784_s1 + $0x130] ss:$24 sps:$4 sm:$0xff]   ;;  %v1261_v45 = vld [vmem:[%s1784_s1 + $0x160] ss:$24 sps:$4 sm:$0xff]  }
 0x12d   :  { %v1266_v46 = vld [vmem:[%s1784_s1 + $0x194] ss:$24 sps:$4 sm:$0xff]  }
 0x12e   :  { %v78_v49 = vadd.f32 1e-06, %v74_v47  ;;  %v79_v50 = vadd.f32 1e-06, %v75_v48  ;;  %v1264_v47 = vld [vmem:[%s1784_s1 + $0x190] ss:$24 sps:$4 sm:$0xff]  }
 0x12f   :  { %v72_v52 = vpop.xlane.xlu1 %71  ;;  %v1269_v48 = vld [vmem:[%s1784_s1 + $0x1c4] ss:$24 sps:$4 sm:$0xff]  }
 0x130   :  { %1290 = vrsqrt.f32 %v78_v49  ;;  %v76_v53 = vmul.f32 0.00390625, %v72_v52  ;;  %v1267_v49 = vld [vmem:[%s1784_s1 + $0x1c0] ss:$24 sps:$4 sm:$0xff]   ;;  %v1270_v52 = vld [vmem:[%s1784_s1 + $0x1f0] ss:$24 sps:$4 sm:$0xff]  }
 0x131   :  { %1292 = vrsqrt.f32 %v79_v50  ;;  %v1272_v50 = vld [vmem:[%s1784_s1 + $0x1f4] ss:$24 sps:$4 sm:$0xff]  }
 0x132   :  { %v80_v58 = vadd.f32 1e-06, %v76_v53  ;;  %v1275_v53 = vld [vmem:[%s1784_s1 + $0x224] ss:$24 sps:$4 sm:$0xff]  }
 0x134   :  { %1294 = vrsqrt.f32 %v80_v58  ;;  %v1273_v58 = vld [vmem:[%s1784_s1 + $0x220] ss:$24 sps:$4 sm:$0xff]  }
 0x136   :  { %v1289_v62 = vpop.eup %1288 }
 0x137   :  { %v86_v1 = vmul.f32 %v1289_v62, %v1492_v55  ;;  %v85_v11 = vmul.f32 %v1289_v62, %v1489_v54  ;;  %v1276_v62 = vld [vmem:[%s1784_s1 + $0x250] ss:$24 sps:$4 sm:$0xff]  }
 0x139   :  { %v106_v13 = vmul.f32 %v102_v63, %v86_v1  ;;  %v105_v6 = vmul.f32 %v98_v0, %v85_v11  ;;  %v1284_v1 = vld [vmem:[%s1784_s1 + $0x2b4] ss:$24 sps:$4 sm:$0xff]   ;;  %v1287_v11 = vld [vmem:[%s1784_s1 + $0x2e4] ss:$24 sps:$4 sm:$0xff]  }
 0x13a   :  { %v1291_v12 = vpop.eup %1290 }
 0x13b   :  { %v1293_v8 = vpop.eup %1292  ;;  %v88_v9 = vmul.f32 %v1291_v12, %v1512_v3  ;;  %v87_v15 = vmul.f32 %v1291_v12, %v1509_v2  ;;  %v126_v19 = vadd.f32 %v122_v5, %v106_v13  ;;  %v125_v20 = vadd.f32 %v118_v14, %v105_v6  ;;  %v1240_v2 = vld [vmem:[%s1784_s1 + $0x10] ss:$24 sps:$4 sm:$0xff]   ;;  %v1285_v12 = vld [vmem:[%s1784_s1 + $0x2e0] ss:$24 sps:$4 sm:$0xff]  }
 0x13c   :  { %v90_v55 = vmul.f32 %v1293_v8, %v1498_v57  ;;  %v89_v25 = vmul.f32 %v1293_v8, %v1495_v56  ;;  %v245_v13 = vsub.s32 2, %v1609_v51  ;;  %v249_v6 = vsub.s32 3, %v1609_v51 }
 0x13d   :  { %v108_v16 = vmul.f32 %v102_v63, %v88_v9  ;;  %v107_v17 = vmul.f32 %v98_v0, %v87_v15 }
 0x13e   :  { %v1295_v18 = vpop.eup %1294  ;;  %v110_v54 = vmul.f32 %v102_v63, %v90_v55  ;;  %v109_v56 = vmul.f32 %v98_v0, %v89_v25 }
 0x13f   :  { %v128_v21 = vadd.f32 %v122_v5, %v108_v16  ;;  %v127_v22 = vadd.f32 %v118_v14, %v107_v17  ;;  %v92_v23 = vmul.f32 %v1295_v18, %v1518_v10  ;;  %v91_v24 = vmul.f32 %v1295_v18, %v1515_v7 }
 0x140   :  { %v130_v10 = vadd.f32 %v122_v5, %v110_v54  ;;  %v129_v33 = vadd.f32 %v118_v14, %v109_v56 }
 0x141   :  { %v134_v26 = vpack.c.bf16 %v128_v21, %v126_v19  ;;  %v1638_v57 = vpack.c.bf16 %v127_v22, %v125_v20  ;;  %v112_v3 = vmul.f32 %v102_v63, %v92_v23  ;;  %v111_v28 = vmul.f32 %v98_v0, %v91_v24  ;;  %v1281_v63 = vld [vmem:[%s1784_s1 + $0x284] ss:$24 sps:$4 sm:$0xff]   ;;  %v1279_v0 = vld [vmem:[%s1784_s1 + $0x280] ss:$24 sps:$4 sm:$0xff]  }
 0x143   :  { %777 = vmatprep.mubr.bf16.mxu0 %v134_v26  ;;  %830 = vmatprep.mubr.bf16.mxu1 %v134_v26  ;;  %v132_v29 = vadd.f32 %v122_v5, %v112_v3  ;;  %v131_v32 = vadd.f32 %v118_v14, %v111_v28  ;;  %v233_v5 = vld [vmem:[%s1787_s2] sm:$0x3f] }
 0x144   :  { %778 = vmatmul.mubr.bf16.vlgmr.msra.gmra.mrb[0].mxu0 %v1638_v57  ;;  %831 = vmatmul.mubr.bf16.vlgmr.msra.gmra.mrb[0].mxu1 %v1638_v57  ;;  %v238_v14 = vrot.slane %v233_v5, %v1615_v60  ;;  %v246_v8 = vrot.slane %v233_v5, %v245_v13  ;;  %v242_v9 = vrot.slane %v233_v5, %v1612_v59 }
 0x145   :  { %852 = vmatpush1.bf16.msra.mxu0 %v1240_v2  ;;  %1128 = vmatpush1.bf16.msra.mxu1 %v1240_v2  ;;  %v136_v7 = vpack.c.bf16 %v132_v29, %v130_v10  ;;  %v1654_v35 = vpack.c.bf16 %v131_v32, %v129_v33  ;;  %v250_v15 = vrot.slane %v233_v5, %v249_v6 }
 0x146   :  { %853 = vmatprep.subr.bf16.mxu0 %v1245_v27  ;;  %1113 = vmatprep.subr.bf16.mxu1 %v1245_v27 }
 0x147   :  { %787 = vmatprep.mubr.bf16.mxu0 %v136_v7  ;;  %840 = vmatprep.mubr.bf16.mxu1 %v136_v7 }
 0x149   :  { %854 = vmatpush1.bf16.msra.mxu0 %v1243_v30  ;;  %1129 = vmatpush1.bf16.msra.mxu1 %v1243_v30 }
 0x14a   :  { %855 = vmatprep.subr.bf16.mxu0 %v1248_v31  ;;  %1114 = vmatprep.subr.bf16.mxu1 %v1248_v31 }
 0x14c   :  { %788 = vmatmul.mubr.bf16.gmra.mrb[4].mxu0 %v1654_v35  ;;  %841 = vmatmul.mubr.bf16.gmra.mrb[4].mxu1 %v1654_v35 }
 0x14d   :  { %856 = vmatpush1.bf16.msra.mxu0 %v1246_v34  ;;  %1130 = vmatpush1.bf16.msra.mxu1 %v1246_v34 }
 0x14e   :  { %883 = vmatprep.mubr.bf16.mxu0 %v134_v26  ;;  %893 = vmatprep.mubr.bf16.mxu1 %v136_v7 }
 0x14f   :  { %857 = vmatprep.subr.bf16.mxu0 %v1251_v36  ;;  %1115 = vmatprep.subr.bf16.mxu1 %v1251_v36 }
 0x151   :  { %858 = vmatpush1.bf16.msra.mxu0 %v1249_v37  ;;  %1131 = vmatpush1.bf16.msra.mxu1 %v1249_v37 }
 0x152   :  { %859 = vmatprep.subr.bf16.mxu0 %v1254_v38  ;;  %1116 = vmatprep.subr.bf16.mxu1 %v1254_v38 }
 0x155   :  { %860 = vmatpush1.bf16.msra.mxu0 %v1252_v39  ;;  %1132 = vmatpush1.bf16.msra.mxu1 %v1252_v39 }
 0x156   :  { %861 = vmatprep.subr.bf16.mxu0 %v1257_v40  ;;  %1117 = vmatprep.subr.bf16.mxu1 %v1257_v40 }
 0x159   :  { %862 = vmatpush1.bf16.msra.mxu0 %v1255_v41  ;;  %1133 = vmatpush1.bf16.msra.mxu1 %v1255_v41 }
 0x15a   :  { %863 = vmatprep.subr.bf16.mxu0 %v1260_v42  ;;  %1118 = vmatprep.subr.bf16.mxu1 %v1260_v42 }
 0x15d   :  { %864 = vmatpush1.bf16.msra.mxu0 %v1258_v43  ;;  %1134 = vmatpush1.bf16.msra.mxu1 %v1258_v43 }
 0x15e   :  { %865 = vmatprep.subr.bf16.mxu0 %v1263_v44  ;;  %1119 = vmatprep.subr.bf16.mxu1 %v1263_v44 }
 0x161   :  { %866 = vmatpush1.bf16.msra.mxu0 %v1261_v45  ;;  %1135 = vmatpush1.bf16.msra.mxu1 %v1261_v45 }
 0x162   :  { %867 = vmatprep.subr.bf16.mxu0 %v1266_v46  ;;  %1120 = vmatprep.subr.bf16.mxu1 %v1266_v46  ;;  %v253_v46 = vsub.s32 4, %v1609_v51 }
 0x165   :  { %868 = vmatpush1.bf16.msra.mxu0 %v1264_v47  ;;  %1136 = vmatpush1.bf16.msra.mxu1 %v1264_v47  ;;  %v257_v47 = vsub.s32 5, %v1609_v51 }
 0x166   :  { %869 = vmatprep.subr.bf16.mxu0 %v1269_v48  ;;  %1121 = vmatprep.subr.bf16.mxu1 %v1269_v48  ;;  %v254_v48 = vrot.slane %v233_v5, %v253_v46 }
 0x169   :  { %870 = vmatpush1.bf16.msra.mxu0 %v1267_v49  ;;  %1137 = vmatpush1.bf16.msra.mxu1 %v1267_v49  ;;  %v258_v49 = vrot.slane %v233_v5, %v257_v47 }
 0x16a   :  { %871 = vmatprep.subr.bf16.mxu0 %v1272_v50  ;;  %1122 = vmatprep.subr.bf16.mxu1 %v1272_v50 }
 0x16d   :  { %872 = vmatpush1.bf16.msra.mxu0 %v1270_v52  ;;  %1138 = vmatpush1.bf16.msra.mxu1 %v1270_v52 }
 0x16e   :  { %873 = vmatprep.subr.bf16.mxu0 %v1275_v53  ;;  %1123 = vmatprep.subr.bf16.mxu1 %v1275_v53 }
 0x171   :  { %874 = vmatpush1.bf16.msra.mxu0 %v1273_v58  ;;  %1139 = vmatpush1.bf16.msra.mxu1 %v1273_v58 }
 0x172   :  { %875 = vmatprep.subr.bf16.mxu0 %v1278_v61  ;;  %1124 = vmatprep.subr.bf16.mxu1 %v1278_v61 }
 0x175   :  { %876 = vmatpush1.bf16.msra.mxu0 %v1276_v62  ;;  %1140 = vmatpush1.bf16.msra.mxu1 %v1276_v62 }
 0x176   :  { %877 = vmatprep.subr.bf16.mxu0 %v1281_v63  ;;  %1125 = vmatprep.subr.bf16.mxu1 %v1281_v63 }
 0x179   :  { %878 = vmatpush1.bf16.msra.mxu0 %v1279_v0  ;;  %1141 = vmatpush1.bf16.msra.mxu1 %v1279_v0 }
 0x17a   :  { %879 = vmatprep.subr.bf16.mxu0 %v1284_v1  ;;  %1126 = vmatprep.subr.bf16.mxu1 %v1284_v1 }
 0x17d   :  { %880 = vmatpush1.bf16.msra.mxu0 %v1282_v4  ;;  %1142 = vmatpush1.bf16.msra.mxu1 %v1282_v4 }
 0x17e   :  { %881 = vmatprep.subr.bf16.mxu0 %v1287_v11  ;;  %1127 = vmatprep.subr.bf16.mxu1 %v1287_v11 }
 0x181   :  { %882 = vmatpush1.bf16.msra.mxu0 %v1285_v12  ;;  %1143 = vmatpush1.bf16.msra.mxu1 %v1285_v12 }
 0x184   :  { %884 = vmatmul.mubr.bf16.vlgmr.msra.gmra.mrb[8].mxu0 %v1638_v57  ;;  %894 = vmatmul.mubr.bf16.vlgmr.msra.gmra.mrb[8].mxu1 %v1654_v35 }
 0x217   :  { %v779_v55 = vpop.f32.mrb[0].mxu0  ;;  %v832_v16 = vpop.f32.mrb[0].mxu1 }
 0x218   :  { %v780_v17 = vadd.f32 %v779_v55, %v238_v14  ;;  %v833_v18 = vadd.f32 %v832_v16, %v246_v8  ;;  %v781_v19 = vpop.f32.mrb[1].mxu0  ;;  %v834_v20 = vpop.f32.mrb[1].mxu1 }
 0x219   :  { %v782_v54 = vadd.f32 %v781_v19, %v242_v9  ;;  %v835_v21 = vadd.f32 %v834_v20, %v250_v15  ;;  %v783_v22 = vpop.f32.mrb[2].mxu0  ;;  %v836_v23 = vpop.f32.mrb[2].mxu1 }
 0x21a   :  { %v784_v24 = vadd.f32 %v783_v22, %v238_v14  ;;  %v837_v25 = vadd.f32 %v836_v23, %v246_v8  ;;  %v785_v26 = vpop.f32.mrb[3].mxu0  ;;  %v838_v2 = vpop.f32.mrb[3].mxu1 }
 0x21b   :  { %v1100_v57 = vpack.c.bf16 %v782_v54, %v780_v17  ;;  %v1101_v60 = vpack.c.bf16 %v835_v21, %v833_v18  ;;  %v786_v3 = vadd.f32 %v785_v26, %v242_v9  ;;  %v839_v27 = vadd.f32 %v838_v2, %v250_v15 }
 0x21d   :  { %976 = vst [vmem:[%s1788_s5] sm:$0xff] %v1100_v57  ;;  %977 = vst [vmem:[%s1788_s5 + $0x8] sm:$0xff] %v1101_v60  ;;  %v1103_v59 = vpack.c.bf16 %v786_v3, %v784_v24  ;;  %v1104_v28 = vpack.c.bf16 %v839_v27, %v837_v25 }
 0x21f   :  { %979 = vst [vmem:[%s1788_s5 + $0x18] sm:$0xff] %v1103_v59  ;;  %980 = vst [vmem:[%s1788_s5 + $0x20] sm:$0xff] %v1104_v28  ;;  %v789_v10 = vpop.f32.mrb[4].mxu0  ;;  %v842_v29 = vpop.f32.mrb[4].mxu1 }
 0x220   :  { %v790_v56 = vadd.f32 %v789_v10, %v238_v14  ;;  %v843_v7 = vadd.f32 %v842_v29, %v246_v8  ;;  %v791_v30 = vpop.f32.mrb[5].mxu0  ;;  %v844_v31 = vpop.f32.mrb[5].mxu1 }
 0x221   :  { %v792_v32 = vadd.f32 %v791_v30, %v242_v9  ;;  %v845_v33 = vadd.f32 %v844_v31, %v250_v15  ;;  %v793_v34 = vpop.f32.mrb[6].mxu0  ;;  %v846_v35 = vpop.f32.mrb[6].mxu1 }
 0x222   :  { %v794_v36 = vadd.f32 %v793_v34, %v238_v14  ;;  %v847_v37 = vadd.f32 %v846_v35, %v246_v8  ;;  %v795_v38 = vpop.f32.mrb[7].mxu0  ;;  %v848_v39 = vpop.f32.mrb[7].mxu1 }
 0x223   :  { %v1106_v40 = vpack.c.bf16 %v792_v32, %v790_v56  ;;  %v1107_v41 = vpack.c.bf16 %v845_v33, %v843_v7  ;;  %v796_v42 = vadd.f32 %v795_v38, %v242_v9  ;;  %v849_v43 = vadd.f32 %v848_v39, %v250_v15 }
 0x225   :  { %982 = vst [vmem:[%s1788_s5 + $0x30] sm:$0xff] %v1106_v40  ;;  %983 = vst [vmem:[%s1788_s5 + $0x38] sm:$0xff] %v1107_v41  ;;  %v1109_v44 = vpack.c.bf16 %v796_v42, %v794_v36  ;;  %v1110_v45 = vpack.c.bf16 %v849_v43, %v847_v37 }
 0x227   :  { %985 = vst [vmem:[%s1788_s5 + $0x48] sm:$0xff] %v1109_v44  ;;  %986 = vst [vmem:[%s1788_s5 + $0x50] sm:$0xff] %v1110_v45 }
 0x257   :  { %v885_v50 = vpop.f32.mrb[8].mxu0  ;;  %v895_v52 = vpop.f32.mrb[8].mxu1 }
 0x258   :  { %v886_v53 = vadd.f32 %v885_v50, %v254_v48  ;;  %v896_v58 = vadd.f32 %v895_v52, %v254_v48  ;;  %v887_v61 = vpop.f32.mrb[9].mxu0  ;;  %v897_v62 = vpop.f32.mrb[9].mxu1 }
 0x259   :  { %v888_v63 = vadd.f32 %v887_v61, %v258_v49  ;;  %v898_v0 = vadd.f32 %v897_v62, %v258_v49  ;;  %v889_v1 = vpop.f32.mrb[10].mxu0  ;;  %v899_v4 = vpop.f32.mrb[10].mxu1 }
 0x25a   :  { %v890_v11 = vadd.f32 %v889_v1, %v254_v48  ;;  %v900_v12 = vadd.f32 %v899_v4, %v254_v48  ;;  %v891_v13 = vpop.f32.mrb[11].mxu0  ;;  %v901_v6 = vpop.f32.mrb[11].mxu1 }
 0x25b   :  { %v1102_v14 = vpack.c.bf16 %v888_v63, %v886_v53  ;;  %v1108_v8 = vpack.c.bf16 %v898_v0, %v896_v58  ;;  %v892_v9 = vadd.f32 %v891_v13, %v258_v49  ;;  %v902_v51 = vadd.f32 %v901_v6, %v258_v49 }
 0x25d   :  { %978 = vst [vmem:[%s1788_s5 + $0x10] sm:$0xff] %v1102_v14  ;;  %984 = vst [vmem:[%s1788_s5 + $0x40] sm:$0xff] %v1108_v8  ;;  %v1105_v5 = vpack.c.bf16 %v892_v9, %v890_v11  ;;  %v1111_v15 = vpack.c.bf16 %v902_v51, %v900_v12 }
 0x25f   :  { %981 = vst [vmem:[%s1788_s5 + $0x28] sm:$0xff] %v1105_v5  ;;  %987 = vst [vmem:[%s1788_s5 + $0x58] sm:$0xff] %v1111_v15 }

// kernel: vit_backbone_forward.17
= control target key start
LH: loop header
LB: loop body
LE: loop exit
PB: predicated region body
PF: predicated region fallthrough
CT: control target
= control target key end

     0   :  { %s1083_s1 = inlined_call_operand.vmem [shape: bf16[512,256], index: 1, kind: input, shape index: {}]   ;;  %s1084_s0 = inlined_call_operand.vmem [shape: bf16[32,512], index: 0, kind: input, shape index: {}]   ;;  %s1085_s2 = inlined_call_operand.vmem [shape: f32[1,256], index: 2, kind: input, shape index: {}]   ;;  %s1086_s3 = inlined_call_operand.vmem [shape: f32[32,256], index: 3, kind: input, shape index: {}]   ;;  %s1087_s4 = inlined_call_operand.vmem [shape: f32[32,256], index: 4, kind: output, shape index: {}]  }
   0x1   :  { %v683_v0 = vld [vmem:[%s1083_s1 + $0x4] ss:$8 sps:$4 sm:$0xff]   ;;  %v687_v2 = vld [vmem:[%s1083_s1] ss:$8 sps:$4 sm:$0xff]   ;;  %v689_v4 = vld [vmem:[%s1083_s1 + $0x14] ss:$8 sps:$4 sm:$0xff]  }
   0x2   :  { %v685_v1 = vld [vmem:[%s1083_s1 + $0x104] ss:$8 sps:$4 sm:$0xff]   ;;  %461 = vmatprep.subr.bf16.mxu1 %v683_v0  ;;  %v688_v3 = vld [vmem:[%s1083_s1 + $0x100] ss:$8 sps:$4 sm:$0xff]   ;;  %v691_v5 = vld [vmem:[%s1083_s1 + $0x114] ss:$8 sps:$4 sm:$0xff]  }
   0x3   :  { %514 = vmatprep.subr.bf16.mxu0 %v685_v1  ;;  %462 = vmatpush1.bf16.msra.mxu1 %v687_v2  ;;  %v693_v6 = vld [vmem:[%s1083_s1 + $0x10] ss:$8 sps:$4 sm:$0xff]   ;;  %v695_v8 = vld [vmem:[%s1083_s1 + $0x24] ss:$8 sps:$4 sm:$0xff]   ;;  %v699_v10 = vld [vmem:[%s1083_s1 + $0x20] ss:$8 sps:$4 sm:$0xff]  }
   0x4   :  { %515 = vmatpush1.bf16.msra.mxu0 %v688_v3  ;;  %463 = vmatprep.subr.bf16.mxu1 %v689_v4  ;;  %v694_v7 = vld [vmem:[%s1083_s1 + $0x110] ss:$8 sps:$4 sm:$0xff]   ;;  %v697_v9 = vld [vmem:[%s1083_s1 + $0x124] ss:$8 sps:$4 sm:$0xff]   ;;  %v700_v11 = vld [vmem:[%s1083_s1 + $0x120] ss:$8 sps:$4 sm:$0xff]  }
   0x5   :  { %516 = vmatprep.subr.bf16.mxu0 %v691_v5  ;;  %v701_v12 = vld [vmem:[%s1083_s1 + $0x34] ss:$8 sps:$4 sm:$0xff]   ;;  %v705_v14 = vld [vmem:[%s1083_s1 + $0x30] ss:$8 sps:$4 sm:$0xff]   ;;  %v707_v16 = vld [vmem:[%s1083_s1 + $0x44] ss:$8 sps:$4 sm:$0xff]  }
   0x6   :  { %v703_v13 = vld [vmem:[%s1083_s1 + $0x134] ss:$8 sps:$4 sm:$0xff]   ;;  %v706_v15 = vld [vmem:[%s1083_s1 + $0x130] ss:$8 sps:$4 sm:$0xff]   ;;  %v709_v17 = vld [vmem:[%s1083_s1 + $0x144] ss:$8 sps:$4 sm:$0xff]  }
   0x7   :  { %464 = vmatpush1.bf16.msra.mxu1 %v693_v6  ;;  %v711_v18 = vld [vmem:[%s1083_s1 + $0x40] ss:$8 sps:$4 sm:$0xff]   ;;  %v713_v20 = vld [vmem:[%s1083_s1 + $0x54] ss:$8 sps:$4 sm:$0xff]   ;;  %v717_v22 = vld [vmem:[%s1083_s1 + $0x50] ss:$8 sps:$4 sm:$0xff]  }
   0x8   :  { %517 = vmatpush1.bf16.msra.mxu0 %v694_v7  ;;  %465 = vmatprep.subr.bf16.mxu1 %v695_v8  ;;  %v712_v19 = vld [vmem:[%s1083_s1 + $0x140] ss:$8 sps:$4 sm:$0xff]   ;;  %v715_v21 = vld [vmem:[%s1083_s1 + $0x154] ss:$8 sps:$4 sm:$0xff]   ;;  %v718_v23 = vld [vmem:[%s1083_s1 + $0x150] ss:$8 sps:$4 sm:$0xff]   ;;  %v91_v8 = vlaneseq }
   0x9   :  { %518 = vmatprep.subr.bf16.mxu0 %v697_v9  ;;  %v719_v24 = vld [vmem:[%s1083_s1 + $0x64] ss:$8 sps:$4 sm:$0xff]   ;;  %v723_v26 = vld [vmem:[%s1083_s1 + $0x60] ss:$8 sps:$4 sm:$0xff]   ;;  %v725_v28 = vld [vmem:[%s1083_s1 + $0x74] ss:$8 sps:$4 sm:$0xff]  }
   0xa   :  { %v721_v25 = vld [vmem:[%s1083_s1 + $0x164] ss:$8 sps:$4 sm:$0xff]   ;;  %v724_v27 = vld [vmem:[%s1083_s1 + $0x160] ss:$8 sps:$4 sm:$0xff]   ;;  %v727_v29 = vld [vmem:[%s1083_s1 + $0x174] ss:$8 sps:$4 sm:$0xff]  }
   0xb   :  { %466 = vmatpush1.bf16.msra.mxu1 %v699_v10  ;;  %v729_v30 = vld [vmem:[%s1083_s1 + $0x70] ss:$8 sps:$4 sm:$0xff]   ;;  %v731_v32 = vld [vmem:[%s1083_s1 + $0x84] ss:$8 sps:$4 sm:$0xff]   ;;  %v735_v34 = vld [vmem:[%s1083_s1 + $0x80] ss:$8 sps:$4 sm:$0xff]  }
   0xc   :  { %519 = vmatpush1.bf16.msra.mxu0 %v700_v11  ;;  %467 = vmatprep.subr.bf16.mxu1 %v701_v12  ;;  %v730_v31 = vld [vmem:[%s1083_s1 + $0x170] ss:$8 sps:$4 sm:$0xff]   ;;  %v733_v33 = vld [vmem:[%s1083_s1 + $0x184] ss:$8 sps:$4 sm:$0xff]   ;;  %v736_v35 = vld [vmem:[%s1083_s1 + $0x180] ss:$8 sps:$4 sm:$0xff]  }
   0xd   :  { %520 = vmatprep.subr.bf16.mxu0 %v703_v13  ;;  %v737_v36 = vld [vmem:[%s1083_s1 + $0x94] ss:$8 sps:$4 sm:$0xff]   ;;  %v741_v38 = vld [vmem:[%s1083_s1 + $0x90] ss:$8 sps:$4 sm:$0xff]   ;;  %v743_v40 = vld [vmem:[%s1083_s1 + $0xa4] ss:$8 sps:$4 sm:$0xff]  }
   0xe   :  { %v739_v37 = vld [vmem:[%s1083_s1 + $0x194] ss:$8 sps:$4 sm:$0xff]   ;;  %v742_v39 = vld [vmem:[%s1083_s1 + $0x190] ss:$8 sps:$4 sm:$0xff]   ;;  %v745_v41 = vld [vmem:[%s1083_s1 + $0x1a4] ss:$8 sps:$4 sm:$0xff]  }
   0xf   :  { %468 = vmatpush1.bf16.msra.mxu1 %v705_v14  ;;  %v747_v42 = vld [vmem:[%s1083_s1 + $0xa0] ss:$8 sps:$4 sm:$0xff]   ;;  %v749_v44 = vld [vmem:[%s1083_s1 + $0xb4] ss:$8 sps:$4 sm:$0xff]   ;;  %v753_v46 = vld [vmem:[%s1083_s1 + $0xb0] ss:$8 sps:$4 sm:$0xff]  }
  0x10   :  { %521 = vmatpush1.bf16.msra.mxu0 %v706_v15  ;;  %469 = vmatprep.subr.bf16.mxu1 %v707_v16  ;;  %v748_v43 = vld [vmem:[%s1083_s1 + $0x1a0] ss:$8 sps:$4 sm:$0xff]   ;;  %v751_v45 = vld [vmem:[%s1083_s1 + $0x1b4] ss:$8 sps:$4 sm:$0xff]   ;;  %v754_v47 = vld [vmem:[%s1083_s1 + $0x1b0] ss:$8 sps:$4 sm:$0xff]  }
  0x11   :  { %522 = vmatprep.subr.bf16.mxu0 %v709_v17  ;;  %v755_v48 = vld [vmem:[%s1083_s1 + $0xc4] ss:$8 sps:$4 sm:$0xff]   ;;  %v759_v52 = vld [vmem:[%s1083_s1 + $0xc0] ss:$8 sps:$4 sm:$0xff]   ;;  %v761_v54 = vld [vmem:[%s1083_s1 + $0xd4] ss:$8 sps:$4 sm:$0xff]  }
  0x12   :  { %v781_v49 = vld [vmem:[%s1084_s0 + $0x4] ss:$16 sps:$4 sm:$0xff]   ;;  %v784_v51 = vld [vmem:[%s1084_s0 + $0xc] ss:$16 sps:$4 sm:$0xff]   ;;  %v760_v53 = vld [vmem:[%s1083_s1 + $0x1c0] ss:$8 sps:$4 sm:$0xff]  }
  0x13   :  { %470 = vmatpush1.bf16.msra.mxu1 %v711_v18  ;;  %v757_v50 = vld [vmem:[%s1083_s1 + $0x1c4] ss:$8 sps:$4 sm:$0xff]   ;;  %493 = vmatprep.mubr.bf16.mxu1 %v781_v49  ;;  %v763_v55 = vld [vmem:[%s1083_s1 + $0x1d4] ss:$8 sps:$4 sm:$0xff]   ;;  %v765_v56 = vld [vmem:[%s1083_s1 + $0xd0] ss:$8 sps:$4 sm:$0xff]  }
  0x14   :  { %523 = vmatpush1.bf16.msra.mxu0 %v712_v19  ;;  %471 = vmatprep.subr.bf16.mxu1 %v713_v20  ;;  %v766_v57 = vld [vmem:[%s1083_s1 + $0x1d0] ss:$8 sps:$4 sm:$0xff]   ;;  %v767_v58 = vld [vmem:[%s1083_s1 + $0xe4] ss:$8 sps:$4 sm:$0xff]   ;;  %v771_v60 = vld [vmem:[%s1083_s1 + $0xe0] ss:$8 sps:$4 sm:$0xff]  }
  0x15   :  { %524 = vmatprep.subr.bf16.mxu0 %v715_v21  ;;  %546 = vmatprep.mubr.bf16.mxu0 %v784_v51  ;;  %v769_v59 = vld [vmem:[%s1083_s1 + $0x1e4] ss:$8 sps:$4 sm:$0xff]   ;;  %v772_v61 = vld [vmem:[%s1083_s1 + $0x1e0] ss:$8 sps:$4 sm:$0xff]   ;;  %v773_v62 = vld [vmem:[%s1083_s1 + $0xf4] ss:$8 sps:$4 sm:$0xff]  }
  0x16   :  { %v775_v63 = vld [vmem:[%s1083_s1 + $0x1f4] ss:$8 sps:$4 sm:$0xff]   ;;  %v777_v0 = vld [vmem:[%s1083_s1 + $0xf0] ss:$8 sps:$4 sm:$0xff]   ;;  %v92_v9 = vshrl.u32 %v91_v8, 7  ;;  %v567_v20 = vld [vmem:[%s1086_s3] sm:$0xff] }
  0x17   :  { %472 = vmatpush1.bf16.msra.mxu1 %v717_v22  ;;  %v778_v1 = vld [vmem:[%s1083_s1 + $0x1f0] ss:$8 sps:$4 sm:$0xff]   ;;  %v785_v4 = vld [vmem:[%s1084_s0 + $0x24] ss:$16 sps:$4 sm:$0xff]   ;;  %v787_v5 = vld [vmem:[%s1084_s0 + $0x2c] ss:$16 sps:$4 sm:$0xff]  }
  0x18   :  { %525 = vmatpush1.bf16.msra.mxu0 %v718_v23  ;;  %473 = vmatprep.subr.bf16.mxu1 %v719_v24  ;;  %v779_v2 = vld [vmem:[%s1084_s0] ss:$16 sps:$4 sm:$0xff]   ;;  %v782_v3 = vld [vmem:[%s1084_s0 + $0x8] ss:$16 sps:$4 sm:$0xff]   ;;  %v93_v10 = vsub.s32 0, %v92_v9  ;;  %v97_v12 = vsub.s32 1, %v92_v9 }
  0x19   :  { %526 = vmatprep.subr.bf16.mxu0 %v721_v25  ;;  %v789_v6 = vld [vmem:[%s1084_s0 + $0x20] ss:$16 sps:$4 sm:$0xff]   ;;  %v790_v7 = vld [vmem:[%s1084_s0 + $0x28] ss:$16 sps:$4 sm:$0xff]  }
  0x1a   :  { %v89_v11 = vld [vmem:[%s1085_s2] sm:$0x3]  ;;  %v568_v25 = vld [vmem:[%s1086_s3 + $0x8] sm:$0xff] }
  0x1b   :  { %474 = vmatpush1.bf16.msra.mxu1 %v723_v26  ;;  %v94_v13 = vrot.slane %v89_v11, %v93_v10  ;;  %v98_v14 = vrot.slane %v89_v11, %v97_v12  ;;  %v572_v49 = vld [vmem:[%s1086_s3 + $0x28] sm:$0xff] }
  0x1c   :  { %527 = vmatpush1.bf16.msra.mxu0 %v724_v27  ;;  %475 = vmatprep.subr.bf16.mxu1 %v725_v28 }
  0x1d   :  { %528 = vmatprep.subr.bf16.mxu0 %v727_v29 }
  0x1f   :  { %476 = vmatpush1.bf16.msra.mxu1 %v729_v30  ;;  %v569_v30 = vld [vmem:[%s1086_s3 + $0x10] sm:$0xff] }
  0x20   :  { %529 = vmatpush1.bf16.msra.mxu0 %v730_v31  ;;  %477 = vmatprep.subr.bf16.mxu1 %v731_v32 }
  0x21   :  { %530 = vmatprep.subr.bf16.mxu0 %v733_v33 }
  0x23   :  { %478 = vmatpush1.bf16.msra.mxu1 %v735_v34  ;;  %v570_v34 = vld [vmem:[%s1086_s3 + $0x18] sm:$0xff] }
  0x24   :  { %531 = vmatpush1.bf16.msra.mxu0 %v736_v35  ;;  %479 = vmatprep.subr.bf16.mxu1 %v737_v36 }
  0x25   :  { %532 = vmatprep.subr.bf16.mxu0 %v739_v37 }
  0x27   :  { %480 = vmatpush1.bf16.msra.mxu1 %v741_v38 }
  0x28   :  { %533 = vmatpush1.bf16.msra.mxu0 %v742_v39  ;;  %481 = vmatprep.subr.bf16.mxu1 %v743_v40 }
  0x29   :  { %534 = vmatprep.subr.bf16.mxu0 %v745_v41 }
  0x2b   :  { %482 = vmatpush1.bf16.msra.mxu1 %v747_v42 }
  0x2c   :  { %535 = vmatpush1.bf16.msra.mxu0 %v748_v43  ;;  %483 = vmatprep.subr.bf16.mxu1 %v749_v44  ;;  %v571_v44 = vld [vmem:[%s1086_s3 + $0x20] sm:$0xff] }
  0x2d   :  { %536 = vmatprep.subr.bf16.mxu0 %v751_v45 }
  0x2f   :  { %484 = vmatpush1.bf16.msra.mxu1 %v753_v46 }
  0x30   :  { %537 = vmatpush1.bf16.msra.mxu0 %v754_v47  ;;  %485 = vmatprep.subr.bf16.mxu1 %v755_v48 }
  0x31   :  { %538 = vmatprep.subr.bf16.mxu0 %v757_v50 }
  0x33   :  { %486 = vmatpush1.bf16.msra.mxu1 %v759_v52 }
  0x34   :  { %539 = vmatpush1.bf16.msra.mxu0 %v760_v53  ;;  %487 = vmatprep.subr.bf16.mxu1 %v761_v54  ;;  %v573_v54 = vld [vmem:[%s1086_s3 + $0x30] sm:$0xff] }
  0x35   :  { %540 = vmatprep.subr.bf16.mxu0 %v763_v55 }
  0x37   :  { %488 = vmatpush1.bf16.msra.mxu1 %v765_v56 }
  0x38   :  { %541 = vmatpush1.bf16.msra.mxu0 %v766_v57  ;;  %489 = vmatprep.subr.bf16.mxu1 %v767_v58  ;;  %v574_v58 = vld [vmem:[%s1086_s3 + $0x38] sm:$0xff] }
  0x39   :  { %542 = vmatprep.subr.bf16.mxu0 %v769_v59 }
  0x3b   :  { %490 = vmatpush1.bf16.msra.mxu1 %v771_v60 }
  0x3c   :  { %543 = vmatpush1.bf16.msra.mxu0 %v772_v61  ;;  %491 = vmatprep.subr.bf16.mxu1 %v773_v62 }
  0x3d   :  { %544 = vmatprep.subr.bf16.mxu0 %v775_v63 }
  0x3f   :  { %492 = vmatpush1.bf16.msra.mxu1 %v777_v0 }
  0x40   :  { %545 = vmatpush1.bf16.msra.mxu0 %v778_v1 }
  0x42   :  { %494 = vmatmul.mubr.bf16.vlgmr.msra.gmra.mrb[0].mxu1 %v779_v2 }
  0x43   :  { %547 = vmatmul.mubr.bf16.vlgmr.msra.gmra.mrb[0].mxu0 %v782_v3  ;;  %503 = vmatprep.mubr.bf16.mxu1 %v785_v4 }
  0x44   :  { %556 = vmatprep.mubr.bf16.mxu0 %v787_v5 }
  0x4a   :  { %504 = vmatmul.mubr.bf16.gmra.mrb[4].mxu1 %v789_v6 }
  0x4b   :  { %557 = vmatmul.mubr.bf16.gmra.mrb[4].mxu0 %v790_v7 }
 0x115   :  { %v495_v15 = vpop.f32.mrb[0].mxu1 }
 0x116   :  { %v548_v16 = vpop.f32.mrb[0].mxu0  ;;  %v496_v17 = vadd.f32 %v495_v15, %v94_v13  ;;  %v497_v18 = vpop.f32.mrb[1].mxu1 }
 0x117   :  { %v550_v19 = vpop.f32.mrb[1].mxu0  ;;  %v498_v21 = vadd.f32 %v497_v18, %v98_v14  ;;  %v499_v22 = vpop.f32.mrb[2].mxu1 }
 0x118   :  { %v552_v23 = vpop.f32.mrb[2].mxu0  ;;  %v549_v24 = vadd.f32 %v548_v16, %v496_v17  ;;  %v500_v26 = vadd.f32 %v499_v22, %v94_v13  ;;  %v501_v27 = vpop.f32.mrb[3].mxu1 }
 0x119   :  { %v554_v28 = vpop.f32.mrb[3].mxu0  ;;  %v551_v29 = vadd.f32 %v550_v19, %v498_v21  ;;  %v502_v31 = vadd.f32 %v501_v27, %v98_v14 }
 0x11a   :  { %v575_v32 = vadd.f32 %v567_v20, %v549_v24  ;;  %v553_v33 = vadd.f32 %v552_v23, %v500_v26 }
 0x11b   :  { %v576_v35 = vadd.f32 %v568_v25, %v551_v29  ;;  %v555_v36 = vadd.f32 %v554_v28, %v502_v31 }
 0x11c   :  { %583 = vst [vmem:[%s1087_s4] sm:$0xff] %v575_v32  ;;  %v577_v37 = vadd.f32 %v569_v30, %v553_v33 }
 0x11d   :  { %584 = vst [vmem:[%s1087_s4 + $0x8] sm:$0xff] %v576_v35  ;;  %v578_v38 = vadd.f32 %v570_v34, %v555_v36  ;;  %v505_v39 = vpop.f32.mrb[4].mxu1 }
 0x11e   :  { %v558_v40 = vpop.f32.mrb[4].mxu0  ;;  %585 = vst [vmem:[%s1087_s4 + $0x10] sm:$0xff] %v577_v37  ;;  %v506_v41 = vadd.f32 %v505_v39, %v94_v13  ;;  %v507_v42 = vpop.f32.mrb[5].mxu1 }
 0x11f   :  { %v560_v43 = vpop.f32.mrb[5].mxu0  ;;  %586 = vst [vmem:[%s1087_s4 + $0x18] sm:$0xff] %v578_v38  ;;  %v508_v45 = vadd.f32 %v507_v42, %v98_v14  ;;  %v509_v46 = vpop.f32.mrb[6].mxu1 }
 0x120   :  { %v562_v47 = vpop.f32.mrb[6].mxu0  ;;  %v559_v48 = vadd.f32 %v558_v40, %v506_v41  ;;  %v510_v50 = vadd.f32 %v509_v46, %v94_v13  ;;  %v511_v51 = vpop.f32.mrb[7].mxu1 }
 0x121   :  { %v564_v52 = vpop.f32.mrb[7].mxu0  ;;  %v561_v53 = vadd.f32 %v560_v43, %v508_v45  ;;  %v512_v55 = vadd.f32 %v511_v51, %v98_v14 }
 0x122   :  { %v579_v56 = vadd.f32 %v571_v44, %v559_v48  ;;  %v563_v57 = vadd.f32 %v562_v47, %v510_v50 }
 0x123   :  { %v580_v59 = vadd.f32 %v572_v49, %v561_v53  ;;  %v565_v60 = vadd.f32 %v564_v52, %v512_v55 }
 0x124   :  { %587 = vst [vmem:[%s1087_s4 + $0x20] sm:$0xff] %v579_v56  ;;  %v581_v61 = vadd.f32 %v573_v54, %v563_v57 }
 0x125   :  { %588 = vst [vmem:[%s1087_s4 + $0x28] sm:$0xff] %v580_v59  ;;  %v582_v62 = vadd.f32 %v574_v58, %v565_v60 }
 0x126   :  { %589 = vst [vmem:[%s1087_s4 + $0x30] sm:$0xff] %v581_v61 }
 0x127   :  { %590 = vst [vmem:[%s1087_s4 + $0x38] sm:$0xff] %v582_v62 }

// kernel: vit_backbone_forward.16
= control target key start
LH: loop header
LB: loop body
LE: loop exit
PB: predicated region body
PF: predicated region fallthrough
CT: control target
= control target key end

     0   :  { %s1562_s0 = inlined_call_operand.vmem [shape: f32[32,256], index: 0, kind: input, shape index: {}]   ;;  %s1563_s1 = inlined_call_operand.vmem [shape: bf16[256,512], index: 1, kind: input, shape index: {}]   ;;  %s1564_s3 = inlined_call_operand.vmem [shape: f32[1,256], index: 3, kind: input, shape index: {}]   ;;  %s1565_s4 = inlined_call_operand.vmem [shape: f32[1,256], index: 4, kind: input, shape index: {}]   ;;  %s1566_s2 = inlined_call_operand.vmem [shape: f32[1,512], index: 2, kind: input, shape index: {}]   ;;  %s1567_s5 = inlined_call_operand.vmem [shape: bf16[32,512], index: 5, kind: output, shape index: {}]  }
   0x1   :  { %v1102_v0 = vld [vmem:[%s1562_s0] sm:$0xff]  ;;  %v1107_v1 = vld [vmem:[%s1562_s0 + $0x8] sm:$0xff]  ;;  %v1124_v5 = vld [vmem:[%s1562_s0 + $0x10] sm:$0xff] }
   0x2   :  { %v1112_v2 = vld [vmem:[%s1562_s0 + $0x20] sm:$0xff]  ;;  %v28_v3 = vadd.f32 %v1107_v1, %v1102_v0  ;;  %v1119_v4 = vld [vmem:[%s1562_s0 + $0x28] sm:$0xff]  ;;  %v1129_v6 = vld [vmem:[%s1562_s0 + $0x18] sm:$0xff] }
   0x3   :  { %v34_v7 = vadd.f32 %v1119_v4, %v1112_v2  ;;  %v1136_v8 = vld [vmem:[%s1562_s0 + $0x30] sm:$0xff]  ;;  %v1141_v9 = vld [vmem:[%s1562_s0 + $0x38] sm:$0xff]  ;;  %v31_v10 = vadd.f32 %v1129_v6, %v1124_v5 }
   0x4   :  { %29 = vadd.xlane.f32.xlu0 %v28_v3  ;;  %v37_v11 = vadd.f32 %v1141_v9, %v1136_v8  ;;  %v933_v12 = vld [vmem:[%s1563_s1 + $0x4] ss:$16 sps:$4 sm:$0xff]   ;;  %v935_v13 = vld [vmem:[%s1563_s1 + $0xc] ss:$16 sps:$4 sm:$0xff]   ;;  %v937_v14 = vld [vmem:[%s1563_s1] ss:$16 sps:$4 sm:$0xff]  }
   0x5   :  { %35 = vadd.xlane.f32.xlu1 %v34_v7  ;;  %543 = vmatprep.subr.bf16.mxu0 %v933_v12  ;;  %v938_v15 = vld [vmem:[%s1563_s1 + $0x8] ss:$16 sps:$4 sm:$0xff]   ;;  %v939_v16 = vld [vmem:[%s1563_s1 + $0x24] ss:$16 sps:$4 sm:$0xff]   ;;  %v941_v17 = vld [vmem:[%s1563_s1 + $0x2c] ss:$16 sps:$4 sm:$0xff]  }
   0x6   :  { %596 = vmatprep.subr.bf16.mxu1 %v935_v13  ;;  %544 = vmatpush1.bf16.msra.mxu0 %v937_v14  ;;  %v943_v18 = vld [vmem:[%s1563_s1 + $0x20] ss:$16 sps:$4 sm:$0xff]   ;;  %v944_v19 = vld [vmem:[%s1563_s1 + $0x28] ss:$16 sps:$4 sm:$0xff]   ;;  %v945_v20 = vld [vmem:[%s1563_s1 + $0x44] ss:$16 sps:$4 sm:$0xff]  }
   0x7   :  { %597 = vmatpush1.bf16.msra.mxu1 %v938_v15  ;;  %545 = vmatprep.subr.bf16.mxu0 %v939_v16  ;;  %v947_v21 = vld [vmem:[%s1563_s1 + $0x4c] ss:$16 sps:$4 sm:$0xff]   ;;  %v949_v22 = vld [vmem:[%s1563_s1 + $0x40] ss:$16 sps:$4 sm:$0xff]   ;;  %v950_v23 = vld [vmem:[%s1563_s1 + $0x48] ss:$16 sps:$4 sm:$0xff]  }
   0x8   :  { %32 = vadd.xlane.f32.xlu0 %v31_v10  ;;  %598 = vmatprep.subr.bf16.mxu1 %v941_v17  ;;  %v951_v24 = vld [vmem:[%s1563_s1 + $0x64] ss:$16 sps:$4 sm:$0xff]   ;;  %v953_v25 = vld [vmem:[%s1563_s1 + $0x6c] ss:$16 sps:$4 sm:$0xff]   ;;  %v955_v26 = vld [vmem:[%s1563_s1 + $0x60] ss:$16 sps:$4 sm:$0xff]  }
   0x9   :  { %38 = vadd.xlane.f32.xlu1 %v37_v11  ;;  %v956_v27 = vld [vmem:[%s1563_s1 + $0x68] ss:$16 sps:$4 sm:$0xff]   ;;  %v957_v28 = vld [vmem:[%s1563_s1 + $0x84] ss:$16 sps:$4 sm:$0xff]   ;;  %v959_v29 = vld [vmem:[%s1563_s1 + $0x8c] ss:$16 sps:$4 sm:$0xff]  }
   0xa   :  { %546 = vmatpush1.bf16.msra.mxu0 %v943_v18  ;;  %v961_v30 = vld [vmem:[%s1563_s1 + $0x80] ss:$16 sps:$4 sm:$0xff]   ;;  %v962_v31 = vld [vmem:[%s1563_s1 + $0x88] ss:$16 sps:$4 sm:$0xff]   ;;  %v963_v32 = vld [vmem:[%s1563_s1 + $0xa4] ss:$16 sps:$4 sm:$0xff]  }
   0xb   :  { %599 = vmatpush1.bf16.msra.mxu1 %v944_v19  ;;  %547 = vmatprep.subr.bf16.mxu0 %v945_v20  ;;  %v965_v33 = vld [vmem:[%s1563_s1 + $0xac] ss:$16 sps:$4 sm:$0xff]   ;;  %v967_v34 = vld [vmem:[%s1563_s1 + $0xa0] ss:$16 sps:$4 sm:$0xff]   ;;  %v968_v35 = vld [vmem:[%s1563_s1 + $0xa8] ss:$16 sps:$4 sm:$0xff]  }
   0xc   :  { %600 = vmatprep.subr.bf16.mxu1 %v947_v21  ;;  %v969_v36 = vld [vmem:[%s1563_s1 + $0xc4] ss:$16 sps:$4 sm:$0xff]   ;;  %v971_v37 = vld [vmem:[%s1563_s1 + $0xcc] ss:$16 sps:$4 sm:$0xff]   ;;  %v973_v38 = vld [vmem:[%s1563_s1 + $0xc0] ss:$16 sps:$4 sm:$0xff]  }
   0xd   :  { %v974_v39 = vld [vmem:[%s1563_s1 + $0xc8] ss:$16 sps:$4 sm:$0xff]   ;;  %v975_v40 = vld [vmem:[%s1563_s1 + $0xe4] ss:$16 sps:$4 sm:$0xff]   ;;  %v977_v41 = vld [vmem:[%s1563_s1 + $0xec] ss:$16 sps:$4 sm:$0xff]  }
   0xe   :  { %548 = vmatpush1.bf16.msra.mxu0 %v949_v22  ;;  %v979_v42 = vld [vmem:[%s1563_s1 + $0xe0] ss:$16 sps:$4 sm:$0xff]   ;;  %v980_v43 = vld [vmem:[%s1563_s1 + $0xe8] ss:$16 sps:$4 sm:$0xff]   ;;  %v981_v44 = vld [vmem:[%s1563_s1 + $0x104] ss:$16 sps:$4 sm:$0xff]  }
   0xf   :  { %601 = vmatpush1.bf16.msra.mxu1 %v950_v23  ;;  %549 = vmatprep.subr.bf16.mxu0 %v951_v24  ;;  %v983_v45 = vld [vmem:[%s1563_s1 + $0x10c] ss:$16 sps:$4 sm:$0xff]   ;;  %v985_v46 = vld [vmem:[%s1563_s1 + $0x100] ss:$16 sps:$4 sm:$0xff]   ;;  %v986_v47 = vld [vmem:[%s1563_s1 + $0x108] ss:$16 sps:$4 sm:$0xff]  }
  0x10   :  { %602 = vmatprep.subr.bf16.mxu1 %v953_v25  ;;  %v989_v13 = vld [vmem:[%s1563_s1 + $0x12c] ss:$16 sps:$4 sm:$0xff]   ;;  %v991_v14 = vld [vmem:[%s1563_s1 + $0x120] ss:$16 sps:$4 sm:$0xff]   ;;  %v992_v15 = vld [vmem:[%s1563_s1 + $0x128] ss:$16 sps:$4 sm:$0xff]  }
  0x11   :  { %v993_v16 = vld [vmem:[%s1563_s1 + $0x144] ss:$16 sps:$4 sm:$0xff]   ;;  %v995_v17 = vld [vmem:[%s1563_s1 + $0x14c] ss:$16 sps:$4 sm:$0xff]   ;;  %v997_v18 = vld [vmem:[%s1563_s1 + $0x140] ss:$16 sps:$4 sm:$0xff]  }
  0x12   :  { %550 = vmatpush1.bf16.msra.mxu0 %v955_v26  ;;  %v998_v19 = vld [vmem:[%s1563_s1 + $0x148] ss:$16 sps:$4 sm:$0xff]   ;;  %v999_v20 = vld [vmem:[%s1563_s1 + $0x164] ss:$16 sps:$4 sm:$0xff]   ;;  %v1001_v21 = vld [vmem:[%s1563_s1 + $0x16c] ss:$16 sps:$4 sm:$0xff]  }
  0x13   :  { %603 = vmatpush1.bf16.msra.mxu1 %v956_v27  ;;  %551 = vmatprep.subr.bf16.mxu0 %v957_v28  ;;  %v1003_v22 = vld [vmem:[%s1563_s1 + $0x160] ss:$16 sps:$4 sm:$0xff]   ;;  %v1004_v23 = vld [vmem:[%s1563_s1 + $0x168] ss:$16 sps:$4 sm:$0xff]   ;;  %v1005_v24 = vld [vmem:[%s1563_s1 + $0x184] ss:$16 sps:$4 sm:$0xff]  }
  0x14   :  { %604 = vmatprep.subr.bf16.mxu1 %v959_v29  ;;  %v1007_v25 = vld [vmem:[%s1563_s1 + $0x18c] ss:$16 sps:$4 sm:$0xff]   ;;  %v1009_v26 = vld [vmem:[%s1563_s1 + $0x180] ss:$16 sps:$4 sm:$0xff]   ;;  %v1010_v27 = vld [vmem:[%s1563_s1 + $0x188] ss:$16 sps:$4 sm:$0xff]  }
  0x15   :  { %v1011_v28 = vld [vmem:[%s1563_s1 + $0x1a4] ss:$16 sps:$4 sm:$0xff]   ;;  %v1013_v29 = vld [vmem:[%s1563_s1 + $0x1ac] ss:$16 sps:$4 sm:$0xff]  }
  0x16   :  { %552 = vmatpush1.bf16.msra.mxu0 %v961_v30  ;;  %v1015_v30 = vld [vmem:[%s1563_s1 + $0x1a0] ss:$16 sps:$4 sm:$0xff]  }
  0x17   :  { %605 = vmatpush1.bf16.msra.mxu1 %v962_v31  ;;  %553 = vmatprep.subr.bf16.mxu0 %v963_v32  ;;  %v1016_v31 = vld [vmem:[%s1563_s1 + $0x1a8] ss:$16 sps:$4 sm:$0xff]   ;;  %v1017_v32 = vld [vmem:[%s1563_s1 + $0x1c4] ss:$16 sps:$4 sm:$0xff]  }
  0x18   :  { %606 = vmatprep.subr.bf16.mxu1 %v965_v33  ;;  %v1019_v33 = vld [vmem:[%s1563_s1 + $0x1cc] ss:$16 sps:$4 sm:$0xff]  }
  0x1a   :  { %554 = vmatpush1.bf16.msra.mxu0 %v967_v34  ;;  %v1021_v34 = vld [vmem:[%s1563_s1 + $0x1c0] ss:$16 sps:$4 sm:$0xff]  }
  0x1b   :  { %607 = vmatpush1.bf16.msra.mxu1 %v968_v35  ;;  %555 = vmatprep.subr.bf16.mxu0 %v969_v36  ;;  %v1022_v35 = vld [vmem:[%s1563_s1 + $0x1c8] ss:$16 sps:$4 sm:$0xff]   ;;  %v1023_v36 = vld [vmem:[%s1563_s1 + $0x1e4] ss:$16 sps:$4 sm:$0xff]  }
  0x1c   :  { %608 = vmatprep.subr.bf16.mxu1 %v971_v37  ;;  %v1025_v37 = vld [vmem:[%s1563_s1 + $0x1ec] ss:$16 sps:$4 sm:$0xff]  }
  0x1e   :  { %556 = vmatpush1.bf16.msra.mxu0 %v973_v38  ;;  %v1027_v38 = vld [vmem:[%s1563_s1 + $0x1e0] ss:$16 sps:$4 sm:$0xff]  }
  0x1f   :  { %609 = vmatpush1.bf16.msra.mxu1 %v974_v39  ;;  %557 = vmatprep.subr.bf16.mxu0 %v975_v40  ;;  %v1028_v39 = vld [vmem:[%s1563_s1 + $0x1e8] ss:$16 sps:$4 sm:$0xff]  }
  0x20   :  { %610 = vmatprep.subr.bf16.mxu1 %v977_v41 }
  0x22   :  { %558 = vmatpush1.bf16.msra.mxu0 %v979_v42 }
  0x23   :  { %611 = vmatpush1.bf16.msra.mxu1 %v980_v43  ;;  %559 = vmatprep.subr.bf16.mxu0 %v981_v44  ;;  %v95_v43 = vlaneseq }
  0x24   :  { %612 = vmatprep.subr.bf16.mxu1 %v983_v45 }
  0x26   :  { %560 = vmatpush1.bf16.msra.mxu0 %v985_v46 }
  0x27   :  { %613 = vmatpush1.bf16.msra.mxu1 %v986_v47 }
  0x28   :  { %614 = vmatprep.subr.bf16.mxu1 %v989_v13 }
  0x2b   :  { %615 = vmatpush1.bf16.msra.mxu1 %v992_v15 }
  0x2c   :  { %616 = vmatprep.subr.bf16.mxu1 %v995_v17 }
  0x2f   :  { %617 = vmatpush1.bf16.msra.mxu1 %v998_v19 }
  0x30   :  { %618 = vmatprep.subr.bf16.mxu1 %v1001_v21 }
  0x33   :  { %619 = vmatpush1.bf16.msra.mxu1 %v1004_v23 }
  0x34   :  { %620 = vmatprep.subr.bf16.mxu1 %v1007_v25 }
  0x37   :  { %621 = vmatpush1.bf16.msra.mxu1 %v1010_v27 }
  0x38   :  { %622 = vmatprep.subr.bf16.mxu1 %v1013_v29 }
  0x3b   :  { %623 = vmatpush1.bf16.msra.mxu1 %v1016_v31 }
  0x3c   :  { %624 = vmatprep.subr.bf16.mxu1 %v1019_v33 }
  0x3f   :  { %625 = vmatpush1.bf16.msra.mxu1 %v1022_v35 }
  0x40   :  { %626 = vmatprep.subr.bf16.mxu1 %v1025_v37 }
  0x43   :  { %627 = vmatpush1.bf16.msra.mxu1 %v1028_v39 }
  0x91   :  { %v30_v48 = vpop.xlane.xlu0 %29 }
  0x92   :  { %v41_v49 = vmul.f32 0.00390625, %v30_v48  ;;  %v36_v50 = vpop.xlane.xlu1 %35 }
  0x93   :  { %v43_v51 = vmul.f32 0.00390625, %v36_v50  ;;  %v1379_v50 = vshrl.u32 %v95_v43, 7 }
  0x94   :  { %v1256_v52 = vsub.f32 %v1102_v0, %v41_v49  ;;  %v1259_v53 = vsub.f32 %v1107_v1, %v41_v49 }
  0x95   :  { %v1262_v54 = vsub.f32 %v1112_v2, %v43_v51  ;;  %v1265_v55 = vsub.f32 %v1119_v4, %v43_v51  ;;  %v33_v56 = vpop.xlane.xlu0 %32 }
  0x96   :  { %v42_v57 = vmul.f32 0.00390625, %v33_v56  ;;  %v39_v58 = vpop.xlane.xlu1 %38  ;;  %v53_v59 = vmul.f32 %v1256_v52, %v1256_v52  ;;  %v54_v60 = vmul.f32 %v1259_v53, %v1259_v53 }
  0x97   :  { %v44_v61 = vmul.f32 0.00390625, %v39_v58  ;;  %v57_v62 = vmul.f32 %v1262_v54, %v1262_v54  ;;  %v58_v63 = vmul.f32 %v1265_v55, %v1265_v55  ;;  %v97_v58 = vsub.s32 0, %v1379_v50 }
  0x98   :  { %v1276_v0 = vsub.f32 %v1124_v5, %v42_v57  ;;  %v1279_v1 = vsub.f32 %v1129_v6, %v42_v57  ;;  %v61_v2 = vadd.f32 %v54_v60, %v53_v59  ;;  %v101_v59 = vsub.s32 1, %v1379_v50  ;;  %v93_v60 = vld [vmem:[%s1564_s3] sm:$0x3] }
  0x99   :  { %v1282_v3 = vsub.f32 %v1136_v8, %v44_v61  ;;  %v1285_v4 = vsub.f32 %v1141_v9, %v44_v61  ;;  %v67_v7 = vadd.f32 %v58_v63, %v57_v62  ;;  %v987_v9 = vld [vmem:[%s1563_s1 + $0x124] ss:$16 sps:$4 sm:$0xff]   ;;  %v98_v62 = vrot.slane %v93_v60, %v97_v58 }
  0x9a   :  { %62 = vadd.xlane.f32.xlu0 %v61_v2  ;;  %v55_v10 = vmul.f32 %v1276_v0, %v1276_v0  ;;  %v56_v11 = vmul.f32 %v1279_v1, %v1279_v1  ;;  %561 = vmatprep.subr.bf16.mxu0 %v987_v9  ;;  %v102_v63 = vrot.slane %v93_v60, %v101_v59 }
  0x9b   :  { %v59_v5 = vmul.f32 %v1282_v3, %v1282_v3  ;;  %v60_v6 = vmul.f32 %v1285_v4, %v1285_v4  ;;  %562 = vmatpush1.bf16.msra.mxu0 %v991_v14 }
  0x9c   :  { %v64_v12 = vadd.f32 %v56_v11, %v55_v10  ;;  %563 = vmatprep.subr.bf16.mxu0 %v993_v16 }
  0x9d   :  { %v70_v8 = vadd.f32 %v60_v6, %v59_v5 }
  0x9e   :  { %68 = vadd.xlane.f32.xlu0 %v67_v7  ;;  %65 = vadd.xlane.f32.xlu1 %v64_v12  ;;  %v113_v7 = vld [vmem:[%s1565_s4] sm:$0x3] }
  0x9f   :  { %564 = vmatpush1.bf16.msra.mxu0 %v997_v18  ;;  %v118_v6 = vrot.slane %v113_v7, %v97_v58  ;;  %v122_v12 = vrot.slane %v113_v7, %v101_v59 }
  0xa0   :  { %565 = vmatprep.subr.bf16.mxu0 %v999_v20 }
  0xa2   :  { %71 = vadd.xlane.f32.xlu1 %v70_v8 }
  0xa3   :  { %566 = vmatpush1.bf16.msra.mxu0 %v1003_v22 }
  0xa4   :  { %567 = vmatprep.subr.bf16.mxu0 %v1005_v24 }
  0xa7   :  { %568 = vmatpush1.bf16.msra.mxu0 %v1009_v26 }
  0xa8   :  { %569 = vmatprep.subr.bf16.mxu0 %v1011_v28 }
  0xab   :  { %570 = vmatpush1.bf16.msra.mxu0 %v1015_v30 }
  0xac   :  { %571 = vmatprep.subr.bf16.mxu0 %v1017_v32  ;;  %v217_v32 = vsub.s32 3, %v1379_v50 }
  0xaf   :  { %572 = vmatpush1.bf16.msra.mxu0 %v1021_v34 }
  0xb0   :  { %573 = vmatprep.subr.bf16.mxu0 %v1023_v36 }
  0xb3   :  { %574 = vmatpush1.bf16.msra.mxu0 %v1027_v38 }
 0x127   :  { %v63_v40 = vpop.xlane.xlu0 %62 }
 0x128   :  { %v73_v41 = vmul.f32 0.00390625, %v63_v40 }
 0x12a   :  { %v77_v42 = vadd.f32 1e-06, %v73_v41 }
 0x12b   :  { %v66_v44 = vpop.xlane.xlu1 %65  ;;  %v69_v45 = vpop.xlane.xlu0 %68 }
 0x12c   :  { %1029 = vrsqrt.f32 %v77_v42  ;;  %v74_v46 = vmul.f32 0.00390625, %v66_v44  ;;  %v75_v47 = vmul.f32 0.00390625, %v69_v45 }
 0x12e   :  { %v78_v48 = vadd.f32 1e-06, %v74_v46  ;;  %v79_v49 = vadd.f32 1e-06, %v75_v47 }
 0x12f   :  { %v72_v51 = vpop.xlane.xlu1 %71 }
 0x130   :  { %1031 = vrsqrt.f32 %v78_v48  ;;  %v76_v56 = vmul.f32 0.00390625, %v72_v51 }
 0x131   :  { %1033 = vrsqrt.f32 %v79_v49 }
 0x132   :  { %v80_v57 = vadd.f32 1e-06, %v76_v56 }
 0x134   :  { %1035 = vrsqrt.f32 %v80_v57 }
 0x136   :  { %v1030_v61 = vpop.eup %1029 }
 0x137   :  { %v86_v2 = vmul.f32 %v1030_v61, %v1259_v53  ;;  %v85_v10 = vmul.f32 %v1030_v61, %v1256_v52 }
 0x139   :  { %v106_v5 = vmul.f32 %v102_v63, %v86_v2  ;;  %v105_v8 = vmul.f32 %v98_v62, %v85_v10 }
 0x13a   :  { %v1032_v11 = vpop.eup %1031 }
 0x13b   :  { %v1034_v9 = vpop.eup %1033  ;;  %v88_v13 = vmul.f32 %v1032_v11, %v1279_v1  ;;  %v87_v14 = vmul.f32 %v1032_v11, %v1276_v0  ;;  %v126_v18 = vadd.f32 %v122_v12, %v106_v5  ;;  %v125_v19 = vadd.f32 %v118_v6, %v105_v8 }
 0x13c   :  { %v90_v15 = vmul.f32 %v1034_v9, %v1265_v55  ;;  %v89_v24 = vmul.f32 %v1034_v9, %v1262_v54  ;;  %v213_v54 = vsub.s32 2, %v1379_v50 }
 0x13d   :  { %v108_v16 = vmul.f32 %v102_v63, %v88_v13  ;;  %v107_v53 = vmul.f32 %v98_v62, %v87_v14 }
 0x13e   :  { %v1036_v17 = vpop.eup %1035  ;;  %v110_v20 = vmul.f32 %v102_v63, %v90_v15  ;;  %v109_v28 = vmul.f32 %v98_v62, %v89_v24 }
 0x13f   :  { %v128_v21 = vadd.f32 %v122_v12, %v108_v16  ;;  %v127_v52 = vadd.f32 %v118_v6, %v107_v53  ;;  %v92_v22 = vmul.f32 %v1036_v17, %v1285_v4  ;;  %v91_v23 = vmul.f32 %v1036_v17, %v1282_v3  ;;  %v201_v3 = vld [vmem:[%s1566_s2] sm:$0xf] }
 0x140   :  { %v130_v55 = vadd.f32 %v122_v12, %v110_v20  ;;  %v129_v4 = vadd.f32 %v118_v6, %v109_v28  ;;  %v1402_v33 = vrot.slane %v201_v3, %v97_v58  ;;  %v1404_v34 = vrot.slane %v201_v3, %v213_v54 }
 0x141   :  { %v134_v25 = vpack.c.bf16 %v128_v21, %v126_v18  ;;  %v133_v1 = vpack.c.bf16 %v127_v52, %v125_v19  ;;  %v112_v26 = vmul.f32 %v102_v63, %v92_v22  ;;  %v111_v0 = vmul.f32 %v98_v62, %v91_v23 }
 0x142   :  { %v1406_v35 = vrot.slane %v201_v3, %v101_v59  ;;  %v1408_v36 = vrot.slane %v201_v3, %v217_v32 }
 0x143   :  { %575 = vmatprep.mubr.bf16.mxu0 %v134_v25  ;;  %628 = vmatprep.mubr.bf16.mxu1 %v134_v25  ;;  %v132_v27 = vadd.f32 %v122_v12, %v112_v26  ;;  %v131_v30 = vadd.f32 %v118_v6, %v111_v0 }
 0x144   :  { %576 = vmatmul.mubr.bf16.vlgmr.msra.gmra.mrb[0].mxu0 %v133_v1  ;;  %629 = vmatmul.mubr.bf16.vlgmr.msra.gmra.mrb[0].mxu1 %v133_v1 }
 0x145   :  { %v136_v29 = vpack.c.bf16 %v132_v27, %v130_v55  ;;  %v135_v31 = vpack.c.bf16 %v131_v30, %v129_v4 }
 0x147   :  { %585 = vmatprep.mubr.bf16.mxu0 %v136_v29  ;;  %638 = vmatprep.mubr.bf16.mxu1 %v136_v29 }
 0x14c   :  { %586 = vmatmul.mubr.bf16.gmra.mrb[4].mxu0 %v135_v31  ;;  %639 = vmatmul.mubr.bf16.gmra.mrb[4].mxu1 %v135_v31 }
 0x217   :  { %v577_v37 = vpop.f32.mrb[0].mxu0  ;;  %v630_v38 = vpop.f32.mrb[0].mxu1 }
 0x218   :  { %v1411_v39 = vadd.f32 %v577_v37, %v1402_v33  ;;  %v1414_v40 = vadd.f32 %v630_v38, %v1404_v34  ;;  %v579_v41 = vpop.f32.mrb[1].mxu0  ;;  %v632_v42 = vpop.f32.mrb[1].mxu1 }
 0x219   :  { %v1417_v43 = vadd.f32 %v579_v41, %v1406_v35  ;;  %v1420_v44 = vadd.f32 %v632_v42, %v1408_v36  ;;  %v581_v45 = vpop.f32.mrb[2].mxu0  ;;  %v634_v46 = vpop.f32.mrb[2].mxu1 }
 0x21a   :  { %v649_v47 = vmul.f32 %v1411_v39, %v1411_v39  ;;  %v651_v48 = vmul.f32 %v1414_v40, %v1414_v40  ;;  %v1427_v49 = vadd.f32 %v581_v45, %v1402_v33  ;;  %v1430_v50 = vadd.f32 %v634_v46, %v1404_v34  ;;  %v583_v51 = vpop.f32.mrb[3].mxu0  ;;  %v636_v56 = vpop.f32.mrb[3].mxu1 }
 0x21b   :  { %v650_v57 = vmul.f32 %v1417_v43, %v1417_v43  ;;  %v652_v58 = vmul.f32 %v1420_v44, %v1420_v44  ;;  %v1437_v59 = vadd.f32 %v583_v51, %v1406_v35  ;;  %v1440_v60 = vadd.f32 %v636_v56, %v1408_v36 }
 0x21c   :  { %v665_v61 = vmul.f32 %v649_v47, %v1411_v39  ;;  %v667_v62 = vmul.f32 %v651_v48, %v1414_v40  ;;  %v653_v63 = vmul.f32 %v1427_v49, %v1427_v49  ;;  %v655_v2 = vmul.f32 %v1430_v50, %v1430_v50 }
 0x21d   :  { %v666_v7 = vmul.f32 %v650_v57, %v1417_v43  ;;  %v668_v10 = vmul.f32 %v652_v58, %v1420_v44  ;;  %v654_v11 = vmul.f32 %v1437_v59, %v1437_v59  ;;  %v656_v5 = vmul.f32 %v1440_v60, %v1440_v60 }
 0x21e   :  { %v681_v6 = vmul.f32 0.044715, %v665_v61  ;;  %v683_v12 = vmul.f32 0.044715, %v667_v62  ;;  %v669_v8 = vmul.f32 %v653_v63, %v1427_v49  ;;  %v671_v9 = vmul.f32 %v655_v2, %v1430_v50 }
 0x21f   :  { %v682_v13 = vmul.f32 0.044715, %v666_v7  ;;  %v684_v14 = vmul.f32 0.044715, %v668_v10  ;;  %v670_v15 = vmul.f32 %v654_v11, %v1437_v59  ;;  %v672_v16 = vmul.f32 %v656_v5, %v1440_v60  ;;  %v587_v53 = vpop.f32.mrb[4].mxu0  ;;  %v640_v17 = vpop.f32.mrb[4].mxu1 }
 0x220   :  { %v697_v18 = vadd.f32 %v681_v6, %v1411_v39  ;;  %v699_v19 = vadd.f32 %v683_v12, %v1414_v40  ;;  %v685_v20 = vmul.f32 0.044715, %v669_v8  ;;  %v687_v21 = vmul.f32 0.044715, %v671_v9  ;;  %v589_v52 = vpop.f32.mrb[5].mxu0  ;;  %v642_v22 = vpop.f32.mrb[5].mxu1 }
 0x221   :  { %v698_v23 = vadd.f32 %v682_v13, %v1417_v43  ;;  %v700_v24 = vadd.f32 %v684_v14, %v1420_v44  ;;  %v686_v25 = vmul.f32 0.044715, %v670_v15  ;;  %v688_v1 = vmul.f32 0.044715, %v672_v16  ;;  %v591_v26 = vpop.f32.mrb[6].mxu0  ;;  %v644_v0 = vpop.f32.mrb[6].mxu1 }
 0x222   :  { %v713_v55 = vmul.f32 0.7978846, %v697_v18  ;;  %v715_v27 = vmul.f32 0.7978846, %v699_v19  ;;  %v701_v28 = vadd.f32 %v685_v20, %v1427_v49  ;;  %v703_v29 = vadd.f32 %v687_v21, %v1430_v50  ;;  %v593_v30 = vpop.f32.mrb[7].mxu0  ;;  %v646_v4 = vpop.f32.mrb[7].mxu1 }
 0x223   :  { %v714_v31 = vmul.f32 0.7978846, %v698_v23  ;;  %v716_v54 = vmul.f32 0.7978846, %v700_v24  ;;  %v702_v3 = vadd.f32 %v686_v25, %v1437_v59  ;;  %v704_v32 = vadd.f32 %v688_v1, %v1440_v60 }
 0x224   :  { %1037 = vtanh.f32 %v713_v55  ;;  %v717_v37 = vmul.f32 0.7978846, %v701_v28  ;;  %v719_v38 = vmul.f32 0.7978846, %v703_v29  ;;  %v1467_v41 = vadd.f32 %v587_v53, %v1402_v33 }
 0x225   :  { %1039 = vtanh.f32 %v715_v27  ;;  %v718_v42 = vmul.f32 0.7978846, %v702_v3  ;;  %v720_v45 = vmul.f32 0.7978846, %v704_v32  ;;  %v1470_v46 = vadd.f32 %v640_v17, %v1404_v34 }
 0x226   :  { %1041 = vtanh.f32 %v714_v31  ;;  %v657_v47 = vmul.f32 %v1467_v41, %v1467_v41  ;;  %v1475_v48 = vadd.f32 %v589_v52, %v1406_v35  ;;  %v1478_v51 = vadd.f32 %v642_v22, %v1408_v36 }
 0x227   :  { %1043 = vtanh.f32 %v716_v54  ;;  %v659_v56 = vmul.f32 %v1470_v46, %v1470_v46  ;;  %v1483_v57 = vadd.f32 %v591_v26, %v1402_v33  ;;  %v1486_v58 = vadd.f32 %v644_v0, %v1404_v34 }
 0x228   :  { %1045 = vtanh.f32 %v717_v37  ;;  %v673_v61 = vmul.f32 %v657_v47, %v1467_v41  ;;  %v658_v62 = vmul.f32 %v1475_v48, %v1475_v48  ;;  %v660_v63 = vmul.f32 %v1478_v51, %v1478_v51 }
 0x229   :  { %1047 = vtanh.f32 %v719_v38  ;;  %v675_v2 = vmul.f32 %v659_v56, %v1470_v46  ;;  %v661_v7 = vmul.f32 %v1483_v57, %v1483_v57  ;;  %v663_v33 = vmul.f32 %v1486_v58, %v1486_v58 }
 0x22a   :  { %1049 = vtanh.f32 %v718_v42  ;;  %v689_v34 = vmul.f32 0.044715, %v673_v61  ;;  %v674_v10 = vmul.f32 %v658_v62, %v1475_v48  ;;  %v676_v11 = vmul.f32 %v660_v63, %v1478_v51 }
 0x22b   :  { %1051 = vtanh.f32 %v720_v45  ;;  %v691_v5 = vmul.f32 0.044715, %v675_v2  ;;  %v677_v6 = vmul.f32 %v661_v7, %v1483_v57  ;;  %v679_v12 = vmul.f32 %v663_v33, %v1486_v58 }
 0x22c   :  { %v705_v8 = vadd.f32 %v689_v34, %v1467_v41  ;;  %v690_v9 = vmul.f32 0.044715, %v674_v10  ;;  %v692_v13 = vmul.f32 0.044715, %v676_v11  ;;  %v1505_v53 = vadd.f32 %v593_v30, %v1406_v35 }
 0x22d   :  { %v707_v14 = vadd.f32 %v691_v5, %v1470_v46  ;;  %v693_v15 = vmul.f32 0.044715, %v677_v6  ;;  %v695_v16 = vmul.f32 0.044715, %v679_v12  ;;  %v1510_v21 = vadd.f32 %v646_v4, %v1408_v36 }
 0x22e   :  { %v1038_v17 = vpop.eup %1037  ;;  %v721_v18 = vmul.f32 0.7978846, %v705_v8  ;;  %v706_v19 = vadd.f32 %v690_v9, %v1475_v48  ;;  %v708_v20 = vadd.f32 %v692_v13, %v1478_v51  ;;  %v662_v31 = vmul.f32 %v1505_v53, %v1505_v53 }
 0x22f   :  { %v1040_v52 = vpop.eup %1039  ;;  %v745_v22 = vadd.f32 1.0, %v1038_v17  ;;  %v723_v23 = vmul.f32 0.7978846, %v707_v14  ;;  %v709_v24 = vadd.f32 %v693_v15, %v1483_v57  ;;  %v711_v25 = vadd.f32 %v695_v16, %v1486_v58 }
 0x230   :  { %v1042_v1 = vpop.eup %1041  ;;  %v747_v26 = vadd.f32 1.0, %v1040_v52  ;;  %1053 = vtanh.f32 %v721_v18  ;;  %v722_v35 = vmul.f32 0.7978846, %v706_v19  ;;  %v724_v0 = vmul.f32 0.7978846, %v708_v20 }
 0x231   :  { %v1044_v55 = vpop.eup %1043  ;;  %v761_v27 = vmul.f32 0.5, %v745_v22  ;;  %v746_v28 = vadd.f32 1.0, %v1042_v1  ;;  %1055 = vtanh.f32 %v723_v23  ;;  %v725_v29 = vmul.f32 0.7978846, %v709_v24 }
 0x232   :  { %v1046_v30 = vpop.eup %1045  ;;  %v763_v36 = vmul.f32 0.5, %v747_v26  ;;  %v748_v4 = vadd.f32 1.0, %v1044_v55  ;;  %1057 = vtanh.f32 %v722_v35  ;;  %v727_v56 = vmul.f32 0.7978846, %v711_v25 }
 0x233   :  { %v1048_v54 = vpop.eup %1047  ;;  %v777_v3 = vmul.f32 %v761_v27, %v1411_v39  ;;  %v762_v32 = vmul.f32 0.5, %v746_v28  ;;  %v749_v37 = vadd.f32 1.0, %v1046_v30  ;;  %1059 = vtanh.f32 %v724_v0 }
 0x234   :  { %v1050_v38 = vpop.eup %1049  ;;  %v779_v42 = vmul.f32 %v763_v36, %v1414_v40  ;;  %v764_v45 = vmul.f32 0.5, %v748_v4  ;;  %v751_v47 = vadd.f32 1.0, %v1048_v54  ;;  %1061 = vtanh.f32 %v725_v29 }
 0x235   :  { %v1052_v61 = vpop.eup %1051  ;;  %v778_v62 = vmul.f32 %v762_v32, %v1417_v43  ;;  %v765_v63 = vmul.f32 0.5, %v749_v37  ;;  %v750_v2 = vadd.f32 1.0, %v1050_v38  ;;  %v678_v39 = vmul.f32 %v662_v31, %v1505_v53 }
 0x236   :  { %v780_v7 = vmul.f32 %v764_v45, %v1420_v44  ;;  %v767_v33 = vmul.f32 0.5, %v751_v47  ;;  %v752_v34 = vadd.f32 1.0, %v1052_v61  ;;  %v664_v40 = vmul.f32 %v1510_v21, %v1510_v21 }
 0x237   :  { %v925_v10 = vpack.c.bf16 %v778_v62, %v777_v3  ;;  %v781_v11 = vmul.f32 %v765_v63, %v1427_v49  ;;  %v766_v5 = vmul.f32 0.5, %v750_v2  ;;  %v694_v8 = vmul.f32 0.044715, %v678_v39 }
 0x238   :  { %v926_v6 = vpack.c.bf16 %v780_v7, %v779_v42  ;;  %v783_v12 = vmul.f32 %v767_v33, %v1430_v50  ;;  %v768_v43 = vmul.f32 0.5, %v752_v34  ;;  %1063 = vtanh.f32 %v727_v56 }
 0x239   :  { %841 = vst [vmem:[%s1567_s5] sm:$0xff] %v925_v10  ;;  %v782_v44 = vmul.f32 %v766_v5, %v1437_v59  ;;  %v680_v9 = vmul.f32 %v664_v40, %v1510_v21  ;;  %v710_v50 = vadd.f32 %v694_v8, %v1505_v53 }
 0x23a   :  { %v1054_v13 = vpop.eup %1053  ;;  %842 = vst [vmem:[%s1567_s5 + $0x8] sm:$0xff] %v926_v6  ;;  %v784_v49 = vmul.f32 %v768_v43, %v1440_v60 }
 0x23b   :  { %v1056_v14 = vpop.eup %1055  ;;  %v927_v15 = vpack.c.bf16 %v782_v44, %v781_v11  ;;  %v753_v16 = vadd.f32 1.0, %v1054_v13  ;;  %v696_v17 = vmul.f32 0.044715, %v680_v9  ;;  %v726_v59 = vmul.f32 0.7978846, %v710_v50 }
 0x23c   :  { %v1058_v18 = vpop.eup %1057  ;;  %v928_v19 = vpack.c.bf16 %v784_v49, %v783_v12  ;;  %v755_v20 = vadd.f32 1.0, %v1056_v14 }
 0x23d   :  { %v1060_v52 = vpop.eup %1059  ;;  %843 = vst [vmem:[%s1567_s5 + $0x10] sm:$0xff] %v927_v15  ;;  %v769_v22 = vmul.f32 0.5, %v753_v16  ;;  %v754_v23 = vadd.f32 1.0, %v1058_v18  ;;  %v712_v24 = vadd.f32 %v696_v17, %v1510_v21  ;;  %1065 = vtanh.f32 %v726_v59 }
 0x23e   :  { %844 = vst [vmem:[%s1567_s5 + $0x18] sm:$0xff] %v928_v19  ;;  %v771_v60 = vmul.f32 0.5, %v755_v20  ;;  %v756_v25 = vadd.f32 1.0, %v1060_v52  ;;  %v1062_v1 = vpop.eup %1061 }
 0x23f   :  { %v785_v26 = vmul.f32 %v769_v22, %v1467_v41  ;;  %v770_v35 = vmul.f32 0.5, %v754_v23  ;;  %v728_v0 = vmul.f32 0.7978846, %v712_v24  ;;  %v757_v4 = vadd.f32 1.0, %v1062_v1 }
 0x240   :  { %v787_v55 = vmul.f32 %v771_v60, %v1470_v46  ;;  %v772_v27 = vmul.f32 0.5, %v756_v25 }
 0x241   :  { %v786_v28 = vmul.f32 %v770_v35, %v1475_v48  ;;  %1067 = vtanh.f32 %v728_v0  ;;  %v773_v46 = vmul.f32 0.5, %v757_v4 }
 0x242   :  { %v788_v29 = vmul.f32 %v772_v27, %v1478_v51  ;;  %v1064_v30 = vpop.eup %1063 }
 0x243   :  { %v929_v36 = vpack.c.bf16 %v786_v28, %v785_v26  ;;  %v759_v41 = vadd.f32 1.0, %v1064_v30  ;;  %v789_v51 = vmul.f32 %v773_v46, %v1483_v57 }
 0x244   :  { %v930_v31 = vpack.c.bf16 %v788_v29, %v787_v55 }
 0x245   :  { %845 = vst [vmem:[%s1567_s5 + $0x20] sm:$0xff] %v929_v36  ;;  %v775_v48 = vmul.f32 0.5, %v759_v41 }
 0x246   :  { %846 = vst [vmem:[%s1567_s5 + $0x28] sm:$0xff] %v930_v31 }
 0x247   :  { %v1066_v54 = vpop.eup %1065  ;;  %v791_v45 = vmul.f32 %v775_v48, %v1486_v58 }
 0x248   :  { %v758_v3 = vadd.f32 1.0, %v1066_v54 }
 0x24a   :  { %v774_v37 = vmul.f32 0.5, %v758_v3 }
 0x24b   :  { %v1068_v32 = vpop.eup %1067 }
 0x24c   :  { %v760_v38 = vadd.f32 1.0, %v1068_v32  ;;  %v790_v42 = vmul.f32 %v774_v37, %v1505_v53 }
 0x24e   :  { %v776_v47 = vmul.f32 0.5, %v760_v38  ;;  %v931_v56 = vpack.c.bf16 %v790_v42, %v789_v51 }
 0x250   :  { %v792_v61 = vmul.f32 %v776_v47, %v1510_v21  ;;  %847 = vst [vmem:[%s1567_s5 + $0x30] sm:$0xff] %v931_v56 }
 0x252   :  { %v932_v62 = vpack.c.bf16 %v792_v61, %v791_v45 }
 0x254   :  { %848 = vst [vmem:[%s1567_s5 + $0x38] sm:$0xff] %v932_v62 }

// kernel: vit_backbone_forward.23
= control target key start
LH: loop header
LB: loop body
LE: loop exit
PB: predicated region body
PF: predicated region fallthrough
CT: control target
= control target key end

     0   :  { %v57_v0 = vlaneseq  ;;  %v875_v1 = vmov 1983009808   ;;  %vm64_vm0 = vcmask 1041408   ;;  %s1198_s0 = inlined_call_operand.vmem [shape: f32[2,256], index: 0, kind: input, shape index: {}]   ;;  %s1199_s1 = inlined_call_operand.vmem [shape: f32[1,256], index: 1, kind: input, shape index: {}]   ;;  %s1200_s2 = inlined_call_operand.vmem [shape: f32[1,256], index: 2, kind: input, shape index: {}]   ;;  %s1201_s3 = inlined_call_operand.vmem [shape: bf16[256,256], index: 3, kind: input, shape index: {}]   ;;  %s1202_s4 = inlined_call_operand.vmem [shape: f32[1,256], index: 4, kind: input, shape index: {}]   ;;  %s1203_s5 = inlined_call_operand.vmem [shape: f32[1,256], index: 5, kind: input, shape index: {}]   ;;  %s1204_s6 = inlined_call_operand.vmem [shape: f32[1,256], index: 6, kind: input, shape index: {}]   ;;  %s1205_s7 = inlined_call_operand.vmem [shape: f32[1,256], index: 7, kind: input, shape index: {}]   ;;  %s1206_s8 = inlined_call_operand.vmem [shape: f32[1,256], index: 8, kind: input, shape index: {}]   ;;  %s1207_s9 = inlined_call_operand.vmem [shape: bf16[256,64], index: 9, kind: input, shape index: {}]   ;;  %s1208_s10 = inlined_call_operand.vmem [shape: f32[1,64], index: 10, kind: input, shape index: {}]   ;;  %s1209_s11 = inlined_call_operand.vmem [shape: f32[1,64], index: 11, kind: input, shape index: {}]   ;;  %s1210_s12 = inlined_call_operand.vmem [shape: f32[1,64], index: 12, kind: input, shape index: {}]   ;;  %s1211_s13 = inlined_call_operand.vmem [shape: f32[1,64], index: 13, kind: input, shape index: {}]   ;;  %s1212_s14 = inlined_call_operand.vmem [shape: f32[1,64], index: 14, kind: input, shape index: {}]   ;;  %s1213_s15 = inlined_call_operand.hbm [shape: f32[2,64], index: 15, kind: output, shape index: {}]  }
   0x1   :  { %v55_v2 = vunpack.c.l.s4 %v875_v1  ;;  %v52_v3 = vld [vmem:[%s1198_s0] sm:$0xf] }
   0x2   :  { %v961_v4 = vshrl.u32 %v57_v0, 7 }
   0x3   :  { %v56_v5 = vunpack.c.0.s8 %v55_v2 }
   0x5   :  { %v964_v6 = vsub.s32 %v56_v5, %v961_v4 }
   0x7   :  { %v60_v7 = vrot.slane %v52_v3, %v964_v6 }
   0x9   :  { %v61_v8 = vcombine.high %v60_v7, %v60_v7  ;;  %v65_v9 = vsel %vm64_vm0, %v60_v7, 0.0 }
   0xb   :  { %v66_v10 = vsel %vm64_vm0, %v61_v8, 0.0 }
   0xc   :  { %v67_v11 = vadd.f32 %v66_v10, %v65_v9 }
   0xe   :  { %68 = vadd.xlane.f32.xlu0 %v67_v11 }
   0xf   :  { %20 = vsyncpa [#allocation3], 0  ;;  %v781_v12 = vld [vmem:[%s1201_s3 + $0x4] ss:$8 sps:$4 sm:$0xff]   ;;  %v783_v13 = vld [vmem:[%s1201_s3] ss:$8 sps:$4 sm:$0xff]  }
  0x10   :  { %v784_v14 = vld [vmem:[%s1201_s3 + $0x14] ss:$8 sps:$4 sm:$0xff]   ;;  %369 = vmatprep.subr.bf16.mxu0 %v781_v12  ;;  %v786_v15 = vld [vmem:[%s1201_s3 + $0x10] ss:$8 sps:$4 sm:$0xff]   ;;  %v787_v16 = vld [vmem:[%s1201_s3 + $0x24] ss:$8 sps:$4 sm:$0xff]  }
  0x11   :  { %370 = vmatpush1.bf16.msra.mxu0 %v783_v13  ;;  %v789_v17 = vld [vmem:[%s1201_s3 + $0x20] ss:$8 sps:$4 sm:$0xff]   ;;  %v790_v18 = vld [vmem:[%s1201_s3 + $0x34] ss:$8 sps:$4 sm:$0xff]   ;;  %v792_v19 = vld [vmem:[%s1201_s3 + $0x30] ss:$8 sps:$4 sm:$0xff]  }
  0x12   :  { %371 = vmatprep.subr.bf16.mxu0 %v784_v14  ;;  %v793_v20 = vld [vmem:[%s1201_s3 + $0x44] ss:$8 sps:$4 sm:$0xff]   ;;  %v795_v21 = vld [vmem:[%s1201_s3 + $0x40] ss:$8 sps:$4 sm:$0xff]   ;;  %v796_v22 = vld [vmem:[%s1201_s3 + $0x54] ss:$8 sps:$4 sm:$0xff]  }
  0x13   :  { %v798_v23 = vld [vmem:[%s1201_s3 + $0x50] ss:$8 sps:$4 sm:$0xff]   ;;  %v799_v24 = vld [vmem:[%s1201_s3 + $0x64] ss:$8 sps:$4 sm:$0xff]   ;;  %v801_v25 = vld [vmem:[%s1201_s3 + $0x60] ss:$8 sps:$4 sm:$0xff]  }
  0x14   :  { %v802_v26 = vld [vmem:[%s1201_s3 + $0x74] ss:$8 sps:$4 sm:$0xff]   ;;  %v804_v27 = vld [vmem:[%s1201_s3 + $0x70] ss:$8 sps:$4 sm:$0xff]   ;;  %v805_v28 = vld [vmem:[%s1201_s3 + $0x84] ss:$8 sps:$4 sm:$0xff]  }
  0x15   :  { %372 = vmatpush1.bf16.msra.mxu0 %v786_v15  ;;  %v807_v29 = vld [vmem:[%s1201_s3 + $0x80] ss:$8 sps:$4 sm:$0xff]   ;;  %v876_v30 = vmov 269488144   ;;  %v808_v44 = vld [vmem:[%s1201_s3 + $0x94] ss:$8 sps:$4 sm:$0xff]  }
  0x16   :  { %373 = vmatprep.subr.bf16.mxu0 %v787_v16  ;;  %v74_v31 = vunpack.c.l.s4 %v876_v30  ;;  %v810_v45 = vld [vmem:[%s1201_s3 + $0x90] ss:$8 sps:$4 sm:$0xff]   ;;  %v811_v46 = vld [vmem:[%s1201_s3 + $0xa4] ss:$8 sps:$4 sm:$0xff]   ;;  %v813_v47 = vld [vmem:[%s1201_s3 + $0xa0] ss:$8 sps:$4 sm:$0xff]  }
  0x17   :  { %v814_v48 = vld [vmem:[%s1201_s3 + $0xb4] ss:$8 sps:$4 sm:$0xff]   ;;  %v816_v49 = vld [vmem:[%s1201_s3 + $0xb0] ss:$8 sps:$4 sm:$0xff]   ;;  %v817_v50 = vld [vmem:[%s1201_s3 + $0xc4] ss:$8 sps:$4 sm:$0xff]  }
  0x18   :  { %v75_v32 = vunpack.c.0.s8 %v74_v31  ;;  %v819_v51 = vld [vmem:[%s1201_s3 + $0xc0] ss:$8 sps:$4 sm:$0xff]   ;;  %v820_v52 = vld [vmem:[%s1201_s3 + $0xd4] ss:$8 sps:$4 sm:$0xff]   ;;  %v822_v53 = vld [vmem:[%s1201_s3 + $0xd0] ss:$8 sps:$4 sm:$0xff]  }
  0x19   :  { %374 = vmatpush1.bf16.msra.mxu0 %v789_v17  ;;  %v823_v54 = vld [vmem:[%s1201_s3 + $0xe4] ss:$8 sps:$4 sm:$0xff]   ;;  %v825_v55 = vld [vmem:[%s1201_s3 + $0xe0] ss:$8 sps:$4 sm:$0xff]   ;;  %v826_v56 = vld [vmem:[%s1201_s3 + $0xf4] ss:$8 sps:$4 sm:$0xff]  }
  0x1a   :  { %375 = vmatprep.subr.bf16.mxu0 %v790_v18  ;;  %v1024_v33 = vsub.s32 %v75_v32, %v961_v4  ;;  %v828_v57 = vld [vmem:[%s1201_s3 + $0xf0] ss:$8 sps:$4 sm:$0xff]   ;;  %v829_v58 = vld [vmem:[%s1207_s9 + $0x40] sm:$0xff]   ;;  %v831_v60 = vld [vmem:[%s1207_s9 + $0x48] sm:$0xff]   ;;  %v1101_v7 = vsub.s32 0, %v961_v4  ;;  %v1104_v8 = vsub.s32 1, %v961_v4 }
  0x1b   :  { %v830_v59 = vld [vmem:[%s1207_s9] sm:$0xff]   ;;  %756 = vmatprep.subr.bf16.mxu1 %v829_v58  ;;  %v832_v61 = vld [vmem:[%s1207_s9 + $0x8] sm:$0xff]   ;;  %v833_v62 = vld [vmem:[%s1207_s9 + $0x50] sm:$0xff]   ;;  %vm688_vm4 = vcmask 517120  }
  0x1c   :  { %757 = vmatpush3.bf16.msra.mxu1 %v830_v59  ;;  %v834_v63 = vld [vmem:[%s1207_s9 + $0x10] sm:$0xff]   ;;  %v835_v0 = vld [vmem:[%s1207_s9 + $0x58] sm:$0xff]   ;;  %v112_v9 = vld [vmem:[%s1199_s1] sm:$0x3] }
  0x1d   :  { %376 = vmatpush1.bf16.msra.mxu0 %v792_v19  ;;  %758 = vmatprep.subr.bf16.mxu1 %v831_v60  ;;  %v836_v1 = vld [vmem:[%s1207_s9 + $0x18] sm:$0xff]   ;;  %v132_v10 = vld [vmem:[%s1200_s2] sm:$0x3]  ;;  %v117_v11 = vrot.slane %v112_v9, %v1101_v7  ;;  %v121_v12 = vrot.slane %v112_v9, %v1104_v8  ;;  %v841_v30 = vld [vmem:[%s1207_s9 + $0x70] sm:$0xff]  }
  0x1e   :  { %377 = vmatprep.subr.bf16.mxu0 %v793_v20  ;;  %v137_v13 = vrot.slane %v132_v10, %v1101_v7  ;;  %v141_v14 = vrot.slane %v132_v10, %v1104_v8  ;;  %v842_v31 = vld [vmem:[%s1207_s9 + $0x30] sm:$0xff]   ;;  %v843_v32 = vld [vmem:[%s1207_s9 + $0x78] sm:$0xff]  }
  0x1f   :  { %v122_v15 = vcombine.low %v117_v11, %v121_v12  ;;  %v659_v11 = vld [vmem:[%s1212_s14] sm:$0x1] }
  0x20   :  { %759 = vmatpush3.bf16.msra.mxu1 %v832_v61  ;;  %v142_v4 = vcombine.low %v137_v13, %v141_v14  ;;  %v660_v12 = vadd.f32 1e-05, %v659_v11  ;;  %v736_v14 = vld [vmem:[%s1208_s10] ss:$0 sm:$0xff]  ;;  %s877_s10 = smov [#allocation2]  }
  0x21   :  { %378 = vmatpush1.bf16.msra.mxu0 %v795_v21  ;;  %760 = vmatprep.subr.bf16.mxu1 %v833_v62  ;;  %v129_v18 = vrot.slane %v122_v15, %v964_v6  ;;  %s696_s29 = sshll.u32 %s877_s10, 4  ;;  %s697_s29 = int_to_ptr.vmem [resolvable:$true] %s696_s29 }
  0x22   :  { %379 = vmatprep.subr.bf16.mxu0 %v796_v22  ;;  %v149_v20 = vrot.slane %v142_v4, %v964_v6  ;;  %p856_p1 = scmp.lt.s32.totalorder %s697_s29, %s697_s29 }
  0x24   :  { %761 = vmatpush3.bf16.msra.mxu1 %v834_v63 }
  0x25   :  { %380 = vmatpush1.bf16.msra.mxu0 %v798_v23  ;;  %762 = vmatprep.subr.bf16.mxu1 %v835_v0 }
  0x26   :  { %381 = vmatprep.subr.bf16.mxu0 %v799_v24 }
  0x28   :  { %763 = vmatpush3.bf16.msra.mxu1 %v836_v1 }
  0x29   :  { %382 = vmatpush1.bf16.msra.mxu0 %v801_v25 }
  0x2a   :  { %383 = vmatprep.subr.bf16.mxu0 %v802_v26 }
  0x2d   :  { %384 = vmatpush1.bf16.msra.mxu0 %v804_v27  ;;  %v837_v27 = vld [vmem:[%s1207_s9 + $0x60] sm:$0xff]  }
  0x2e   :  { %385 = vmatprep.subr.bf16.mxu0 %v805_v28  ;;  %v838_v28 = vld [vmem:[%s1207_s9 + $0x20] sm:$0xff]   ;;  %764 = vmatprep.subr.bf16.mxu1 %v837_v27 }
  0x2f   :  { %765 = vmatpush3.bf16.msra.mxu1 %v838_v28 }
  0x31   :  { %386 = vmatpush1.bf16.msra.mxu0 %v807_v29  ;;  %v839_v29 = vld [vmem:[%s1207_s9 + $0x68] sm:$0xff]  }
  0x32   :  { %387 = vmatprep.subr.bf16.mxu0 %v808_v44  ;;  %766 = vmatprep.subr.bf16.mxu1 %v839_v29 }
  0x35   :  { %388 = vmatpush1.bf16.msra.mxu0 %v810_v45 }
  0x36   :  { %389 = vmatprep.subr.bf16.mxu0 %v811_v46 }
  0x39   :  { %390 = vmatpush1.bf16.msra.mxu0 %v813_v47 }
  0x3a   :  { %391 = vmatprep.subr.bf16.mxu0 %v814_v48 }
  0x3d   :  { %392 = vmatpush1.bf16.msra.mxu0 %v816_v49 }
  0x3e   :  { %393 = vmatprep.subr.bf16.mxu0 %v817_v50 }
  0x41   :  { %394 = vmatpush1.bf16.msra.mxu0 %v819_v51  ;;  %v454_v51 = vld [vmem:[%s1204_s6] sm:$0x3] }
  0x42   :  { %395 = vmatprep.subr.bf16.mxu0 %v820_v52  ;;  %v459_v58 = vrot.slane %v454_v51, %v1101_v7  ;;  %v463_v60 = vrot.slane %v454_v51, %v1104_v8 }
  0x45   :  { %396 = vmatpush1.bf16.msra.mxu0 %v822_v53 }
  0x46   :  { %397 = vmatprep.subr.bf16.mxu0 %v823_v54 }
  0x49   :  { %398 = vmatpush1.bf16.msra.mxu0 %v825_v55 }
  0x4a   :  { %399 = vmatprep.subr.bf16.mxu0 %v826_v56 }
  0x4d   :  { %400 = vmatpush1.bf16.msra.mxu0 %v828_v57 }
  0x9b   :  { %v69_v34 = vpop.xlane.xlu0 %68 }
  0x9c   :  { %v71_v35 = vmul.f32 0.00390625, %v69_v34  ;;  %v424_v34 = vld [vmem:[%s1206_s8] sm:$0x3] }
  0x9e   :  { %v79_v36 = vrot.slane %v71_v35, %v1024_v33  ;;  %v425_v35 = vadd.f32 1e-05, %v424_v34 }
  0xa0   :  { %v1027_v37 = vsub.f32 %v52_v3, %v79_v36  ;;  %v197_v36 = vld [vmem:[%s1202_s4] sm:$0x3] }
  0xa2   :  { %v82_v38 = vmul.f32 %v1027_v37, %v1027_v37 }
  0xa4   :  { %v90_v39 = vrot.slane %v82_v38, %v964_v6  ;;  %v202_v38 = vrot.slane %v197_v36, %v1101_v7 }
  0xa6   :  { %v91_v40 = vcombine.high %v90_v39, %v90_v39  ;;  %v94_v41 = vsel %vm64_vm0, %v90_v39, 0.0 }
  0xa8   :  { %v95_v42 = vsel %vm64_vm0, %v91_v40, 0.0  ;;  %v206_v40 = vrot.slane %v197_v36, %v1104_v8 }
  0xa9   :  { %v96_v43 = vadd.f32 %v95_v42, %v94_v41 }
  0xab   :  { %97 = vadd.xlane.f32.xlu0 %v96_v43  ;;  %v440_v43 = vld [vmem:[%s1203_s5] sm:$0x3] }
  0xac   :  { %v445_v53 = vrot.slane %v440_v43, %v1101_v7  ;;  %v449_v56 = vrot.slane %v440_v43, %v1104_v8 }
 0x138   :  { %v98_v2 = vpop.xlane.xlu0 %97 }
 0x139   :  { %v99_v3 = vmul.f32 0.00390625, %v98_v2 }
 0x13b   :  { %v100_v5 = vadd.f32 1e-06, %v99_v3 }
 0x13d   :  { %845 = vrsqrt.f32 %v100_v5 }
 0x13e   :  { %847 = vrsqrt.f32 %v425_v35 }
 0x13f   :  { %849 = vrsqrt.f32 %v660_v12 }
 0x147   :  { %v846_v16 = vpop.eup %845 }
 0x148   :  { %v109_v17 = vrot.slane %v846_v16, %v1024_v33  ;;  %v844_v33 = vld [vmem:[%s1207_s9 + $0x38] sm:$0xff]   ;;  %v848_v39 = vpop.eup %847 }
 0x149   :  { %v431_v46 = vrot.slane %v848_v39, %v1101_v7  ;;  %v435_v49 = vrot.slane %v848_v39, %v1104_v8  ;;  %v850_v13 = vpop.eup %849 }
 0x14a   :  { %v111_v19 = vmul.f32 %v109_v17, %v1027_v37  ;;  %v410_v37 = vld [vmem:[%s1205_s7] sm:$0x3] }
 0x14b   :  { %v415_v41 = vrot.slane %v410_v37, %v1101_v7  ;;  %v419_v44 = vrot.slane %v410_v37, %v1104_v8  ;;  %v753_v17 = vld [vmem:[%s1211_s13] ss:$0 sm:$0xff]  ;;  %s851_s13 = scalar_lea.vmem %s697_s29, 32 }
 0x14c   :  { %v131_v21 = vmul.f32 %v129_v18, %v111_v19  ;;  %p852_p0 = scmp.ne.s32.totalorder %s697_s29, %s851_s13  ;;  %p857_p2 = scmp.lt.s32.totalorder %s851_s13, %s851_s13 }
 0x14e   :  { %v151_v22 = vadd.f32 %v149_v20, %v131_v21  ;;  %v666_v20 = vrot.slane %v850_v13, %v1101_v7  ;;  %p858_p3 = por %p857_p2, %p856_p1 }
 0x150   :  { %v159_v23 = vrot.slane %v151_v22, %v964_v6  ;;  %v840_v6 = vld [vmem:[%s1207_s9 + $0x28] sm:$0xff]   ;;  %v754_v22 = vld [vmem:[%s1209_s11] ss:$0 sm:$0xff]  ;;  %p859_p4 = pnand %p858_p3, %p852_p0 }
 0x151   :  { %767 = vmatpush3.bf16.msra.mxu1 %v840_v6 }
 0x152   :  { %v160_v24 = vcombine.high %v159_v23, %v159_v23  ;;  %v163_v26 = vpack.c.bf16 %v159_v23, %v159_v23  ;;  %768 = vmatprep.subr.bf16.mxu1 %v841_v30 }
 0x154   :  { %v164_v25 = vpack.c.bf16 %v160_v24, %v160_v24  ;;  %v755_v24 = vld [vmem:[%s1210_s12] ss:$0 sm:$0xff] }
 0x155   :  { %769 = vmatpush3.bf16.msra.mxu1 %v842_v31 }
 0x156   :  { %401 = vmatprep.mubr.bf16.mxu0 %v164_v25  ;;  %770 = vmatprep.subr.bf16.mxu1 %v843_v32 }
 0x157   :  { %402 = vmatmul.mubr.bf16.vlgmr.msra.gmra.mrb[0].mxu0 %v163_v26 }
 0x159   :  { %771 = vmatpush3.bf16.msra.mxu1 %v844_v33 }
 0x22a   :  { %v403_v42 = vpop.f32.mrb[0].mxu0 }
 0x22b   :  { %v404_v45 = vadd.f32 %v403_v42, %v202_v38  ;;  %v405_v47 = vpop.f32.mrb[1].mxu0 }
 0x22c   :  { %v406_v48 = vadd.f32 %v405_v47, %v206_v40  ;;  %v407_v50 = vpop.f32.mrb[2].mxu0 }
 0x22d   :  { %v422_v52 = vsub.f32 %v404_v45, %v415_v41  ;;  %v408_v54 = vpop.f32.mrb[3].mxu0 }
 0x22e   :  { %v423_v55 = vsub.f32 %v406_v48, %v419_v44 }
 0x22f   :  { %v438_v57 = vmul.f32 %v431_v46, %v422_v52 }
 0x230   :  { %v439_v59 = vmul.f32 %v435_v49, %v423_v55 }
 0x231   :  { %v452_v61 = vmul.f32 %v445_v53, %v438_v57 }
 0x232   :  { %v453_v62 = vmul.f32 %v449_v56, %v439_v59 }
 0x233   :  { %v466_v63 = vadd.f32 %v459_v58, %v452_v61 }
 0x234   :  { %v467_v0 = vadd.f32 %v463_v60, %v453_v62 }
 0x235   :  { %vm468_vm1 = vcmp.gt.f32.partialorder %v466_v63, 0.0  ;;  %v470_v1 = vmul.f32 0.01, %v466_v63 }
 0x236   :  { %vm469_vm2 = vcmp.gt.f32.partialorder %v467_v0, 0.0  ;;  %v471_v2 = vmul.f32 0.01, %v467_v0 }
 0x237   :  { %v472_v3 = vsel %vm468_vm1, %v466_v63, %v470_v1 }
 0x238   :  { %v473_v5 = vsel %vm469_vm2, %v467_v0, %v471_v2  ;;  %v474_v10 = vpack.c.bf16 %v472_v3, %v472_v3 }
 0x239   :  { %v475_v9 = vpack.c.bf16 %v473_v5, %v473_v5 }
 0x23b   :  { %643 = vmatprep.mubr.bf16.mxu1 %v475_v9 }
 0x23c   :  { %644 = vmatmul.mubr.bf16.vlgmr.msra.gmra.mrb[0].mxu1 %v474_v10 }
 0x30f   :  { %v772_v8 = vpop.f32.mrb[0].mxu1 }
 0x310   :  { %v773_v15 = vpop.f32.mrb[1].mxu1 }
 0x311   :  { %v774_v4 = vadd.f32 %v773_v15, %v772_v8  ;;  %v775_v16 = vpop.f32.mrb[2].mxu1 }
 0x312   :  { %v776_v18 = vpop.f32.mrb[3].mxu1 }
 0x313   :  { %v646_v19 = vadd.f32 %v774_v4, %v736_v14 }
 0x315   :  { %v658_v21 = vsub.f32 %v646_v19, %v753_v17 }
 0x317   :  { %v668_v23 = vmul.f32 %v666_v20, %v658_v21 }
 0x319   :  { %v676_v25 = vmul.f32 %v754_v22, %v668_v23 }
 0x31b   :  { %v684_v26 = vadd.f32 %v755_v24, %v676_v25 }
 0x31d   :  { %vm685_vm3 = vcmp.gt.f32.partialorder %v684_v26, 0.0  ;;  %v686_v27 = vmul.f32 0.01, %v684_v26 }
 0x31f   :  { %v687_v28 = vsel %vm685_vm3, %v684_v26, %v686_v27 }
 0x320   :  { %689 = vst.msk [vmem:[#allocation2] sm:$0x3] %vm688_vm4, %v687_v28 }
 0x321   :  { %862 = shalt.err (!%p859_p4)
}
 0x322   :  { %s863_s12 = scalar_lea.hbm %s1213_s15, 32 }
 0x323   :  { %p864_p5 = scmp.ne.s32.totalorder %s1213_s15, %s863_s12  ;;  %p867_p6 = scmp.lt.u32.totalorder %s863_s12, %s1213_s15 }
 0x325   :  { %p869_p7 = pnand %p867_p6, %p864_p5 }
 0x327   :  { %872 = shalt.err (!%p869_p7)
}
 0x328   :  { %699 = dma.vmem_to_hbm [thread:$0]  %s697_s29, 32, %s1213_s15, [#allocation3]  }
 0x329   :  { %873 = dma.done.wait [#allocation3], 32  }
 0x32a   :  { %874 = vsyncadd [#allocation3], 4294967264 }
 0x32b   :  { %703 = vsyncpa [#allocation3], 1 }

</bundles_post_ra>
